<compile_context>
chip_gen: v6e
topology: v6e:2x2x1
jax: 0.10.0
libtpu: 0.0.40
codegen_flags: <defaults>
</compile_context>

<pallas_src>
import functools

import numpy as np
import jax
import jax.numpy as jnp
from jax.experimental import pallas as pl
from jax.experimental.pallas import tpu as pltpu


# -----------------------------------------------------------------------------
# Haar synthesis filters, exactly as get_wav(pool=False) builds them.
# -----------------------------------------------------------------------------
def haar_filters():
    L = 1.0 / np.sqrt(2) * np.ones((1, 2))
    H = 1.0 / np.sqrt(2) * np.ones((1, 2))
    H[0, 0] = -H[0, 0]
    wLL = np.transpose(L) * L
    wLH = np.transpose(L) * H
    wHL = np.transpose(H) * L
    wHH = np.transpose(H) * H
    return (wLL.astype(np.float32), wLH.astype(np.float32),
            wHL.astype(np.float32), wHH.astype(np.float32))


def _np_reference(ll, lh, hl, hh):
    """Independent numpy model of the four summed ConvTranspose2d(k=2, s=2)."""
    ll, lh, hl, hh = (np.asarray(x, dtype=np.float32) for x in (ll, lh, hl, hh))
    wLL, wLH, wHL, wHH = haar_filters()
    out = np.zeros(ll.shape[:-2] + (2 * ll.shape[-2], 2 * ll.shape[-1]),
                   np.float32)
    for a in range(2):
        for b in range(2):
            out[..., a::2, b::2] = (ll * wLL[a, b] + lh * wLH[a, b]
                                    + hl * wHL[a, b] + hh * wHH[a, b])
    return out


# -----------------------------------------------------------------------------
# Kernel
# -----------------------------------------------------------------------------
def _make_kernel(W, mode):
    """One grid step = TP (n, c) planes of all four subbands.

    Haar weights are all +-0.5, so the four phases reduce to a butterfly:
        A=LL+HH  B=LL-HH  C=LH+HL  D=LH-HL
        (a,b)=(0,0): .5(A-C)  (0,1): .5(B+D)  (1,0): .5(B-D)  (1,1): .5(A+C)

    Output block is (TP, H, 4W).  Lane layout per `mode`:
      'strided' / 'shuffle' : lane = a*2W + 2j + b   (pixel-shuffled in-kernel,
                              wrapper glue is a pure reshape)
      'phases'              : lane = (2a+b)*W + j    (phase-separated, wrapper
                              does one small XLA transpose)
    """
    def kernel(ll_ref, lh_ref, hl_ref, hh_ref, o_ref):
        ll = ll_ref[...].astype(jnp.float32)
        lh = lh_ref[...].astype(jnp.float32)
        hl = hl_ref[...].astype(jnp.float32)
        hh = hh_ref[...].astype(jnp.float32)
        a_ = ll + hh
        b_ = ll - hh
        c_ = lh + hl
        d_ = lh - hl
        p00 = 0.5 * (a_ - c_)   # out[2i+0, 2j+0]
        p01 = 0.5 * (b_ + d_)   # out[2i+0, 2j+1]
        p10 = 0.5 * (b_ - d_)   # out[2i+1, 2j+0]
        p11 = 0.5 * (a_ + c_)   # out[2i+1, 2j+1]
        odt = o_ref.dtype

        if mode == "strided":
            # b-interleave via lane-strided stores; a selects the 2W half.
            o_ref[:, :, pl.ds(0, W, stride=2)] = p00.astype(odt)
            o_ref[:, :, pl.ds(1, W, stride=2)] = p01.astype(odt)
            o_ref[:, :, pl.ds(2 * W, W, stride=2)] = p10.astype(odt)
            o_ref[:, :, pl.ds(2 * W + 1, W, stride=2)] = p11.astype(odt)
        elif mode == "shuffle":
            # b-interleave in registers, then two dense full-lane stores.
            tp, h, _ = p00.shape
            row0 = jnp.stack([p00, p01], axis=-1).reshape(tp, h, 2 * W)
            row1 = jnp.stack([p10, p11], axis=-1).reshape(tp, h, 2 * W)
            o_ref[:, :, 0:2 * W] = row0.astype(odt)
            o_ref[:, :, 2 * W:4 * W] = row1.astype(odt)
        else:  # "phases": contiguous quarter-lane slabs; shuffle left to XLA.
            o_ref[:, :, 0 * W:1 * W] = p00.astype(odt)
            o_ref[:, :, 1 * W:2 * W] = p01.astype(odt)
            o_ref[:, :, 2 * W:3 * W] = p10.astype(odt)
            o_ref[:, :, 3 * W:4 * W] = p11.astype(odt)

    return kernel


def _round_up(x, m):
    return (x + m - 1) // m * m


@functools.lru_cache(maxsize=None)
def _build_call(nc, H, W, dtype, mode):
    dtype = np.dtype(dtype)
    isz = dtype.itemsize
    # VMEM bytes of one (n, c) plane in one pipeline buffer, incl. (8, 128)
    # tile padding of the last two dims (4 input planes + 1 output slab).
    per_plane = (4 * _round_up(H, 8) * _round_up(W, 128)
                 + _round_up(H, 8) * _round_up(4 * W, 128)) * isz
    budget = 16 * 1024 * 1024                  # tiles, x2 double-buffered below
    tp = max(1, min(nc, budget // (2 * per_plane)))
    if tp == nc and nc > 1:
        tp = pl.cdiv(nc, 2)                    # >= 2 grid steps for 2-TC chips
    tp = int(tp)
    grid = (pl.cdiv(nc, tp),)
    # TODO(synk): for absurdly large planes (H*W*4B > ~16 MiB) also tile H.
    vmem_limit = int(max(32 * 1024 * 1024, 2 * per_plane * tp + 8 * 1024 * 1024))

    flops = 12 * nc * H * W                    # butterfly + scaling, per pixel
    bytes_accessed = 8 * nc * H * W * isz      # 4 subbands in + 4x-sized out

    return pl.pallas_call(
        _make_kernel(W, mode),
        out_shape=jax.ShapeDtypeStruct((nc, H, 4 * W), dtype),
        grid=grid,
        in_specs=[pl.BlockSpec((tp, H, W), lambda i: (i, 0, 0))
                  for _ in range(4)],
        out_specs=pl.BlockSpec((tp, H, 4 * W), lambda i: (i, 0, 0)),
        compiler_params=pltpu.CompilerParams(
            dimension_semantics=("parallel",),
            vmem_limit_bytes=vmem_limit),
        cost_estimate=pl.CostEstimate(flops=flops, transcendentals=0,
                                      bytes_accessed=bytes_accessed),
    )


# -----------------------------------------------------------------------------
# Runtime feature probe: pick the best in-kernel pixel-shuffle variant that
# compiles AND matches the numpy reference; otherwise use the safe fallback.
# -----------------------------------------------------------------------------
_MODE_CACHE = {}


def _pick_mode(H, W, dtype):
    dt = np.dtype(dtype)
    key = (int(H), int(W), dt.name)
    if key in _MODE_CACHE:
        return _MODE_CACHE[key]
    nc = 3                                      # also exercises a partial block
    rng = np.random.RandomState(0)
    bands = [jnp.asarray(rng.randn(nc, H, W).astype(np.float32), dtype=dt)
             for _ in range(4)]
    want = _np_reference(*[np.asarray(b, dtype=np.float32) for b in bands])
    tol = 1e-5 if dt.itemsize >= 4 else 5e-2
    mode = "phases"
    for candidate in ("strided", "shuffle"):
        try:
            raw = _build_call(nc, H, W, dt, candidate)(*bands)
            got = np.asarray(jax.block_until_ready(raw), dtype=np.float32)
            got = got.reshape(nc, 2 * H, 2 * W)
            if np.allclose(got, want, rtol=tol, atol=tol):
                mode = candidate
                break
        except Exception:
            continue
    _MODE_CACHE[key] = mode
    return mode


# -----------------------------------------------------------------------------
# Public wrapper (forward pass of WaveUnpool with option_unpool='sum')
# -----------------------------------------------------------------------------
def wave_unpool_sum(LL, LH, HL, HH):
    N, C, H, W = LL.shape
    nc = N * C
    dt = np.dtype(LL.dtype)
    flat = lambda x: x.reshape(nc, H, W)
    args = (flat(LL), flat(LH), flat(HL), flat(HH))

    def run(mode):
        raw = _build_call(nc, H, W, dt, mode)(*args)      # (nc, H, 4W)
        if mode in ("strided", "shuffle"):
            # lanes already ordered as (2i+a, 2j+b): pure (free) reshape.
            return raw.reshape(N, C, 2 * H, 2 * W)
        # phase-separated lanes: one pixel-shuffle transpose in XLA.
        out = raw.reshape(N, C, H, 2, 2, W)               # (N, C, i, a, b, j)
        out = out.transpose(0, 1, 2, 3, 5, 4)             # (N, C, i, a, j, b)
        return out.reshape(N, C, 2 * H, 2 * W)

    mode = _pick_mode(H, W, dt)
    if mode == "phases":
        return run("phases")
    try:
        return run(mode)
    except Exception:                                     # belt-and-braces
        return run("phases")


def wave_unpool(LL, LH, HL, HH, original=None, option_unpool="sum"):
    if option_unpool == "sum":
        return wave_unpool_sum(LL, LH, HL, HH)
    # TODO(synk): 'cat5' option (per-band upsampled outputs, un-summed,
    # concatenated with `original` along channels) — same kernel math, no sum.
    raise NotImplementedError(option_unpool)


# -----------------------------------------------------------------------------
if __name__ == "__main__":
    N, C, H, W = 2, 4, 16, 16      # subband spatial 16 -> output (N, C, 32, 32)
    key = jax.random.PRNGKey(0)
    k1, k2, k3, k4 = jax.random.split(key, 4)
    LL = jax.random.normal(k1, (N, C, H, W), dtype=jnp.float32)
    LH = jax.random.normal(k2, (N, C, H, W), dtype=jnp.float32)
    HL = jax.random.normal(k3, (N, C, H, W), dtype=jnp.float32)
    HH = jax.random.normal(k4, (N, C, H, W), dtype=jnp.float32)

    out = wave_unpool(LL, LH, HL, HH, option_unpool="sum")
    out = jax.block_until_ready(out)

    ref = _np_reference(np.asarray(LL), np.asarray(LH),
                        np.asarray(HL), np.asarray(HH))
    assert out.shape == (N, C, 2 * H, 2 * W), out.shape
    np.testing.assert_allclose(np.asarray(out), ref, rtol=1e-5, atol=1e-5)
    print("KERNEL_OK")
</pallas_src>

<mosaic_0001>
module attributes {stable_mosaic.version = 11 : i64} {
  func.func @kernel(%arg0: i32, %arg1: memref<2x16x16xf32, #tpu.memory_space<vmem>>, %arg2: memref<2x16x16xf32, #tpu.memory_space<vmem>>, %arg3: memref<2x16x16xf32, #tpu.memory_space<vmem>>, %arg4: memref<2x16x16xf32, #tpu.memory_space<vmem>>, %arg5: memref<2x16x64xf32, #tpu.memory_space<vmem>>) attributes {dimension_semantics = [#tpu.dimension_semantics<parallel>], iteration_bounds = array<i64: 2>, scalar_prefetch = 0 : i64, scratch_operands = 0 : i64, tpu.core_type = #tpu.core_type<tc>, window_params = [{transform_indices = @transform_0, window_bounds = array<i64: 2, 16, 16>}, {transform_indices = @transform_1, window_bounds = array<i64: 2, 16, 16>}, {transform_indices = @transform_2, window_bounds = array<i64: 2, 16, 16>}, {transform_indices = @transform_3, window_bounds = array<i64: 2, 16, 16>}, {transform_indices = @transform_4, window_bounds = array<i64: 2, 16, 64>}]} {
    %c0 = arith.constant 0 : index
    %c0_0 = arith.constant 0 : index
    %c0_1 = arith.constant 0 : index
    %0 = vector.load %arg1[%c0, %c0_0, %c0_1] : memref<2x16x16xf32, #tpu.memory_space<vmem>>, vector<2x16x16xf32>
    %c0_2 = arith.constant 0 : index
    %c0_3 = arith.constant 0 : index
    %c0_4 = arith.constant 0 : index
    %1 = vector.load %arg2[%c0_2, %c0_3, %c0_4] : memref<2x16x16xf32, #tpu.memory_space<vmem>>, vector<2x16x16xf32>
    %c0_5 = arith.constant 0 : index
    %c0_6 = arith.constant 0 : index
    %c0_7 = arith.constant 0 : index
    %2 = vector.load %arg3[%c0_5, %c0_6, %c0_7] : memref<2x16x16xf32, #tpu.memory_space<vmem>>, vector<2x16x16xf32>
    %c0_8 = arith.constant 0 : index
    %c0_9 = arith.constant 0 : index
    %c0_10 = arith.constant 0 : index
    %3 = vector.load %arg4[%c0_8, %c0_9, %c0_10] : memref<2x16x16xf32, #tpu.memory_space<vmem>>, vector<2x16x16xf32>
    %4 = arith.addf %0, %3 : vector<2x16x16xf32>
    %5 = arith.subf %0, %3 : vector<2x16x16xf32>
    %6 = arith.addf %1, %2 : vector<2x16x16xf32>
    %7 = arith.subf %1, %2 : vector<2x16x16xf32>
    %8 = arith.subf %4, %6 : vector<2x16x16xf32>
    %cst = arith.constant 5.000000e-01 : f32
    %9 = vector.broadcast %cst : f32 to vector<2x16x16xf32>
    %10 = arith.mulf %9, %8 : vector<2x16x16xf32>
    %11 = arith.addf %5, %7 : vector<2x16x16xf32>
    %cst_11 = arith.constant 5.000000e-01 : f32
    %12 = vector.broadcast %cst_11 : f32 to vector<2x16x16xf32>
    %13 = arith.mulf %12, %11 : vector<2x16x16xf32>
    %14 = arith.subf %5, %7 : vector<2x16x16xf32>
    %cst_12 = arith.constant 5.000000e-01 : f32
    %15 = vector.broadcast %cst_12 : f32 to vector<2x16x16xf32>
    %16 = arith.mulf %15, %14 : vector<2x16x16xf32>
    %17 = arith.addf %4, %6 : vector<2x16x16xf32>
    %cst_13 = arith.constant 5.000000e-01 : f32
    %18 = vector.broadcast %cst_13 : f32 to vector<2x16x16xf32>
    %19 = arith.mulf %18, %17 : vector<2x16x16xf32>
    %c0_14 = arith.constant 0 : index
    %c0_15 = arith.constant 0 : index
    %c0_16 = arith.constant 0 : index
    %20 = tpu.strided_load %arg5[%c0_14, %c0_15, %c0_16] {strides = array<i32: 1, 1, 2>} : memref<2x16x64xf32, #tpu.memory_space<vmem>>, vector<2x16x16xf32>
    tpu.strided_store %arg5[%c0_14, %c0_15, %c0_16], %10 {strides = array<i32: 1, 1, 2>} : memref<2x16x64xf32, #tpu.memory_space<vmem>>, vector<2x16x16xf32>
    %c0_17 = arith.constant 0 : index
    %c0_18 = arith.constant 0 : index
    %c1 = arith.constant 1 : index
    %21 = tpu.strided_load %arg5[%c0_17, %c0_18, %c1] {strides = array<i32: 1, 1, 2>} : memref<2x16x64xf32, #tpu.memory_space<vmem>>, vector<2x16x16xf32>
    tpu.strided_store %arg5[%c0_17, %c0_18, %c1], %13 {strides = array<i32: 1, 1, 2>} : memref<2x16x64xf32, #tpu.memory_space<vmem>>, vector<2x16x16xf32>
    %c0_19 = arith.constant 0 : index
    %c0_20 = arith.constant 0 : index
    %c32 = arith.constant 32 : index
    %22 = tpu.strided_load %arg5[%c0_19, %c0_20, %c32] {strides = array<i32: 1, 1, 2>} : memref<2x16x64xf32, #tpu.memory_space<vmem>>, vector<2x16x16xf32>
    tpu.strided_store %arg5[%c0_19, %c0_20, %c32], %16 {strides = array<i32: 1, 1, 2>} : memref<2x16x64xf32, #tpu.memory_space<vmem>>, vector<2x16x16xf32>
    %c0_21 = arith.constant 0 : index
    %c0_22 = arith.constant 0 : index
    %c33 = arith.constant 33 : index
    %23 = tpu.strided_load %arg5[%c0_21, %c0_22, %c33] {strides = array<i32: 1, 1, 2>} : memref<2x16x64xf32, #tpu.memory_space<vmem>>, vector<2x16x16xf32>
    tpu.strided_store %arg5[%c0_21, %c0_22, %c33], %19 {strides = array<i32: 1, 1, 2>} : memref<2x16x64xf32, #tpu.memory_space<vmem>>, vector<2x16x16xf32>
    return
  }
  func.func @transform_0(%arg0: i32) -> (i32, i32, i32) {
    %c0_i32 = arith.constant 0 : i32
    %c0_i32_0 = arith.constant 0 : i32
    %c0_i32_1 = arith.constant 0 : i32
    return %arg0, %c0_i32, %c0_i32_0 : i32, i32, i32
  }
  func.func @transform_1(%arg0: i32) -> (i32, i32, i32) {
    %c0_i32 = arith.constant 0 : i32
    %c0_i32_0 = arith.constant 0 : i32
    %c0_i32_1 = arith.constant 0 : i32
    return %arg0, %c0_i32, %c0_i32_0 : i32, i32, i32
  }
  func.func @transform_2(%arg0: i32) -> (i32, i32, i32) {
    %c0_i32 = arith.constant 0 : i32
    %c0_i32_0 = arith.constant 0 : i32
    %c0_i32_1 = arith.constant 0 : i32
    return %arg0, %c0_i32, %c0_i32_0 : i32, i32, i32
  }
  func.func @transform_3(%arg0: i32) -> (i32, i32, i32) {
    %c0_i32 = arith.constant 0 : i32
    %c0_i32_0 = arith.constant 0 : i32
    %c0_i32_1 = arith.constant 0 : i32
    return %arg0, %c0_i32, %c0_i32_0 : i32, i32, i32
  }
  func.func @transform_4(%arg0: i32) -> (i32, i32, i32) {
    %c0_i32 = arith.constant 0 : i32
    %c0_i32_0 = arith.constant 0 : i32
    %c0_i32_1 = arith.constant 0 : i32
    return %arg0, %c0_i32, %c0_i32_0 : i32, i32, i32
  }
}

module attributes {stable_mosaic.version = 11 : i64} {
  func.func @kernel(%arg0: i32, %arg1: memref<2x16x16xf32, #tpu.memory_space<vmem>>, %arg2: memref<2x16x16xf32, #tpu.memory_space<vmem>>, %arg3: memref<2x16x16xf32, #tpu.memory_space<vmem>>, %arg4: memref<2x16x16xf32, #tpu.memory_space<vmem>>, %arg5: memref<2x16x64xf32, #tpu.memory_space<vmem>>) attributes {dimension_semantics = [#tpu.dimension_semantics<parallel>], iteration_bounds = array<i64: 2>, scalar_prefetch = 0 : i64, scratch_operands = 0 : i64, tpu.core_type = #tpu.core_type<tc>, window_params = [{transform_indices = @transform_0, window_bounds = array<i64: 2, 16, 16>}, {transform_indices = @transform_1, window_bounds = array<i64: 2, 16, 16>}, {transform_indices = @transform_2, window_bounds = array<i64: 2, 16, 16>}, {transform_indices = @transform_3, window_bounds = array<i64: 2, 16, 16>}, {transform_indices = @transform_4, window_bounds = array<i64: 2, 16, 64>}]} {
    %c0 = arith.constant 0 : index
    %c0_0 = arith.constant 0 : index
    %c0_1 = arith.constant 0 : index
    %0 = vector.load %arg1[%c0, %c0_0, %c0_1] : memref<2x16x16xf32, #tpu.memory_space<vmem>>, vector<2x16x16xf32>
    %c0_2 = arith.constant 0 : index
    %c0_3 = arith.constant 0 : index
    %c0_4 = arith.constant 0 : index
    %1 = vector.load %arg2[%c0_2, %c0_3, %c0_4] : memref<2x16x16xf32, #tpu.memory_space<vmem>>, vector<2x16x16xf32>
    %c0_5 = arith.constant 0 : index
    %c0_6 = arith.constant 0 : index
    %c0_7 = arith.constant 0 : index
    %2 = vector.load %arg3[%c0_5, %c0_6, %c0_7] : memref<2x16x16xf32, #tpu.memory_space<vmem>>, vector<2x16x16xf32>
    %c0_8 = arith.constant 0 : index
    %c0_9 = arith.constant 0 : index
    %c0_10 = arith.constant 0 : index
    %3 = vector.load %arg4[%c0_8, %c0_9, %c0_10] : memref<2x16x16xf32, #tpu.memory_space<vmem>>, vector<2x16x16xf32>
    %4 = arith.addf %0, %3 : vector<2x16x16xf32>
    %5 = arith.subf %0, %3 : vector<2x16x16xf32>
    %6 = arith.addf %1, %2 : vector<2x16x16xf32>
    %7 = arith.subf %1, %2 : vector<2x16x16xf32>
    %8 = arith.subf %4, %6 : vector<2x16x16xf32>
    %cst = arith.constant 5.000000e-01 : f32
    %9 = vector.broadcast %cst : f32 to vector<2x16x16xf32>
    %10 = arith.mulf %9, %8 : vector<2x16x16xf32>
    %11 = arith.addf %5, %7 : vector<2x16x16xf32>
    %cst_11 = arith.constant 5.000000e-01 : f32
    %12 = vector.broadcast %cst_11 : f32 to vector<2x16x16xf32>
    %13 = arith.mulf %12, %11 : vector<2x16x16xf32>
    %14 = arith.subf %5, %7 : vector<2x16x16xf32>
    %cst_12 = arith.constant 5.000000e-01 : f32
    %15 = vector.broadcast %cst_12 : f32 to vector<2x16x16xf32>
    %16 = arith.mulf %15, %14 : vector<2x16x16xf32>
    %17 = arith.addf %4, %6 : vector<2x16x16xf32>
    %cst_13 = arith.constant 5.000000e-01 : f32
    %18 = vector.broadcast %cst_13 : f32 to vector<2x16x16xf32>
    %19 = arith.mulf %18, %17 : vector<2x16x16xf32>
    %20 = vector.shape_cast %10 : vector<2x16x16xf32> to vector<2x16x16x1xf32>
    %21 = vector.shape_cast %13 : vector<2x16x16xf32> to vector<2x16x16x1xf32>
    %22 = tpu.concatenate %20, %21 in 3 : vector<2x16x16x1xf32>, vector<2x16x16x1xf32> -> vector<2x16x16x2xf32>
    %23 = vector.shape_cast %22 : vector<2x16x16x2xf32> to vector<2x16x32xf32>
    %24 = vector.shape_cast %16 : vector<2x16x16xf32> to vector<2x16x16x1xf32>
    %25 = vector.shape_cast %19 : vector<2x16x16xf32> to vector<2x16x16x1xf32>
    %26 = tpu.concatenate %24, %25 in 3 : vector<2x16x16x1xf32>, vector<2x16x16x1xf32> -> vector<2x16x16x2xf32>
    %27 = vector.shape_cast %26 : vector<2x16x16x2xf32> to vector<2x16x32xf32>
    %c0_14 = arith.constant 0 : index
    %c0_15 = arith.constant 0 : index
    %c0_16 = arith.constant 0 : index
    %28 = vector.load %arg5[%c0_14, %c0_15, %c0_16] : memref<2x16x64xf32, #tpu.memory_space<vmem>>, vector<2x16x32xf32>
    tpu.vector_store %arg5[%c0_14, %c0_15, %c0_16], %23 {strides = array<i32>} : memref<2x16x64xf32, #tpu.memory_space<vmem>>, vector<2x16x32xf32>,
    %c0_17 = arith.constant 0 : index
    %c0_18 = arith.constant 0 : index
    %c32 = arith.constant 32 : index
    %29 = vector.load %arg5[%c0_17, %c0_18, %c32] : memref<2x16x64xf32, #tpu.memory_space<vmem>>, vector<2x16x32xf32>
    tpu.vector_store %arg5[%c0_17, %c0_18, %c32], %27 {strides = array<i32>} : memref<2x16x64xf32, #tpu.memory_space<vmem>>, vector<2x16x32xf32>,
    return
  }
  func.func @transform_0(%arg0: i32) -> (i32, i32, i32) {
    %c0_i32 = arith.constant 0 : i32
    %c0_i32_0 = arith.constant 0 : i32
    %c0_i32_1 = arith.constant 0 : i32
    return %arg0, %c0_i32, %c0_i32_0 : i32, i32, i32
  }
  func.func @transform_1(%arg0: i32) -> (i32, i32, i32) {
    %c0_i32 = arith.constant 0 : i32
    %c0_i32_0 = arith.constant 0 : i32
    %c0_i32_1 = arith.constant 0 : i32
    return %arg0, %c0_i32, %c0_i32_0 : i32, i32, i32
  }
  func.func @transform_2(%arg0: i32) -> (i32, i32, i32) {
    %c0_i32 = arith.constant 0 : i32
    %c0_i32_0 = arith.constant 0 : i32
    %c0_i32_1 = arith.constant 0 : i32
    return %arg0, %c0_i32, %c0_i32_0 : i32, i32, i32
  }
  func.func @transform_3(%arg0: i32) -> (i32, i32, i32) {
    %c0_i32 = arith.constant 0 : i32
    %c0_i32_0 = arith.constant 0 : i32
    %c0_i32_1 = arith.constant 0 : i32
    return %arg0, %c0_i32, %c0_i32_0 : i32, i32, i32
  }
  func.func @transform_4(%arg0: i32) -> (i32, i32, i32) {
    %c0_i32 = arith.constant 0 : i32
    %c0_i32_0 = arith.constant 0 : i32
    %c0_i32_1 = arith.constant 0 : i32
    return %arg0, %c0_i32, %c0_i32_0 : i32, i32, i32
  }
}

module attributes {stable_mosaic.version = 11 : i64} {
  func.func @kernel(%arg0: i32, %arg1: memref<4x16x16xf32, #tpu.memory_space<vmem>>, %arg2: memref<4x16x16xf32, #tpu.memory_space<vmem>>, %arg3: memref<4x16x16xf32, #tpu.memory_space<vmem>>, %arg4: memref<4x16x16xf32, #tpu.memory_space<vmem>>, %arg5: memref<4x16x64xf32, #tpu.memory_space<vmem>>) attributes {dimension_semantics = [#tpu.dimension_semantics<parallel>], iteration_bounds = array<i64: 2>, scalar_prefetch = 0 : i64, scratch_operands = 0 : i64, tpu.core_type = #tpu.core_type<tc>, window_params = [{transform_indices = @transform_0, window_bounds = array<i64: 4, 16, 16>}, {transform_indices = @transform_1, window_bounds = array<i64: 4, 16, 16>}, {transform_indices = @transform_2, window_bounds = array<i64: 4, 16, 16>}, {transform_indices = @transform_3, window_bounds = array<i64: 4, 16, 16>}, {transform_indices = @transform_4, window_bounds = array<i64: 4, 16, 64>}]} {
    %c0 = arith.constant 0 : index
    %c0_0 = arith.constant 0 : index
    %c0_1 = arith.constant 0 : index
    %0 = vector.load %arg1[%c0, %c0_0, %c0_1] : memref<4x16x16xf32, #tpu.memory_space<vmem>>, vector<4x16x16xf32>
    %c0_2 = arith.constant 0 : index
    %c0_3 = arith.constant 0 : index
    %c0_4 = arith.constant 0 : index
    %1 = vector.load %arg2[%c0_2, %c0_3, %c0_4] : memref<4x16x16xf32, #tpu.memory_space<vmem>>, vector<4x16x16xf32>
    %c0_5 = arith.constant 0 : index
    %c0_6 = arith.constant 0 : index
    %c0_7 = arith.constant 0 : index
    %2 = vector.load %arg3[%c0_5, %c0_6, %c0_7] : memref<4x16x16xf32, #tpu.memory_space<vmem>>, vector<4x16x16xf32>
    %c0_8 = arith.constant 0 : index
    %c0_9 = arith.constant 0 : index
    %c0_10 = arith.constant 0 : index
    %3 = vector.load %arg4[%c0_8, %c0_9, %c0_10] : memref<4x16x16xf32, #tpu.memory_space<vmem>>, vector<4x16x16xf32>
    %4 = arith.addf %0, %3 : vector<4x16x16xf32>
    %5 = arith.subf %0, %3 : vector<4x16x16xf32>
    %6 = arith.addf %1, %2 : vector<4x16x16xf32>
    %7 = arith.subf %1, %2 : vector<4x16x16xf32>
    %8 = arith.subf %4, %6 : vector<4x16x16xf32>
    %cst = arith.constant 5.000000e-01 : f32
    %9 = vector.broadcast %cst : f32 to vector<4x16x16xf32>
    %10 = arith.mulf %9, %8 : vector<4x16x16xf32>
    %11 = arith.addf %5, %7 : vector<4x16x16xf32>
    %cst_11 = arith.constant 5.000000e-01 : f32
    %12 = vector.broadcast %cst_11 : f32 to vector<4x16x16xf32>
    %13 = arith.mulf %12, %11 : vector<4x16x16xf32>
    %14 = arith.subf %5, %7 : vector<4x16x16xf32>
    %cst_12 = arith.constant 5.000000e-01 : f32
    %15 = vector.broadcast %cst_12 : f32 to vector<4x16x16xf32>
    %16 = arith.mulf %15, %14 : vector<4x16x16xf32>
    %17 = arith.addf %4, %6 : vector<4x16x16xf32>
    %cst_13 = arith.constant 5.000000e-01 : f32
    %18 = vector.broadcast %cst_13 : f32 to vector<4x16x16xf32>
    %19 = arith.mulf %18, %17 : vector<4x16x16xf32>
    %c0_14 = arith.constant 0 : index
    %c0_15 = arith.constant 0 : index
    %c0_16 = arith.constant 0 : index
    %20 = vector.load %arg5[%c0_14, %c0_15, %c0_16] : memref<4x16x64xf32, #tpu.memory_space<vmem>>, vector<4x16x16xf32>
    tpu.vector_store %arg5[%c0_14, %c0_15, %c0_16], %10 {strides = array<i32>} : memref<4x16x64xf32, #tpu.memory_space<vmem>>, vector<4x16x16xf32>,
    %c0_17 = arith.constant 0 : index
    %c0_18 = arith.constant 0 : index
    %c16 = arith.constant 16 : index
    %21 = vector.load %arg5[%c0_17, %c0_18, %c16] : memref<4x16x64xf32, #tpu.memory_space<vmem>>, vector<4x16x16xf32>
    tpu.vector_store %arg5[%c0_17, %c0_18, %c16], %13 {strides = array<i32>} : memref<4x16x64xf32, #tpu.memory_space<vmem>>, vector<4x16x16xf32>,
    %c0_19 = arith.constant 0 : index
    %c0_20 = arith.constant 0 : index
    %c32 = arith.constant 32 : index
    %22 = vector.load %arg5[%c0_19, %c0_20, %c32] : memref<4x16x64xf32, #tpu.memory_space<vmem>>, vector<4x16x16xf32>
    tpu.vector_store %arg5[%c0_19, %c0_20, %c32], %16 {strides = array<i32>} : memref<4x16x64xf32, #tpu.memory_space<vmem>>, vector<4x16x16xf32>,
    %c0_21 = arith.constant 0 : index
    %c0_22 = arith.constant 0 : index
    %c48 = arith.constant 48 : index
    %23 = vector.load %arg5[%c0_21, %c0_22, %c48] : memref<4x16x64xf32, #tpu.memory_space<vmem>>, vector<4x16x16xf32>
    tpu.vector_store %arg5[%c0_21, %c0_22, %c48], %19 {strides = array<i32>} : memref<4x16x64xf32, #tpu.memory_space<vmem>>, vector<4x16x16xf32>,
    return
  }
  func.func @transform_0(%arg0: i32) -> (i32, i32, i32) {
    %c0_i32 = arith.constant 0 : i32
    %c0_i32_0 = arith.constant 0 : i32
    %c0_i32_1 = arith.constant 0 : i32
    return %arg0, %c0_i32, %c0_i32_0 : i32, i32, i32
  }
  func.func @transform_1(%arg0: i32) -> (i32, i32, i32) {
    %c0_i32 = arith.constant 0 : i32
    %c0_i32_0 = arith.constant 0 : i32
    %c0_i32_1 = arith.constant 0 : i32
    return %arg0, %c0_i32, %c0_i32_0 : i32, i32, i32
  }
  func.func @transform_2(%arg0: i32) -> (i32, i32, i32) {
    %c0_i32 = arith.constant 0 : i32
    %c0_i32_0 = arith.constant 0 : i32
    %c0_i32_1 = arith.constant 0 : i32
    return %arg0, %c0_i32, %c0_i32_0 : i32, i32, i32
  }
  func.func @transform_3(%arg0: i32) -> (i32, i32, i32) {
    %c0_i32 = arith.constant 0 : i32
    %c0_i32_0 = arith.constant 0 : i32
    %c0_i32_1 = arith.constant 0 : i32
    return %arg0, %c0_i32, %c0_i32_0 : i32, i32, i32
  }
  func.func @transform_4(%arg0: i32) -> (i32, i32, i32) {
    %c0_i32 = arith.constant 0 : i32
    %c0_i32_0 = arith.constant 0 : i32
    %c0_i32_1 = arith.constant 0 : i32
    return %arg0, %c0_i32, %c0_i32_0 : i32, i32, i32
  }
}

</mosaic_0001>

<bundles_post_ra>
// kernel: tpu_custom_call.1
= control target key start
LH: loop header
LB: loop body
LE: loop exit
PB: predicated region body
PF: predicated region fallthrough
CT: control target
= control target key end

     0   :  { %9 = vsyncpa [#allocation3], 0  ;;  %s8259_s0 = inlined_call_operand.hbm [shape: f32[3,16,16], index: 0, kind: input, shape index: {}]   ;;  %s8260_s1 = inlined_call_operand.hbm [shape: f32[3,16,16], index: 1, kind: input, shape index: {}]   ;;  %s8261_s2 = inlined_call_operand.hbm [shape: f32[3,16,16], index: 2, kind: input, shape index: {}]   ;;  %s8262_s3 = inlined_call_operand.hbm [shape: f32[3,16,16], index: 3, kind: input, shape index: {}]   ;;  %s8263_s4 = inlined_call_operand.hbm [shape: f32[3,16,64], index: 4, kind: output, shape index: {}]  }
   0x1   :  { %11 = vsyncpa [#allocation3 + $0x1], 0 }
   0x2   :  { %12 = vsyncpa [#allocation6], 0 }
   0x3   :  { %14 = vsyncpa [#allocation6 + $0x1], 0 }
   0x4   :  { %15 = vsyncpa [#allocation9], 0 }
   0x5   :  { %17 = vsyncpa [#allocation9 + $0x1], 0 }
   0x6   :  { %18 = vsyncpa [#allocation4], 0 }
   0x7   :  { %20 = vsyncpa [#allocation4 + $0x1], 0  ;;  %s5371_s15 = smov 0   ;;  %s5373_s16 = smov 0  }
   0x8   :  { %s5375_s17 = smov 0   ;;  %s5377_s18 = smov 0  }
   0x9 LB: > { %s5392_s19 = sadd.s32 4294967295, %s5311_s18   ;;  %s4979_s20 = sadd.s32 4294967294, %s5311_s18   ;;  %s5311_s18 = sphi %s5377_s18, %s8689_s18   ;;  %s5307_s17 = sphi %s5375_s17, %s8688_s17   ;;  %s5303_s16 = sphi %s5373_s16, %s8687_s16   ;;  %s5299_s15 = sphi %s5371_s15, %s8686_s15  }
   0xa   : > { %s5396_s21 = sadd.s32 1, %s5311_s18   ;;  %s33_s22 = sadd.s32 1, %s5307_s17 }
   0xb   : > { %s30_s23 = ssub.s32 %s5311_s18, %s5396_s21  ;;  %p40_p0 = scmp.ne.s32.totalorder %s5307_s17, %s5303_s16 }
   0xc   : > { %p31_p1 = scmp.eq.s32.totalorder %s30_s23, 0  ;;  %p41_p2 = scmp.eq.s32.totalorder %s5311_s18, 0 }
   0xd   : > { %p46_p3 = scmp.ne.s32.totalorder %s5303_s16, %s5299_s15  ;;  %p47_p4 = scmp.eq.s32.totalorder %s5392_s19, 0 }
   0xe   : > { %s5408_s24 = scalar_select %p31_p1, %s5307_s17, %s33_s22  }
   0xf   : > { %p5410_p5 = por %p41_p2, %p40_p0  ;;  %p5414_p6 = por %p47_p4, %p46_p3 }
  0x10   : > { %p148_p7 = scmp.eq.s32.totalorder %s5392_s19, 1  ;;  %p154_p8 = scmp.eq.s32.totalorder %s4979_s20, 1 }
  0x11   : > { %p8264_p11 = scmp.ge.s32.totalorder %s5311_s18, 2 }
  0x12   : > { %p5419_p9 = por %p148_p7, %p40_p0  ;;  %p5423_p10 = por %p154_p8, %p46_p3 }
  0x13   : > { %170 = sbr.rel (%p8264_p11) target bundleno = 152 (0x98), region = 16 }
  0x14   : > { %s8336_s27 = scalar_select %p5419_p9, 1, 0 }
  0x15   : > { %s8337_s28 = scalar_select %p5423_p10, 1, 0 }
  0x18   : > { %173 = sbr.rel (!%p5410_p5) target bundleno = 56 (0x38), region = 20  ;;  %s174_s29 = sand.u32 (%p5410_p5), 1, %s5307_s17  }
  0x19   : > { %s4983_s30 = sshll.u32 (%p5410_p5), %s5311_s18, 1  ;;  %s4982_s5 = sshll.u32 (%p5410_p5), %s174_s29, 5 }
  0x1a   : > { %s180_s6 = ssub.s32 (%p5410_p5), 3, %s4983_s30  ;;  %s5437_s9 = scalar_lea.sflag (%p5410_p5), [#allocation3], %s174_s29 }
  0x1b   : > { %p181_p12 = scmp.lt.s32.totalorder (%p5410_p5), %s180_s6, 2  ;;  %s178_s10 = scalar_lea.vmem (%p5410_p5), [#allocation2], %s4982_s5 }
  0x1d   : > { %s8691_s6 = smov (!%p181_p12, %s180_s6), 2 }
  0x1e   : > { %s5434_s7 = sshll.u32 %s8691_s6, 8 }
  0x1f   : > { %s186_s8 = ssub.s32 512, %s5434_s7 }
  0x20   : > { %187 = vsyncadd %s5437_s9, %s186_s8  ;;  %p4986_p13 = scmp.ne.s32.totalorder %s5434_s7, 0  ;;  %s5042_s11 = sshll.u32 %s5311_s18, 9 }
  0x21   : > { %s5445_s14 = scalar_lea.hbm %s8259_s0, %s5042_s11  ;;  %s194_s20 = sshll.u32 %s178_s10, 4  ;;  %s5447_s20 = int_to_ptr.vmem [resolvable:$true] %s194_s20 }
  0x22   : > { %s5135_s22 = scalar_lea.hbm %s5445_s14, %s5434_s7  ;;  %s5139_s30 = scalar_lea.hbm %s8259_s0, 768 }
  0x23   : > { %p5136_p0 = scmp.ne.s32.totalorder %s5445_s14, %s5135_s22  ;;  %p5140_p3 = scmp.lt.s32.totalorder %s5445_s14, %s8259_s0 }
  0x24   : > { %p5141_p4 = scmp.lt.s32.totalorder %s5139_s30, %s5135_s22 }
  0x25   : > { %p5137_p1 = pnand %p5136_p0, %p4986_p13 }
  0x26   : > { %p5142_p7 = por %p5141_p4, %p5140_p3 }
  0x27   : > { %p5138_p2 = pneg %p5137_p1 }
  0x29   : > { %p5143_p8 = pnand %p5142_p7, %p5138_p2 }
  0x2b   : > { %5146 = shalt.err (!%p5143_p8)
}
  0x2c   : > { %s5147_s8 = scalar_lea.vmem %s5447_s20, %s5434_s7  ;;  %s5313_s10 = smov [#allocation2]  }
  0x2d   : > { %p5148_p12 = scmp.ne.s32.totalorder %s5447_s20, %s5147_s8  ;;  %s5151_s11 = sshll.u32 %s5313_s10, 4  ;;  %s5152_s11 = int_to_ptr.vmem [resolvable:$false] %s5151_s11 }
  0x2e   : > { %s5153_s12 = scalar_lea.vmem %s5152_s11, 1024  ;;  %p5154_p11 = scmp.lt.s32.totalorder %s5447_s20, %s5152_s11 }
  0x2f   : > { %p5149_p0 = pnand %p5148_p12, %p4986_p13  ;;  %p5155_p10 = scmp.lt.s32.totalorder %s5153_s12, %s5147_s8 }
  0x31   : > { %p5150_p1 = pneg %p5149_p0  ;;  %p5156_p9 = por %p5155_p10, %p5154_p11 }
  0x33   : > { %p5157_p3 = pnand %p5156_p9, %p5150_p1 }
  0x35   : > { %5160 = shalt.err (!%p5157_p3)
}
  0x36   : > { %s5314_s13 = smov 128   ;;  %s5315_s22 = smov 8  }
  0x37   : > { %200 = dma.hbm_to_vmem [thread:$0]  (%p4986_p13), %s5445_s14, %s5434_s7, %s5447_s20, %s5437_s9, %s5314_s13, %s5314_s13, %s5315_s22  }
  0x38 PF: > { %203 = sbr.rel (!%p5410_p5) target bundleno = 88 (0x58), region = 24  ;;  %s204_s23 = sand.u32 (%p5410_p5), 1, %s5311_s18  }
  0x39   : > { %s206_s29 = sand.u32 (%p5410_p5), 1, %s5307_s17   ;;  %s4993_s5 = sshll.u32 (%p5410_p5), %s5311_s18, 1 }
  0x3a   : > { %s4992_s30 = sshll.u32 (%p5410_p5), %s206_s29, 5  ;;  %s210_s6 = ssub.s32 (%p5410_p5), 3, %s4993_s5 }
  0x3b   : > { %p211_p9 = scmp.lt.s32.totalorder (%p5410_p5), %s210_s6, 2  ;;  %s5481_s11 = scalar_lea.sflag (%p5410_p5), [#allocation6], %s204_s23 }
  0x3c   : > { %s208_s7 = scalar_lea.vmem (%p5410_p5), [#allocation5], %s4992_s30 }
  0x3d   : > { %s8693_s6 = smov (!%p211_p9, %s210_s6), 2 }
  0x3e   : > { %s5478_s8 = sshll.u32 %s8693_s6, 8 }
  0x3f   : > { %s216_s10 = ssub.s32 512, %s5478_s8 }
  0x40   : > { %217 = vsyncadd %s5481_s11, %s216_s10  ;;  %p4996_p10 = scmp.ne.s32.totalorder %s5478_s8, 0  ;;  %s5047_s9 = sshll.u32 %s5311_s18, 9 }
  0x41   : > { %s5489_s12 = scalar_lea.hbm %s8260_s1, %s5047_s9  ;;  %s224_s13 = sshll.u32 %s208_s7, 4  ;;  %s5491_s13 = int_to_ptr.vmem [resolvable:$true] %s224_s13 }
  0x42   : > { %s5161_s22 = scalar_lea.hbm %s5489_s12, %s5478_s8  ;;  %s5165_s30 = scalar_lea.hbm %s8260_s1, 768 }
  0x43   : > { %p5162_p11 = scmp.ne.s32.totalorder %s5489_s12, %s5161_s22  ;;  %p5166_p4 = scmp.lt.s32.totalorder %s5489_s12, %s8260_s1 }
  0x44   : > { %p5167_p7 = scmp.lt.s32.totalorder %s5165_s30, %s5161_s22 }
  0x45   : > { %p5163_p13 = pnand %p5162_p11, %p4996_p10 }
  0x46   : > { %p5168_p8 = por %p5167_p7, %p5166_p4 }
  0x47   : > { %p5164_p2 = pneg %p5163_p13 }
  0x49   : > { %p5169_p12 = pnand %p5168_p8, %p5164_p2 }
  0x4b   : > { %5172 = shalt.err (!%p5169_p12)
}
  0x4c   : > { %s5173_s10 = scalar_lea.vmem %s5491_s13, %s5478_s8  ;;  %s5316_s7 = smov [#allocation5]  }
  0x4d   : > { %p5174_p0 = scmp.ne.s32.totalorder %s5491_s13, %s5173_s10  ;;  %s5177_s9 = sshll.u32 %s5316_s7, 4  ;;  %s5178_s9 = int_to_ptr.vmem [resolvable:$false] %s5177_s9 }
  0x4e   : > { %s5179_s14 = scalar_lea.vmem %s5178_s9, 1024  ;;  %p5180_p9 = scmp.lt.s32.totalorder %s5491_s13, %s5178_s9 }
  0x4f   : > { %p5175_p1 = pnand %p5174_p0, %p4996_p10  ;;  %p5181_p11 = scmp.lt.s32.totalorder %s5179_s14, %s5173_s10 }
  0x51   : > { %p5176_p3 = pneg %p5175_p1  ;;  %p5182_p13 = por %p5181_p11, %p5180_p9 }
  0x53   : > { %p5183_p4 = pnand %p5182_p13, %p5176_p3 }
  0x55   : > { %5186 = shalt.err (!%p5183_p4)
}
  0x56   : > { %s5317_s20 = smov 128   ;;  %s5318_s22 = smov 8  }
  0x57   : > { %230 = dma.hbm_to_vmem [thread:$0]  (%p4996_p10), %s5489_s12, %s5478_s8, %s5491_s13, %s5481_s11, %s5317_s20, %s5317_s20, %s5318_s22  }
  0x58 PF: > { %233 = sbr.rel (!%p5410_p5) target bundleno = 120 (0x78), region = 28  ;;  %s234_s23 = sand.u32 (%p5410_p5), 1, %s5311_s18  }
  0x59   : > { %s236_s29 = sand.u32 (%p5410_p5), 1, %s5307_s17   ;;  %s5003_s5 = sshll.u32 (%p5410_p5), %s5311_s18, 1 }
  0x5a   : > { %s5002_s30 = sshll.u32 (%p5410_p5), %s236_s29, 5  ;;  %s240_s6 = ssub.s32 (%p5410_p5), 3, %s5003_s5 }
  0x5b   : > { %p241_p2 = scmp.lt.s32.totalorder (%p5410_p5), %s240_s6, 2  ;;  %s5525_s9 = scalar_lea.sflag (%p5410_p5), [#allocation6], %s234_s23 }
  0x5c   : > { %s238_s8 = scalar_lea.vmem (%p5410_p5), [#allocation7], %s5002_s30 }
  0x5d   : > { %s8695_s6 = smov (!%p241_p2, %s240_s6), 2 }
  0x5e   : > { %s5522_s10 = sshll.u32 %s8695_s6, 8 }
  0x5f   : > { %s246_s7 = ssub.s32 512, %s5522_s10 }
  0x60   : > { %247 = vsyncadd %s5525_s9, %s246_s7  ;;  %p5006_p10 = scmp.ne.s32.totalorder %s5522_s10, 0  ;;  %s5052_s11 = sshll.u32 %s5311_s18, 9 }
  0x61   : > { %s5533_s14 = scalar_lea.hbm %s8261_s2, %s5052_s11  ;;  %s254_s20 = sshll.u32 %s238_s8, 4  ;;  %s5535_s20 = int_to_ptr.vmem [resolvable:$true] %s254_s20 }
  0x62   : > { %s5187_s22 = scalar_lea.hbm %s5533_s14, %s5522_s10  ;;  %s5191_s30 = scalar_lea.hbm %s8261_s2, 768 }
  0x63   : > { %p5188_p7 = scmp.ne.s32.totalorder %s5533_s14, %s5187_s22  ;;  %p5192_p0 = scmp.lt.s32.totalorder %s5533_s14, %s8261_s2 }
  0x64   : > { %p5193_p1 = scmp.lt.s32.totalorder %s5191_s30, %s5187_s22 }
  0x65   : > { %p5189_p8 = pnand %p5188_p7, %p5006_p10 }
  0x66   : > { %p5194_p3 = por %p5193_p1, %p5192_p0 }
  0x67   : > { %p5190_p12 = pneg %p5189_p8 }
  0x69   : > { %p5195_p9 = pnand %p5194_p3, %p5190_p12 }
  0x6b   : > { %5198 = shalt.err (!%p5195_p9)
}
  0x6c   : > { %s5199_s7 = scalar_lea.vmem %s5535_s20, %s5522_s10  ;;  %s5319_s8 = smov [#allocation7]  }
  0x6d   : > { %p5200_p11 = scmp.ne.s32.totalorder %s5535_s20, %s5199_s7  ;;  %s5203_s11 = sshll.u32 %s5319_s8, 4  ;;  %s5204_s11 = int_to_ptr.vmem [resolvable:$false] %s5203_s11 }
  0x6e   : > { %s5205_s12 = scalar_lea.vmem %s5204_s11, 1024  ;;  %p5206_p2 = scmp.lt.s32.totalorder %s5535_s20, %s5204_s11 }
  0x6f   : > { %p5201_p13 = pnand %p5200_p11, %p5006_p10  ;;  %p5207_p7 = scmp.lt.s32.totalorder %s5205_s12, %s5199_s7 }
  0x71   : > { %p5202_p4 = pneg %p5201_p13  ;;  %p5208_p8 = por %p5207_p7, %p5206_p2 }
  0x73   : > { %p5209_p0 = pnand %p5208_p8, %p5202_p4 }
  0x75   : > { %5212 = shalt.err (!%p5209_p0)
}
  0x76   : > { %s5320_s13 = smov 128   ;;  %s5321_s22 = smov 8  }
  0x77   : > { %260 = dma.hbm_to_vmem [thread:$0]  (%p5006_p10), %s5533_s14, %s5522_s10, %s5535_s20, %s5525_s9, %s5320_s13, %s5320_s13, %s5321_s22  }
  0x78 PF: > { %263 = sbr.rel (!%p5410_p5) target bundleno = 152 (0x98), region = 32  ;;  %s264_s23 = sand.u32 (%p5410_p5), 1, %s5307_s17  }
  0x79   : > { %s5013_s29 = sshll.u32 (%p5410_p5), %s5311_s18, 1  ;;  %s5012_s30 = sshll.u32 (%p5410_p5), %s264_s23, 5 }
  0x7a   : > { %s270_s5 = ssub.s32 (%p5410_p5), 3, %s5013_s29  ;;  %s5568_s8 = scalar_lea.sflag (%p5410_p5), [#allocation9], %s264_s23 }
  0x7b   : > { %p271_p12 = scmp.lt.s32.totalorder (%p5410_p5), %s270_s5, 2  ;;  %s268_s10 = scalar_lea.vmem (%p5410_p5), [#allocation8], %s5012_s30 }
  0x7d   : > { %s8697_s5 = smov (!%p271_p12, %s270_s5), 2 }
  0x7e   : > { %s5565_s6 = sshll.u32 %s8697_s5, 8 }
  0x7f   : > { %s276_s7 = ssub.s32 512, %s5565_s6 }
  0x80   : > { %277 = vsyncadd %s5568_s8, %s276_s7  ;;  %p5016_p5 = scmp.ne.s32.totalorder %s5565_s6, 0  ;;  %s5057_s25 = sshll.u32 %s5311_s18, 9 }
  0x81   : > { %s5576_s20 = scalar_lea.hbm %s8262_s3, %s5057_s25  ;;  %s284_s11 = sshll.u32 %s268_s10, 4  ;;  %s5578_s11 = int_to_ptr.vmem [resolvable:$true] %s284_s11 }
  0x82   : > { %s5213_s12 = scalar_lea.hbm %s5576_s20, %s5565_s6  ;;  %s5217_s23 = scalar_lea.hbm %s8262_s3, 768 }
  0x83   : > { %p5214_p10 = scmp.ne.s32.totalorder %s5576_s20, %s5213_s12  ;;  %p5218_p9 = scmp.lt.s32.totalorder %s5576_s20, %s8262_s3 }
  0x84   : > { %p5219_p11 = scmp.lt.s32.totalorder %s5217_s23, %s5213_s12 }
  0x85   : > { %p5215_p1 = pnand %p5214_p10, %p5016_p5 }
  0x86   : > { %p5220_p13 = por %p5219_p11, %p5218_p9 }
  0x87   : > { %p5216_p3 = pneg %p5215_p1 }
  0x89   : > { %p5221_p4 = pnand %p5220_p13, %p5216_p3 }
  0x8b   : > { %5224 = shalt.err (!%p5221_p4)
}
  0x8c   : > { %s5225_s5 = scalar_lea.vmem %s5578_s11, %s5565_s6  ;;  %s5322_s7 = smov [#allocation8]  }
  0x8d   : > { %p5226_p2 = scmp.ne.s32.totalorder %s5578_s11, %s5225_s5  ;;  %s5229_s10 = sshll.u32 %s5322_s7, 4  ;;  %s5230_s10 = int_to_ptr.vmem [resolvable:$false] %s5229_s10 }
  0x8e   : > { %s5231_s25 = scalar_lea.vmem %s5230_s10, 1024  ;;  %p5232_p0 = scmp.lt.s32.totalorder %s5578_s11, %s5230_s10 }
  0x8f   : > { %p5227_p7 = pnand %p5226_p2, %p5016_p5  ;;  %p5233_p12 = scmp.lt.s32.totalorder %s5231_s25, %s5225_s5 }
  0x91   : > { %p5228_p8 = pneg %p5227_p7  ;;  %p5234_p10 = por %p5233_p12, %p5232_p0 }
  0x93   : > { %p5235_p1 = pnand %p5234_p10, %p5228_p8 }
  0x95   : > { %5238 = shalt.err (!%p5235_p1)
}
  0x96   : > { %s5323_s9 = smov 128   ;;  %s5324_s14 = smov 8  }
  0x97   : > { %290 = dma.hbm_to_vmem [thread:$0]  (%p5016_p5), %s5576_s20, %s5565_s6, %s5578_s11, %s5568_s8, %s5323_s9, %s5323_s9, %s5324_s14  }
  0x98 PF: > { %p5022_p3 = scmp.ge.s32.totalorder %s5311_s18, 1  ;;  %p292_p9 = scmp.lt.s32.totalorder %s5311_s18, 3 }
  0x9a   : > { %p293_p11 = pnand %p5022_p3, %p292_p9 }
  0x9c   : > { %296 = sbr.rel (%p293_p11) target bundleno = 1390 (0x56e), region = 36 }
  0xa1   : > { %s5607_s12 = sand.u32 1, %s5303_s16  }
  0xa2   : > { %s5610_s13 = sshll.u32 %s5607_s12, 5  ;;  %s299_s22 = scalar_lea.sflag [#allocation3], %s5607_s12 }
  0xa3   : > { %s5614_s23 = scalar_lea.vmem [#allocation2], %s5610_s13 }
  0xa4   : > { %5282 = dma.done.wait (%p5414_p6), %s299_s22, 512  }
  0xa5   : > { %5284 = vsyncadd (%p5414_p6), %s299_s22, 4294966784  ;;  %s307_s6 = sand.u32 1, %s5392_s19   ;;  %s5622_s20 = scalar_lea.vmem [#allocation5], %s5610_s13 }
  0xa6   : > { %s308_s8 = scalar_lea.sflag [#allocation6], %s307_s6 }
  0xa7   : > { %5286 = dma.done.wait (%p5414_p6), %s308_s8, 1024  }
  0xa8   : > { %5288 = vsyncadd (%p5414_p6), %s308_s8, 4294966272  ;;  %s5629_s11 = scalar_lea.vmem [#allocation7], %s5610_s13  ;;  %s326_s29 = scalar_lea.sflag [#allocation9], %s5607_s12 }
  0xa9   : > { %s5633_s30 = scalar_lea.vmem [#allocation8], %s5610_s13 }
  0xaa   : > { %5290 = dma.done.wait (%p5414_p6), %s326_s29, 512  }
  0xab   : > { %5292 = vsyncadd (%p5414_p6), %s326_s29, 4294966784  ;;  %v463_v0 = vlaneseq  ;;  %v399_v1 = vld [vmem:[%s5614_s23] sm:$0xff]  ;;  %v5662_v13 = vld [vmem:[%s5622_s20 + $0x18] sm:$0xff]  ;;  %vm8313_vm0 = vcmask 7168   ;;  %s5327_s26 = smov 2   ;;  %s5328_s5 = smov 4  }
  0xac   : > { %v403_v2 = vld [vmem:[%s5622_s20] sm:$0xff]  ;;  %v5665_v14 = vld [vmem:[%s5629_s11 + $0x18] sm:$0xff]  ;;  %v400_v29 = vld [vmem:[%s5614_s23 + $0x8] sm:$0xff]  ;;  %s5329_s7 = smov 6   ;;  %s5330_s10 = smov 8   ;;  %vm2560_vm1 = vcmask 15360  }
  0xad   : > { %v407_v3 = vld [vmem:[%s5629_s11] sm:$0xff]  ;;  %v5642_v4 = vshrl.u32 %v463_v0, 7  ;;  %v5668_v15 = vld [vmem:[%s5614_s23 + $0x18] sm:$0xff]  ;;  %v5675_v17 = vsub.f32 %v5662_v13, %v5665_v14  ;;  %v404_v30 = vld [vmem:[%s5622_s20 + $0x8] sm:$0xff]  ;;  %s5331_s25 = smov 10   ;;  %s5332_s9 = smov 12  }
  0xae   : > { %v411_v5 = vld [vmem:[%s5633_s30] sm:$0xff]  ;;  %v5645_v6 = vadd.f32 %v407_v3, %v403_v2  ;;  %v5651_v9 = vsub.f32 %v403_v2, %v407_v3  ;;  %v5671_v16 = vld [vmem:[%s5633_s30 + $0x18] sm:$0xff]  ;;  %v408_v31 = vld [vmem:[%s5629_s11 + $0x8] sm:$0xff]  ;;  %s5333_s14 = smov 14   ;;  %s5334_s22 = smov 16   ;;  %vm2565_vm2 = vcmask 31744  }
  0xaf   : > { %v5647_v7 = vadd.f32 %v411_v5, %v399_v1  ;;  %v5649_v8 = vsub.f32 %v399_v1, %v411_v5  ;;  %v5656_v11 = vsub.s32 1, %v5642_v4  ;;  %v5659_v12 = vsub.s32 0, %v5642_v4  ;;  %8344 = vst [vmem:[#allocation21_spill] sm:$0xff] %v5675_v17  ;;  %v412_v32 = vld [vmem:[%s5633_s30 + $0x8] sm:$0xff]  ;;  %v401_v49 = vld [vmem:[%s5614_s23 + $0x10] sm:$0xff]  ;;  %s5335_s23 = smov 18  }
  0xb0   : > { %8338 = vst [vmem:[#allocation15_spill] sm:$0xff] %v5645_v6  ;;  %8341 = vst [vmem:[#allocation18_spill] sm:$0xff] %v5651_v9  ;;  %v5679_v19 = vsub.f32 %v5668_v15, %v5671_v16  ;;  %v5684_v22 = vsub.s32 2, %v5642_v4  ;;  %v5688_v24 = vsub.s32 3, %v5642_v4  ;;  %v5692_v26 = vsub.s32 4, %v5642_v4  ;;  %v405_v50 = vld [vmem:[%s5622_s20 + $0x10] sm:$0xff] }
  0xb1   : > { %8339 = vst [vmem:[#allocation16_spill] sm:$0xff] %v5647_v7  ;;  %8340 = vst [vmem:[#allocation17_spill] sm:$0xff] %v5649_v8  ;;  %v431_v10 = vsub.f32 %v5647_v7, %v5645_v6  ;;  %v5696_v28 = vsub.s32 5, %v5642_v4  ;;  %v5704_v34 = vsub.s32 6, %v5642_v4  ;;  %v5706_v35 = vadd.f32 %v412_v32, %v400_v29  ;;  %v409_v51 = vld [vmem:[%s5629_s11 + $0x10] sm:$0xff]  ;;  %s5336_s6 = smov 20  }
  0xb2   : > { %8342 = vst [vmem:[#allocation19_spill] sm:$0xff] %v5656_v11  ;;  %8343 = vst [vmem:[#allocation20_spill] sm:$0xff] %v5659_v12  ;;  %v5708_v36 = vadd.f32 %v408_v31, %v404_v30  ;;  %v5712_v38 = vsub.s32 7, %v5642_v4  ;;  %v5717_v42 = vsub.f32 %v400_v29, %v412_v32  ;;  %v5719_v43 = vsub.f32 %v404_v30, %v408_v31  ;;  %v413_v52 = vld [vmem:[%s5633_s30 + $0x10] sm:$0xff]  ;;  %s5337_s8 = smov 22   ;;  %s5338_s20 = smov 24  }
  0xb3   : > { %v435_v18 = vmul.f32 0.5, %v431_v10  ;;  %8345 = vst [vmem:[#allocation22_spill] sm:$0xff] %v5679_v19  ;;  %8346 = vst [vmem:[#allocation23_spill] sm:$0xff] %v5684_v22  ;;  %v5731_v54 = vadd.f32 %v413_v52, %v401_v49  ;;  %v5733_v55 = vadd.f32 %v409_v51, %v405_v50  ;;  %v5739_v60 = vsub.f32 %v401_v49, %v413_v52  ;;  %s5339_s11 = smov 26   ;;  %s5340_s29 = smov 28  }
  0xb4   : > { %8347 = vst [vmem:[#allocation24_spill] sm:$0xff] %v5688_v24  ;;  %8348 = vst [vmem:[#allocation25_spill] sm:$0xff] %v5692_v26  ;;  %v432_v39 = vsub.f32 %v5706_v35, %v5708_v36  ;;  %v5741_v61 = vsub.f32 %v405_v50, %v409_v51  ;;  %v5751_v5 = vadd.f32 %v5671_v16, %v5668_v15  ;;  %s8314_s30 = smov 30   ;;  %vm2570_vm3 = vcmask 48128   ;;  %p8683_p6 = scmp.ne.s32.totalorder %s8336_s27, 0 }
  0xb5   : > { %v477_v20 = vrot.slane %v435_v18, %v5656_v11  ;;  %v466_v21 = vrot.slane %v435_v18, %v5659_v12  ;;  %v488_v23 = vrot.slane %v435_v18, %v5684_v22  ;;  %v499_v25 = vrot.slane %v435_v18, %v5688_v24  ;;  %8349 = vst [vmem:[#allocation26_spill] sm:$0xff] %v5696_v28 }
  0xb6   : > { %v510_v27 = vrot.slane %v435_v18, %v5692_v26  ;;  %v521_v33 = vrot.slane %v435_v18, %v5696_v28  ;;  %8350 = vst [vmem:[#allocation27_spill] sm:$0xff] %v5704_v34  ;;  %8351 = vst [vmem:[#allocation28_spill] sm:$0xff] %v5706_v35  ;;  %v532_v37 = vrot.slane %v435_v18, %v5704_v34  ;;  %v436_v41 = vmul.f32 0.5, %v432_v39 }
  0xb7   : > { %479 = vbcast.lane.b32.xlu1 %v477_v20, 256  ;;  %468 = vbcast.lane.b32.xlu0 %v466_v21, 256  ;;  %8352 = vst [vmem:[#allocation29_spill] sm:$0xff] %v5708_v36  ;;  %8353 = vst [vmem:[#allocation30_spill] sm:$0xff] %v5712_v38  ;;  %v543_v40 = vrot.slane %v435_v18, %v5712_v38  ;;  %v433_v57 = vsub.f32 %v5731_v54, %v5733_v55  ;;  %vm2575_vm4 = vcmask 64512   ;;  %vm2580_vm5 = vcmask 80896  }
  0xb8   : > { %8354 = vst [vmem:[#allocation31_spill] sm:$0xff] %v5717_v42  ;;  %8355 = vst [vmem:[#allocation32_spill] sm:$0xff] %v5719_v43  ;;  %v554_v44 = vrot.slane %v436_v41, %v5659_v12  ;;  %v565_v45 = vrot.slane %v436_v41, %v5656_v11  ;;  %v576_v46 = vrot.slane %v436_v41, %v5684_v22  ;;  %vm2585_vm6 = vcmask 97280  }
  0xb9   : > { %v587_v47 = vrot.slane %v436_v41, %v5688_v24  ;;  %v598_v48 = vrot.slane %v436_v41, %v5692_v26  ;;  %v609_v53 = vrot.slane %v436_v41, %v5696_v28  ;;  %8356 = vst [vmem:[#allocation33_spill] sm:$0xff] %v5731_v54  ;;  %8357 = vst [vmem:[#allocation34_spill] sm:$0xff] %v5733_v55  ;;  %v437_v59 = vmul.f32 0.5, %v433_v57 }
  0xba   : > { %v620_v56 = vrot.slane %v436_v41, %v5704_v34  ;;  %v631_v58 = vrot.slane %v436_v41, %v5712_v38  ;;  %8358 = vst [vmem:[#allocation35_spill] sm:$0xff] %v5739_v60  ;;  %8359 = vst [vmem:[#allocation36_spill] sm:$0xff] %v5741_v61  ;;  %v5755_v10 = vadd.f32 %v5665_v14, %v5662_v13  ;;  %vm2590_vm7 = vcmask 113664  }
  0xbb   : > { %483 = vbcast.lane.b32.xlu1 %v477_v20, 264  ;;  %472 = vbcast.lane.b32.xlu0 %v466_v21, 264  ;;  %v642_v62 = vrot.slane %v437_v59, %v5659_v12  ;;  %v653_v63 = vrot.slane %v437_v59, %v5656_v11  ;;  %v664_v0 = vrot.slane %v437_v59, %v5684_v22  ;;  %vm2595_vm8 = vcmask 130048  }
  0xbc   : > { %v675_v1 = vrot.slane %v437_v59, %v5688_v24  ;;  %v686_v2 = vrot.slane %v437_v59, %v5692_v26  ;;  %v697_v3 = vrot.slane %v437_v59, %v5696_v28  ;;  %8360 = vst [vmem:[#allocation37_spill] sm:$0xff] %v5751_v5  ;;  %8361 = vst [vmem:[#allocation38_spill] sm:$0xff] %v5755_v10  ;;  %vm2600_vm9 = vcmask 146432  }
  0xbd   : > { %v708_v18 = vrot.slane %v437_v59, %v5704_v34  ;;  %v434_v20 = vsub.f32 %v5751_v5, %v5755_v10  ;;  %v719_v21 = vrot.slane %v437_v59, %v5712_v38  ;;  %v439_v32 = vadd.f32 %v5651_v9, %v5649_v8 }
  0xbe   : > { %vm2605_vm10 = vcmask 162816   ;;  %vm2610_vm11 = vcmask 179200   ;;  %vm8325_vm12 = vcmask 195584   ;;  %vm8318_vm13 = vcmask 211968  }
  0xbf   : > { %494 = vbcast.lane.b32.xlu1 %v488_v23, 264  ;;  %490 = vbcast.lane.b32.xlu0 %v488_v23, 256  ;;  %v438_v23 = vmul.f32 0.5, %v434_v20  ;;  %vm8317_vm14 = vcmask 228352   ;;  %vm8316_vm15 = vcmask 244736  }
  0xc1   : > { %v730_v15 = vrot.slane %v438_v23, %v5659_v12  ;;  %v741_v13 = vrot.slane %v438_v23, %v5656_v11  ;;  %v752_v14 = vrot.slane %v438_v23, %v5684_v22  ;;  %v763_v16 = vrot.slane %v438_v23, %v5688_v24 }
  0xc2   : > { %v796_v31 = vrot.slane %v438_v23, %v5704_v34  ;;  %v807_v39 = vrot.slane %v438_v23, %v5712_v38 }
  0xc3   : > { %505 = vbcast.lane.b32.xlu1 %v499_v25, 264  ;;  %501 = vbcast.lane.b32.xlu0 %v499_v25, 256  ;;  %v774_v25 = vrot.slane %v438_v23, %v5692_v26 }
  0xc7   : > { %516 = vbcast.lane.b32.xlu1 %v510_v27, 264  ;;  %512 = vbcast.lane.b32.xlu0 %v510_v27, 256  ;;  %v785_v27 = vrot.slane %v438_v23, %v5696_v28 }
  0xcb   : > { %527 = vbcast.lane.b32.xlu1 %v521_v33, 264  ;;  %523 = vbcast.lane.b32.xlu0 %v521_v33, 256 }
  0xcf   : > { %538 = vbcast.lane.b32.xlu1 %v532_v37, 264  ;;  %534 = vbcast.lane.b32.xlu0 %v532_v37, 256 }
  0xd3   : > { %549 = vbcast.lane.b32.xlu1 %v543_v40, 264  ;;  %545 = vbcast.lane.b32.xlu0 %v543_v40, 256  ;;  %v443_v40 = vmul.f32 0.5, %v439_v32 }
  0xd5   : > { %v840_v51 = vrot.slane %v443_v40, %v5684_v22  ;;  %v862_v59 = vrot.slane %v443_v40, %v5692_v26  ;;  %v895_v23 = vrot.slane %v443_v40, %v5712_v38 }
  0xd7   : > { %560 = vbcast.lane.b32.xlu1 %v554_v44, 264  ;;  %556 = vbcast.lane.b32.xlu0 %v554_v44, 256 }
  0xdb   : > { %571 = vbcast.lane.b32.xlu1 %v565_v45, 264  ;;  %567 = vbcast.lane.b32.xlu0 %v565_v45, 256  ;;  %v818_v45 = vrot.slane %v443_v40, %v5659_v12 }
  0xdf   : > { %582 = vbcast.lane.b32.xlu1 %v576_v46, 264  ;;  %578 = vbcast.lane.b32.xlu0 %v576_v46, 256 }
  0xe3   : > { %593 = vbcast.lane.b32.xlu1 %v587_v47, 264  ;;  %589 = vbcast.lane.b32.xlu0 %v587_v47, 256 }
  0xe7   : > { %604 = vbcast.lane.b32.xlu1 %v598_v48, 264  ;;  %600 = vbcast.lane.b32.xlu0 %v598_v48, 256  ;;  %v829_v48 = vrot.slane %v443_v40, %v5656_v11 }
  0xeb   : > { %615 = vbcast.lane.b32.xlu1 %v609_v53, 264  ;;  %611 = vbcast.lane.b32.xlu0 %v609_v53, 256 }
  0xef   : > { %626 = vbcast.lane.b32.xlu1 %v620_v56, 264  ;;  %622 = vbcast.lane.b32.xlu0 %v620_v56, 256  ;;  %v851_v56 = vrot.slane %v443_v40, %v5688_v24 }
  0xf3   : > { %637 = vbcast.lane.b32.xlu1 %v631_v58, 264  ;;  %633 = vbcast.lane.b32.xlu0 %v631_v58, 256 }
  0xf7   : > { %648 = vbcast.lane.b32.xlu1 %v642_v62, 264  ;;  %644 = vbcast.lane.b32.xlu0 %v642_v62, 256 }
  0xfb   : > { %659 = vbcast.lane.b32.xlu1 %v653_v63, 264  ;;  %655 = vbcast.lane.b32.xlu0 %v653_v63, 256 }
  0xff   : > { %670 = vbcast.lane.b32.xlu1 %v664_v0, 264  ;;  %666 = vbcast.lane.b32.xlu0 %v664_v0, 256  ;;  %v873_v0 = vrot.slane %v443_v40, %v5696_v28 }
 0x103   : > { %681 = vbcast.lane.b32.xlu1 %v675_v1, 264  ;;  %677 = vbcast.lane.b32.xlu0 %v675_v1, 256 }
 0x107   : > { %692 = vbcast.lane.b32.xlu1 %v686_v2, 264  ;;  %688 = vbcast.lane.b32.xlu0 %v686_v2, 256 }
 0x10b   : > { %703 = vbcast.lane.b32.xlu1 %v697_v3, 264  ;;  %699 = vbcast.lane.b32.xlu0 %v697_v3, 256  ;;  %v884_v3 = vrot.slane %v443_v40, %v5704_v34 }
 0x10f   : > { %714 = vbcast.lane.b32.xlu1 %v708_v18, 264  ;;  %710 = vbcast.lane.b32.xlu0 %v708_v18, 256  ;;  %v440_v18 = vadd.f32 %v5719_v43, %v5717_v42 }
 0x113   : > { %725 = vbcast.lane.b32.xlu1 %v719_v21, 264  ;;  %721 = vbcast.lane.b32.xlu0 %v719_v21, 256 }
 0x117   : > { %736 = vbcast.lane.b32.xlu1 %v730_v15, 264  ;;  %732 = vbcast.lane.b32.xlu0 %v730_v15, 256  ;;  %v444_v15 = vmul.f32 0.5, %v440_v18 }
 0x119   : > { %v928_v40 = vrot.slane %v444_v15, %v5684_v22 }
 0x11b   : > { %747 = vbcast.lane.b32.xlu1 %v741_v13, 264  ;;  %743 = vbcast.lane.b32.xlu0 %v741_v13, 256 }
 0x11f   : > { %758 = vbcast.lane.b32.xlu1 %v752_v14, 264  ;;  %754 = vbcast.lane.b32.xlu0 %v752_v14, 256 }
 0x123   : > { %769 = vbcast.lane.b32.xlu1 %v763_v16, 264  ;;  %765 = vbcast.lane.b32.xlu0 %v763_v16, 256  ;;  %v906_v16 = vrot.slane %v444_v15, %v5659_v12 }
 0x127   : > { %780 = vbcast.lane.b32.xlu1 %v774_v25, 264  ;;  %776 = vbcast.lane.b32.xlu0 %v774_v25, 256 }
 0x129   : > { %v5767_v29 = vpop.permute.xlu1 %479  ;;  %v5769_v30 = vpop.permute.xlu0 %468 }
 0x12b   : > { %791 = vbcast.lane.b32.xlu1 %v785_v27, 264  ;;  %787 = vbcast.lane.b32.xlu0 %v785_v27, 256 }
 0x12d   : > { %v5774_v33 = vpop.permute.xlu1 %483  ;;  %v5776_v37 = vpop.permute.xlu0 %472 }
 0x12e   : > { %8362 = vst [vmem:[#allocation39_spill] sm:$0xff] %v5776_v37 }
 0x12f   : > { %802 = vbcast.lane.b32.xlu1 %v796_v31, 264  ;;  %798 = vbcast.lane.b32.xlu0 %v796_v31, 256  ;;  %v917_v31 = vrot.slane %v444_v15, %v5656_v11 }
 0x131   : > { %v5779_v41 = vpop.permute.xlu1 %494  ;;  %v5781_v44 = vpop.permute.xlu0 %490 }
 0x133   : > { %813 = vbcast.lane.b32.xlu1 %v807_v39, 264  ;;  %809 = vbcast.lane.b32.xlu0 %v807_v39, 256 }
 0x135   : > { %v5784_v46 = vpop.permute.xlu1 %505  ;;  %v5786_v47 = vpop.permute.xlu0 %501 }
 0x137   : > { %824 = vbcast.lane.b32.xlu1 %v818_v45, 264  ;;  %820 = vbcast.lane.b32.xlu0 %v818_v45, 256 }
 0x139   : > { %v5789_v49 = vpop.permute.xlu1 %516  ;;  %v5791_v50 = vpop.permute.xlu0 %512 }
 0x13a   : > { %8363 = vst [vmem:[#allocation40_spill] sm:$0xff] %v5789_v49 }
 0x13b   : > { %835 = vbcast.lane.b32.xlu1 %v829_v48, 264  ;;  %831 = vbcast.lane.b32.xlu0 %v829_v48, 256 }
 0x13d   : > { %v5794_v52 = vpop.permute.xlu1 %527  ;;  %v5796_v53 = vpop.permute.xlu0 %523 }
 0x13f   : > { %846 = vbcast.lane.b32.xlu1 %v840_v51, 264  ;;  %842 = vbcast.lane.b32.xlu0 %v840_v51, 256  ;;  %v939_v51 = vrot.slane %v444_v15, %v5688_v24 }
 0x141   : > { %v5799_v57 = vpop.permute.xlu1 %538  ;;  %v5801_v58 = vpop.permute.xlu0 %534 }
 0x143   : > { %857 = vbcast.lane.b32.xlu1 %v851_v56, 264  ;;  %853 = vbcast.lane.b32.xlu0 %v851_v56, 256 }
 0x145   : > { %v5804_v62 = vpop.permute.xlu1 %549  ;;  %v5806_v63 = vpop.permute.xlu0 %545 }
 0x147   : > { %868 = vbcast.lane.b32.xlu1 %v862_v59, 264  ;;  %864 = vbcast.lane.b32.xlu0 %v862_v59, 256 }
 0x149   : > { %v5809_v1 = vpop.permute.xlu1 %560  ;;  %v5811_v2 = vpop.permute.xlu0 %556 }
 0x14a   : > { %8364 = vst [vmem:[#allocation41_spill] sm:$0xff] %v5809_v1 }
 0x14b   : > { %879 = vbcast.lane.b32.xlu1 %v873_v0, 264  ;;  %875 = vbcast.lane.b32.xlu0 %v873_v0, 256  ;;  %v950_v0 = vrot.slane %v444_v15, %v5692_v26 }
 0x14d   : > { %v5816_v20 = vpop.permute.xlu1 %571  ;;  %v5818_v21 = vpop.permute.xlu0 %567 }
 0x14e   : > { %8365 = vst [vmem:[#allocation42_spill] sm:$0xff] %v5816_v20 }
 0x14f   : > { %890 = vbcast.lane.b32.xlu1 %v884_v3, 264  ;;  %886 = vbcast.lane.b32.xlu0 %v884_v3, 256 }
 0x151   : > { %v5821_v13 = vpop.permute.xlu1 %582  ;;  %v5823_v14 = vpop.permute.xlu0 %578 }
 0x152   : > { %8366 = vst [vmem:[#allocation43_spill] sm:$0xff] %v5821_v13 }
 0x153   : > { %901 = vbcast.lane.b32.xlu1 %v895_v23, 264  ;;  %897 = vbcast.lane.b32.xlu0 %v895_v23, 256  ;;  %v961_v23 = vrot.slane %v444_v15, %v5696_v28 }
 0x155   : > { %v5826_v25 = vpop.permute.xlu1 %593  ;;  %v5828_v27 = vpop.permute.xlu0 %589 }
 0x156   : > { %8367 = vst [vmem:[#allocation44_spill] sm:$0xff] %v5826_v25 }
 0x157   : > { %912 = vbcast.lane.b32.xlu1 %v906_v16, 264  ;;  %908 = vbcast.lane.b32.xlu0 %v906_v16, 256 }
 0x159   : > { %v5831_v32 = vpop.permute.xlu1 %604  ;;  %v5833_v39 = vpop.permute.xlu0 %600 }
 0x15a   : > { %8368 = vst [vmem:[#allocation45_spill] sm:$0xff] %v5831_v32 }
 0x15b   : > { %923 = vbcast.lane.b32.xlu1 %v917_v31, 264  ;;  %919 = vbcast.lane.b32.xlu0 %v917_v31, 256 }
 0x15d   : > { %v5836_v45 = vpop.permute.xlu1 %615  ;;  %v5838_v48 = vpop.permute.xlu0 %611 }
 0x15e   : > { %8369 = vst [vmem:[#allocation46_spill] sm:$0xff] %v5836_v45 }
 0x15f   : > { %934 = vbcast.lane.b32.xlu1 %v928_v40, 264  ;;  %930 = vbcast.lane.b32.xlu0 %v928_v40, 256  ;;  %v972_v40 = vrot.slane %v444_v15, %v5704_v34 }
 0x161   : > { %v5841_v56 = vpop.permute.xlu1 %626  ;;  %v5843_v59 = vpop.permute.xlu0 %622 }
 0x162   : > { %8370 = vst [vmem:[#allocation47_spill] sm:$0xff] %v5841_v56 }
 0x163   : > { %945 = vbcast.lane.b32.xlu1 %v939_v51, 264  ;;  %941 = vbcast.lane.b32.xlu0 %v939_v51, 256  ;;  %v441_v51 = vadd.f32 %v5741_v61, %v5739_v60 }
 0x165   : > { %v5846_v3 = vpop.permute.xlu1 %637  ;;  %v5848_v18 = vpop.permute.xlu0 %633  ;;  %v445_v55 = vmul.f32 0.5, %v441_v51 }
 0x166   : > { %8371 = vst [vmem:[#allocation48_spill] sm:$0xff] %v5846_v3 }
 0x167   : > { %956 = vbcast.lane.b32.xlu1 %v950_v0, 264  ;;  %952 = vbcast.lane.b32.xlu0 %v950_v0, 256  ;;  %v983_v0 = vrot.slane %v444_v15, %v5712_v38  ;;  %v1005_v7 = vrot.slane %v445_v55, %v5656_v11  ;;  %v1016_v51 = vrot.slane %v445_v55, %v5684_v22 }
 0x168   : > { %v1027_v61 = vrot.slane %v445_v55, %v5688_v24  ;;  %v1038_v43 = vrot.slane %v445_v55, %v5692_v26  ;;  %v1049_v9 = vrot.slane %v445_v55, %v5696_v28  ;;  %v1060_v56 = vrot.slane %v445_v55, %v5704_v34 }
 0x169   : > { %v5851_v16 = vpop.permute.xlu1 %648  ;;  %v5853_v31 = vpop.permute.xlu0 %644 }
 0x16a   : > { %8372 = vst [vmem:[#allocation49_spill] sm:$0xff] %v5851_v16 }
 0x16b   : > { %967 = vbcast.lane.b32.xlu1 %v961_v23, 264  ;;  %963 = vbcast.lane.b32.xlu0 %v961_v23, 256  ;;  %v994_v23 = vrot.slane %v445_v55, %v5659_v12 }
 0x16d   : > { %v5858_v10 = vpop.permute.xlu1 %659  ;;  %v5860_v5 = vpop.permute.xlu0 %655 }
 0x16e   : > { %8373 = vst [vmem:[#allocation50_spill] sm:$0xff] %v5858_v10 }
 0x16f   : > { %978 = vbcast.lane.b32.xlu1 %v972_v40, 264  ;;  %974 = vbcast.lane.b32.xlu0 %v972_v40, 256 }
 0x171   : > { %v5863_v54 = vpop.permute.xlu1 %670  ;;  %v5865_v36 = vpop.permute.xlu0 %666 }
 0x172   : > { %8374 = vst [vmem:[#allocation51_spill] sm:$0xff] %v5863_v54 }
 0x173   : > { %989 = vbcast.lane.b32.xlu1 %v983_v0, 264  ;;  %985 = vbcast.lane.b32.xlu0 %v983_v0, 256 }
 0x175   : > { %v5868_v35 = vpop.permute.xlu1 %681  ;;  %v5870_v6 = vpop.permute.xlu0 %677 }
 0x176   : > { %8375 = vst [vmem:[#allocation52_spill] sm:$0xff] %v5868_v35 }
 0x177   : > { %1000 = vbcast.lane.b32.xlu1 %v994_v23, 264  ;;  %996 = vbcast.lane.b32.xlu0 %v994_v23, 256 }
 0x179   : > { %v5873_v40 = vpop.permute.xlu1 %692  ;;  %v5875_v15 = vpop.permute.xlu0 %688 }
 0x17a   : > { %8376 = vst [vmem:[#allocation53_spill] sm:$0xff] %v5873_v40 }
 0x17b   : > { %1011 = vbcast.lane.b32.xlu1 %v1005_v7, 264  ;;  %1007 = vbcast.lane.b32.xlu0 %v1005_v7, 256 }
 0x17d   : > { %v5878_v60 = vpop.permute.xlu1 %703  ;;  %v5880_v0 = vpop.permute.xlu0 %699 }
 0x17e   : > { %8377 = vst [vmem:[#allocation54_spill] sm:$0xff] %v5878_v60 }
 0x17f   : > { %1022 = vbcast.lane.b32.xlu1 %v1016_v51, 264  ;;  %1018 = vbcast.lane.b32.xlu0 %v1016_v51, 256 }
 0x181   : > { %v5883_v42 = vpop.permute.xlu1 %714  ;;  %v5885_v23 = vpop.permute.xlu0 %710 }
 0x182   : > { %8378 = vst [vmem:[#allocation55_spill] sm:$0xff] %v5883_v42 }
 0x183   : > { %1033 = vbcast.lane.b32.xlu1 %v1027_v61, 264  ;;  %1029 = vbcast.lane.b32.xlu0 %v1027_v61, 256  ;;  %v442_v61 = vadd.f32 %v5675_v17, %v5679_v19 }
 0x185   : > { %v5888_v8 = vpop.permute.xlu1 %725  ;;  %v5890_v7 = vpop.permute.xlu0 %721  ;;  %v446_v20 = vmul.f32 0.5, %v442_v61 }
 0x186   : > { %8379 = vst [vmem:[#allocation56_spill] sm:$0xff] %v5888_v8 }
 0x187   : > { %1044 = vbcast.lane.b32.xlu1 %v1038_v43, 264  ;;  %1040 = vbcast.lane.b32.xlu0 %v1038_v43, 256  ;;  %v1071_v43 = vrot.slane %v445_v55, %v5712_v38  ;;  %v1093_v17 = vrot.slane %v446_v20, %v5656_v11  ;;  %v1104_v61 = vrot.slane %v446_v20, %v5684_v22 }
 0x188   : > { %v1126_v11 = vrot.slane %v446_v20, %v5692_v26  ;;  %v1137_v22 = vrot.slane %v446_v20, %v5696_v28 }
 0x189   : > { %v5893_v32 = vpop.permute.xlu1 %736  ;;  %v5895_v51 = vpop.permute.xlu0 %732 }
 0x18a   : > { %8380 = vst [vmem:[#allocation57_spill] sm:$0xff] %v5893_v32 }
 0x18b   : > { %1055 = vbcast.lane.b32.xlu1 %v1049_v9, 264  ;;  %1051 = vbcast.lane.b32.xlu0 %v1049_v9, 256  ;;  %v1082_v9 = vrot.slane %v446_v20, %v5659_v12  ;;  %v1115_v12 = vrot.slane %v446_v20, %v5688_v24  ;;  %v1148_v24 = vrot.slane %v446_v20, %v5704_v34 }
 0x18d   : > { %v5900_v45 = vpop.permute.xlu1 %747  ;;  %v5902_v3 = vpop.permute.xlu0 %743 }
 0x18e   : > { %8381 = vst [vmem:[#allocation58_spill] sm:$0xff] %v5900_v45 }
 0x18f   : > { %1066 = vbcast.lane.b32.xlu1 %v1060_v56, 264  ;;  %1062 = vbcast.lane.b32.xlu0 %v1060_v56, 256 }
 0x191   : > { %v5905_v1 = vpop.permute.xlu1 %758  ;;  %v5907_v32 = vpop.permute.xlu0 %754 }
 0x192   : > { %8382 = vst [vmem:[#allocation59_spill] sm:$0xff] %v5905_v1 }
 0x193   : > { %1077 = vbcast.lane.b32.xlu1 %v1071_v43, 264  ;;  %1073 = vbcast.lane.b32.xlu0 %v1071_v43, 256 }
 0x195   : > { %v5910_v25 = vpop.permute.xlu1 %769  ;;  %v5912_v19 = vpop.permute.xlu0 %765 }
 0x196   : > { %8383 = vst [vmem:[#allocation60_spill] sm:$0xff] %v5910_v25  ;;  %v5325_v25 = vmov 1983009808  }
 0x197   : > { %1088 = vbcast.lane.b32.xlu1 %v1082_v9, 264  ;;  %1084 = vbcast.lane.b32.xlu0 %v1082_v9, 256  ;;  %v1235_v26 = vunpack.c.l.s4 %v5325_v25 }
 0x199   : > { %v5915_v56 = vpop.permute.xlu1 %780  ;;  %v5917_v55 = vpop.permute.xlu0 %776  ;;  %v1236_v13 = vunpack.c.0.s8 %v1235_v26 }
 0x19a   : > { %8384 = vst [vmem:[#allocation61_spill] sm:$0xff] %v5915_v56 }
 0x19b   : > { %1099 = vbcast.lane.b32.xlu1 %v1093_v17, 264  ;;  %1095 = vbcast.lane.b32.xlu0 %v1093_v17, 256 }
 0x19d   : > { %v5920_v1 = vpop.permute.xlu1 %791  ;;  %v5922_v43 = vpop.permute.xlu0 %787 }
 0x19e   : > { %8385 = vst [vmem:[#allocation62_spill] sm:$0xff] %v5920_v1 }
 0x19f   : > { %1110 = vbcast.lane.b32.xlu1 %v1104_v61, 264  ;;  %1106 = vbcast.lane.b32.xlu0 %v1104_v61, 256 }
 0x1a1   : > { %v5925_v45 = vpop.permute.xlu1 %802  ;;  %v5927_v9 = vpop.permute.xlu0 %798 }
 0x1a2   : > { %8386 = vst [vmem:[#allocation63_spill] sm:$0xff] %v5925_v45 }
 0x1a3   : > { %1121 = vbcast.lane.b32.xlu1 %v1115_v12, 264  ;;  %1117 = vbcast.lane.b32.xlu0 %v1115_v12, 256 }
 0x1a5   : > { %v5930_v56 = vpop.permute.xlu1 %813  ;;  %v5932_v17 = vpop.permute.xlu0 %809 }
 0x1a6   : > { %8387 = vst [vmem:[#allocation64_spill] sm:$0xff] %v5930_v56  ;;  %v1159_v56 = vrot.slane %v446_v20, %v5712_v38 }
 0x1a7   : > { %1132 = vbcast.lane.b32.xlu1 %v1126_v11, 264  ;;  %1128 = vbcast.lane.b32.xlu0 %v1126_v11, 256 }
 0x1a9   : > { %v5935_v1 = vpop.permute.xlu1 %824  ;;  %v821_v61 = vpop.permute.xlu0 %820 }
 0x1aa   : > { %v1168_v10 = vsel %vm8313_vm0, %v5769_v30, %v821_v61 }
 0x1ab   : > { %1143 = vbcast.lane.b32.xlu1 %v1137_v22, 264  ;;  %1139 = vbcast.lane.b32.xlu0 %v1137_v22, 256 }
 0x1ad   : > { %v5938_v45 = vpop.permute.xlu1 %835  ;;  %v832_v12 = vpop.permute.xlu0 %831 }
 0x1ae   : > { %v1170_v20 = vsel %vm8313_vm0, %v5767_v29, %v832_v12 }
 0x1af   : > { %1154 = vbcast.lane.b32.xlu1 %v1148_v24, 264  ;;  %1150 = vbcast.lane.b32.xlu0 %v1148_v24, 256  ;;  %v5950_v24 = vsub.s32 %v1236_v13, %v5642_v4 }
 0x1b1   : > { %v5941_v11 = vpop.permute.xlu1 %846  ;;  %v843_v28 = vpop.permute.xlu0 %842  ;;  %8388 = vst [vmem:[#allocation65_spill] sm:$0xff] %v5950_v24 }
 0x1b2   : > { %v1172_v22 = vsel %vm8313_vm0, %v5781_v44, %v843_v28 }
 0x1b3   : > { %v1233_v34 = vcombine.high %v1168_v10, %v1172_v22  ;;  %1165 = vbcast.lane.b32.xlu1 %v1159_v56, 264  ;;  %1161 = vbcast.lane.b32.xlu0 %v1159_v56, 256  ;;  %v1232_v38 = vcombine.low %v1168_v10, %v1172_v22 }
 0x1b5   : > { %v5947_v16 = vpop.permute.xlu1 %857  ;;  %v854_v25 = vpop.permute.xlu0 %853  ;;  %v1240_v35 = vrot.slane %v1232_v38, %v5950_v24  ;;  %v1247_v13 = vrot.slane %v1233_v34, %v5950_v24 }
 0x1b6   : > { %v1174_v26 = vsel %vm8313_vm0, %v5786_v47, %v854_v25  ;;  %v5326_v47 = vmov 1934713408  }
 0x1b7   : > { %v1248_v30 = vcombine.low %v1170_v20, %v1174_v26  ;;  %v1249_v61 = vcombine.high %v1170_v20, %v1174_v26  ;;  %v1299_v22 = vunpack.c.l.s4 %v5326_v47 }
 0x1b9   : > { %v1256_v28 = vrot.slane %v1248_v30, %v5950_v24  ;;  %v1263_v44 = vrot.slane %v1249_v61, %v5950_v24  ;;  %v5958_v56 = vpop.permute.xlu1 %868  ;;  %v865_v40 = vpop.permute.xlu0 %864  ;;  %v1300_v61 = vunpack.c.0.s8 %v1299_v22 }
 0x1ba   : > { %8389 = vst [vmem:[#allocation66_spill] sm:$0xff] %v5958_v56  ;;  %v1176_v26 = vsel %vm8313_vm0, %v5791_v50, %v865_v40 }
 0x1bb   : > { %v1297_v54 = vcombine.high %v1240_v35, %v1256_v28  ;;  %v1312_v42 = vcombine.low %v1247_v13, %v1263_v44  ;;  %v1313_v29 = vcombine.high %v1247_v13, %v1263_v44  ;;  %v5977_v56 = vsub.s32 %v1300_v61, %v5642_v4 }
 0x1bc   : > { %v1296_v50 = vcombine.low %v1240_v35, %v1256_v28 }
 0x1bd   : > { %v5962_v10 = vpop.permute.xlu1 %879  ;;  %v876_v12 = vpop.permute.xlu0 %875  ;;  %8390 = vst [vmem:[#allocation67_spill] sm:$0xff] %v5977_v56  ;;  %v5989_v4 = vrot.slane %v1297_v54, %v5977_v56  ;;  %v6009_v54 = vrot.slane %v1313_v29, %v5977_v56 }
 0x1be   : > { %v1178_v44 = vsel %vm8313_vm0, %v5796_v53, %v876_v12 }
 0x1c1   : > { %v5964_v25 = vpop.permute.xlu1 %890  ;;  %v887_v20 = vpop.permute.xlu0 %886 }
 0x1c2   : > { %v1180_v30 = vsel %vm8313_vm0, %v5801_v58, %v887_v20 }
 0x1c3   : > { %v1265_v38 = vcombine.high %v1176_v26, %v1180_v30  ;;  %v1264_v13 = vcombine.low %v1176_v26, %v1180_v30  ;;  %v5986_v30 = vrot.slane %v1296_v50, %v5977_v56 }
 0x1c5   : > { %v5970_v34 = vpop.permute.xlu1 %901  ;;  %v898_v60 = vpop.permute.xlu0 %897  ;;  %v1272_v37 = vrot.slane %v1264_v13, %v5950_v24  ;;  %v1279_v53 = vrot.slane %v1265_v38, %v5950_v24  ;;  %8392 = vst [vmem:[#allocation69_spill] sm:$0xff] %v5986_v30 }
 0x1c6   : > { %v1182_v47 = vsel %vm8313_vm0, %v5806_v63, %v898_v60 }
 0x1c7   : > { %v1280_v8 = vcombine.low %v1178_v44, %v1182_v47  ;;  %v1281_v49 = vcombine.high %v1178_v44, %v1182_v47 }
 0x1c9   : > { %v1288_v58 = vrot.slane %v1280_v8, %v5950_v24  ;;  %v1295_v40 = vrot.slane %v1281_v49, %v5950_v24  ;;  %v5981_v22 = vpop.permute.xlu1 %912  ;;  %v909_v20 = vpop.permute.xlu0 %908  ;;  %v5992_v8 = vrot.slane %v1312_v42, %v5977_v56 }
 0x1ca   : > { %8391 = vst [vmem:[#allocation68_spill] sm:$0xff] %v5981_v22 }
 0x1cb   : > { %v1328_v12 = vcombine.low %v1272_v37, %v1288_v58  ;;  %v1329_v26 = vcombine.high %v1272_v37, %v1288_v58  ;;  %v1344_v60 = vcombine.low %v1279_v53, %v1295_v40  ;;  %v1345_v63 = vcombine.high %v1279_v53, %v1295_v40 }
 0x1cd   : > { %v920_v35 = vpop.permute.xlu0 %919  ;;  %v5995_v49 = vrot.slane %v1328_v12, %v5977_v56  ;;  %v5998_v28 = vrot.slane %v1329_v26, %v5977_v56  ;;  %v6001_v37 = vrot.slane %v1344_v60, %v5977_v56  ;;  %v6004_v38 = vrot.slane %v1345_v63, %v5977_v56  ;;  %v6006_v61 = vpop.permute.xlu1 %923 }
 0x1ce   : > { %8394 = vst [vmem:[#allocation71_spill] sm:$0xff] %v6006_v61  ;;  %v1184_v12 = vsel %vm8313_vm0, %v5811_v2, %v909_v20  ;;  %v1186_v29 = vsel %vm8313_vm0, %v5818_v21, %v920_v35 }
 0x1cf   : > { %8393 = vst [vmem:[#allocation70_spill] sm:$0xff] %v5995_v49  ;;  %v1361_v42 = vcombine.high %v5986_v30, %v5995_v49 }
 0x1d1   : > { %v931_v50 = vpop.permute.xlu0 %930  ;;  %2324 = vrot.lane.b32.xlu0 %v1361_v42, %s5327_s26  ;;  %v6032_v63 = vpop.permute.xlu1 %934 }
 0x1d2   : > { %v1188_v26 = vsel %vm8313_vm0, %v5823_v14, %v931_v50  ;;  %8395 = vst [vmem:[#allocation72_spill] sm:$0xff] %v6032_v63 }
 0x1d3   : > { %v1369_v60 = vcombine.high %v1184_v12, %v1188_v26  ;;  %v1368_v40 = vcombine.low %v1184_v12, %v1188_v26 }
 0x1d5   : > { %v942_v58 = vpop.permute.xlu0 %941  ;;  %v1376_v14 = vrot.slane %v1368_v40, %v5950_v24  ;;  %v1383_v50 = vrot.slane %v1369_v60, %v5950_v24  ;;  %v6042_v44 = vpop.permute.xlu1 %945 }
 0x1d6   : > { %v1190_v53 = vsel %vm8313_vm0, %v5828_v27, %v942_v58  ;;  %8396 = vst [vmem:[#allocation73_spill] sm:$0xff] %v6042_v44 }
 0x1d7   : > { %v1384_v47 = vcombine.low %v1186_v29, %v1190_v53  ;;  %v1385_v13 = vcombine.high %v1186_v29, %v1190_v53 }
 0x1d9   : > { %v1392_v2 = vrot.slane %v1384_v47, %v5950_v24  ;;  %v1399_v20 = vrot.slane %v1385_v13, %v5950_v24  ;;  %v953_v42 = vpop.permute.xlu0 %952  ;;  %v6044_v12 = vpop.permute.xlu1 %956 }
 0x1da   : > { %8397 = vst [vmem:[#allocation74_spill] sm:$0xff] %v6044_v12  ;;  %v1192_v58 = vsel %vm8313_vm0, %v5833_v39, %v953_v42 }
 0x1db   : > { %v1433_v49 = vcombine.high %v1376_v14, %v1392_v2  ;;  %v1448_v30 = vcombine.low %v1383_v50, %v1399_v20  ;;  %v1449_v21 = vcombine.high %v1383_v50, %v1399_v20  ;;  %v1432_v12 = vcombine.low %v1376_v14, %v1392_v2 }
 0x1dd   : > { %v964_v35 = vpop.permute.xlu0 %963  ;;  %v6050_v40 = vpop.permute.xlu1 %967  ;;  %v6066_v2 = vrot.slane %v1433_v49, %v5977_v56  ;;  %v6069_v14 = vrot.slane %v1448_v30, %v5977_v56 }
 0x1de   : > { %8398 = vst [vmem:[#allocation75_spill] sm:$0xff] %v6050_v40  ;;  %v1194_v53 = vsel %vm8313_vm0, %v5838_v48, %v964_v35 }
 0x1e1   : > { %v975_v27 = vpop.permute.xlu0 %974  ;;  %v6060_v40 = vpop.permute.xlu1 %978 }
 0x1e2   : > { %v1196_v13 = vsel %vm8313_vm0, %v5843_v59, %v975_v27  ;;  %8399 = vst [vmem:[#allocation76_spill] sm:$0xff] %v6060_v40 }
 0x1e3   : > { %v1401_v47 = vcombine.high %v1192_v58, %v1196_v13  ;;  %v1400_v26 = vcombine.low %v1192_v58, %v1196_v13 }
 0x1e5   : > { %v986_v29 = vpop.permute.xlu0 %985  ;;  %v1408_v59 = vrot.slane %v1400_v26, %v5950_v24  ;;  %v1415_v27 = vrot.slane %v1401_v47, %v5950_v24 }
 0x1e6   : > { %v1198_v60 = vsel %vm8313_vm0, %v5848_v18, %v986_v29  ;;  %v6063_v18 = vrot.slane %v1432_v12, %v5977_v56  ;;  %v6084_v12 = vrot.slane %v1449_v21, %v5977_v56 }
 0x1e7   : > { %v1416_v20 = vcombine.low %v1194_v53, %v1198_v60  ;;  %v1417_v50 = vcombine.high %v1194_v53, %v1198_v60 }
 0x1e8   : > { %8400 = vst [vmem:[#allocation77_spill] sm:$0xff] %v6063_v18  ;;  %8404 = vst [vmem:[#allocation81_spill] sm:$0xff] %v6084_v12 }
 0x1e9   : > { %v1424_v61 = vrot.slane %v1416_v20, %v5950_v24  ;;  %v1431_v39 = vrot.slane %v1417_v50, %v5950_v24  ;;  %v997_v42 = vpop.permute.xlu0 %996 }
 0x1eb   : > { %v1464_v22 = vcombine.low %v1408_v59, %v1424_v61  ;;  %v1465_v48 = vcombine.high %v1408_v59, %v1424_v61  ;;  %v1480_v35 = vcombine.low %v1415_v27, %v1431_v39  ;;  %v1481_v58 = vcombine.high %v1415_v27, %v1431_v39  ;;  %v6102_v59 = vpop.permute.xlu1 %989 }
 0x1ec   : > { %8405 = vst [vmem:[#allocation82_spill] sm:$0xff] %v6102_v59 }
 0x1ed   : > { %v1008_v13 = vpop.permute.xlu0 %1007  ;;  %v6072_v29 = vrot.slane %v1464_v22, %v5977_v56  ;;  %v6075_v47 = vrot.slane %v1465_v48, %v5977_v56  ;;  %v6078_v61 = vrot.slane %v1480_v35, %v5977_v56  ;;  %v6081_v53 = vrot.slane %v1481_v58, %v5977_v56 }
 0x1ee   : > { %v1202_v50 = vsel %vm8313_vm0, %v5860_v5, %v1008_v13 }
 0x1ef   : > { %8401 = vst [vmem:[#allocation78_spill] sm:$0xff] %v6072_v29  ;;  %8402 = vst [vmem:[#allocation79_spill] sm:$0xff] %v6078_v61  ;;  %v1497_v30 = vcombine.high %v6063_v18, %v6072_v29  ;;  %v6105_v48 = vpop.permute.xlu1 %1000 }
 0x1f0   : > { %8403 = vst [vmem:[#allocation80_spill] sm:$0xff] %v6081_v53 }
 0x1f1   : > { %v1019_v60 = vpop.permute.xlu0 %1018  ;;  %2326 = vrot.lane.b32.xlu1 %v1497_v30, %s5327_s26  ;;  %v1200_v30 = vsel %vm8313_vm0, %v5853_v31, %v997_v42 }
 0x1f2   : > { %v1204_v39 = vsel %vm8313_vm0, %v5865_v36, %v1019_v60 }
 0x1f3   : > { %v6107_v26 = vpop.permute.xlu1 %1011  ;;  %v1776_v18 = vcombine.low %v1200_v30, %v1204_v39 }
 0x1f5   : > { %v1030_v27 = vpop.permute.xlu0 %1029  ;;  %v1784_v42 = vrot.slane %v1776_v18, %v5950_v24 }
 0x1f6   : > { %v1206_v21 = vsel %vm8313_vm0, %v5870_v6, %v1030_v27 }
 0x1f7   : > { %v1792_v22 = vcombine.low %v1202_v50, %v1206_v21  ;;  %v6119_v29 = vpop.permute.xlu1 %1022 }
 0x1f9   : > { %v1041_v35 = vpop.permute.xlu0 %1040  ;;  %v1800_v5 = vrot.slane %v1792_v22, %v5950_v24 }
 0x1fa   : > { %v1208_v6 = vsel %vm8313_vm0, %v5875_v15, %v1041_v35 }
 0x1fb   : > { %v6130_v53 = vpop.permute.xlu1 %1033  ;;  %v1840_v12 = vcombine.low %v1784_v42, %v1800_v5 }
 0x1fd   : > { %v1052_v58 = vpop.permute.xlu0 %1051  ;;  %v6134_v40 = vrot.slane %v1840_v12, %v5977_v56 }
 0x1fe   : > { %v1210_v36 = vsel %vm8313_vm0, %v5880_v0, %v1052_v58 }
 0x1ff   : > { %8406 = vst [vmem:[#allocation83_spill] sm:$0xff] %v6134_v40 }
 0x201   : > { %v1063_v20 = vpop.permute.xlu0 %1062 }
 0x202   : > { %v1212_v49 = vsel %vm8313_vm0, %v5885_v23, %v1063_v20 }
 0x203   : > { %v1808_v13 = vcombine.low %v1208_v6, %v1212_v49  ;;  %v1809_v63 = vcombine.high %v1208_v6, %v1212_v49 }
 0x205   : > { %v1074_v27 = vpop.permute.xlu0 %1073  ;;  %v1816_v15 = vrot.slane %v1808_v13, %v5950_v24  ;;  %v1823_v61 = vrot.slane %v1809_v63, %v5950_v24 }
 0x206   : > { %v1214_v60 = vsel %vm8313_vm0, %v5890_v7, %v1074_v27  ;;  %v6139_v7 = vpop.permute.xlu1 %1044 }
 0x207   : > { %v1824_v31 = vcombine.low %v1210_v36, %v1214_v60 }
 0x209   : > { %v1832_v23 = vrot.slane %v1824_v31, %v5950_v24  ;;  %v1085_v20 = vpop.permute.xlu0 %1084  ;;  %v1841_v31 = vcombine.high %v1784_v42, %v1800_v5 }
 0x20b   : > { %v1872_v35 = vcombine.low %v1816_v15, %v1832_v23  ;;  %v1873_v58 = vcombine.high %v1816_v15, %v1832_v23  ;;  %v1855_v44 = vrot.slane %v1841_v31, %v5977_v56  ;;  %v8408_v23 = vcombine.low %v5989_v4, %v5998_v28 }
 0x20c   : > { %v1825_v15 = vcombine.high %v1210_v36, %v1214_v60 }
 0x20d   : > { %v1096_v22 = vpop.permute.xlu0 %1095  ;;  %v6137_v0 = vrot.slane %v1872_v35, %v5977_v56  ;;  %v1887_v13 = vrot.slane %v1873_v58, %v5977_v56  ;;  %v6148_v35 = vpop.permute.xlu1 %1055  ;;  %v1777_v58 = vcombine.high %v1200_v30, %v1204_v39 }
 0x20e   : > { %v6158_v31 = vrot.slane %v1825_v15, %v5950_v24  ;;  %v6178_v6 = vsel %vm8313_vm0, %v5902_v3, %v1096_v22 }
 0x20f   : > { %8407 = vst [vmem:[#allocation84_spill] sm:$0xff] %v6137_v0  ;;  %v1905_v18 = vcombine.high %v6134_v40, %v6137_v0  ;;  %v1906_v5 = vcombine.low %v1855_v44, %v1887_v13  ;;  %v1907_v30 = vcombine.high %v1855_v44, %v1887_v13  ;;  %v6191_v44 = vsel %vm8313_vm0, %v5895_v51, %v1085_v20 }
 0x210   : > { %v1888_v39 = vcombine.low %v1823_v61, %v6158_v31 }
 0x211   : > { %v1107_v27 = vpop.permute.xlu0 %1106  ;;  %2328 = vrot.lane.b32.xlu0 %v1905_v18, %s5327_s26  ;;  %v1793_v18 = vcombine.high %v1202_v50, %v1206_v21  ;;  %v6155_v59 = vpop.permute.xlu1 %1066  ;;  %v8409_v21 = vcombine.high %v5989_v4, %v5998_v28  ;;  %v6173_v50 = vrot.slane %v1777_v58, %v5950_v24 }
 0x212   : > { %v6182_v63 = vsel %vm8313_vm0, %v5907_v32, %v1107_v27  ;;  %v1896_v32 = vrot.slane %v1888_v39, %v5977_v56 }
 0x213   : > { %v6161_v40 = vrot.slane %v1793_v18, %v5950_v24  ;;  %v1912_v60 = vcombine.low %v6191_v44, %v6182_v63 }
 0x215   : > { %v1118_v12 = vpop.permute.xlu0 %1117  ;;  %2340 = vrot.lane.b32.xlu0 %v8408_v23, %s5328_s5  ;;  %v1856_v28 = vcombine.low %v6173_v50, %v6161_v40  ;;  %v1920_v15 = vrot.slane %v1912_v60, %v5950_v24 }
 0x216   : > { %v6170_v49 = vsel %vm8313_vm0, %v5912_v19, %v1118_v12  ;;  %v1078_v19 = vpop.permute.xlu1 %1077 }
 0x217   : > { %v1928_v36 = vcombine.low %v6178_v6, %v6170_v49  ;;  %v1864_v27 = vrot.slane %v1856_v28, %v5977_v56  ;;  %v6248_v28 = vsel %vm8313_vm0, %v5774_v33, %v5938_v45  ;;  %v1857_v45 = vcombine.high %v6173_v50, %v6161_v40 }
 0x219   : > { %v1129_v42 = vpop.permute.xlu0 %1128  ;;  %2344 = vrot.lane.b32.xlu0 %v1906_v5, %s5328_s5  ;;  %v1936_v13 = vrot.slane %v1928_v36, %v5950_v24  ;;  %v1909_v60 = vcombine.high %v1864_v27, %v1896_v32 }
 0x21a   : > { %v6202_v22 = vsel %vm8313_vm0, %v5917_v55, %v1129_v42  ;;  %v6220_v23 = vpop.permute.xlu1 %1088  ;;  %v1908_v42 = vcombine.low %v1864_v27, %v1896_v32 }
 0x21b   : > { %v1976_v18 = vcombine.low %v1920_v15, %v1936_v13 }
 0x21d   : > { %v1140_v0 = vpop.permute.xlu0 %1139  ;;  %2356 = vrot.lane.b32.xlu0 %v8409_v21, %s5329_s7  ;;  %v6236_v39 = vrot.slane %v1976_v18, %v5977_v56 }
 0x21e   : > { %v6214_v12 = vsel %vm8313_vm0, %v5922_v43, %v1140_v0  ;;  %v6233_v0 = vpop.permute.xlu1 %1099 }
 0x221   : > { %v1151_v4 = vpop.permute.xlu0 %1150  ;;  %2360 = vrot.lane.b32.xlu0 %v1907_v30, %s5329_s7 }
 0x222   : > { %v6195_v3 = vsel %vm8313_vm0, %v5927_v9, %v1151_v4  ;;  %v8410_v9 = vcombine.low %v5992_v8, %v6001_v37  ;;  %v8411_v4 = vcombine.high %v5992_v8, %v6001_v37  ;;  %v6261_v8 = vsel %vm8313_vm0, %v5779_v41, %v5941_v11  ;;  %v8412_v41 = vld [vmem:[#allocation39_spill] sm:$0xff]  ;;  %v6298_v32 = vpop.permute.xlu1 %1110 }
 0x223   : > { %v1944_v51 = vcombine.low %v6202_v22, %v6195_v3  ;;  %v1977_v37 = vcombine.high %v1920_v15, %v1936_v13  ;;  %v6282_v11 = vsel %vm8313_vm0, %v8412_v41, %v5935_v1  ;;  %v8423_v41 = vld [vmem:[#allocation49_spill] sm:$0xff] }
 0x224   : > { %v1504_v27 = vcombine.low %v6282_v11, %v6261_v8 }
 0x225   : > { %2372 = vrot.lane.b32.xlu0 %v8410_v9, %s5330_s10  ;;  %v1162_v20 = vpop.permute.xlu0 %1161  ;;  %v1952_v58 = vrot.slane %v1944_v51, %v5950_v24  ;;  %v1991_v18 = vrot.slane %v1977_v37, %v5977_v56 }
 0x226   : > { %v6218_v55 = vsel %vm8313_vm0, %v5932_v17, %v1162_v20  ;;  %v6231_v17 = vsel %vm8313_vm0, %v5784_v46, %v5947_v16  ;;  %v6253_v46 = vsel %vm8313_vm0, %v5804_v62, %v5970_v34  ;;  %v1889_v16 = vcombine.high %v1823_v61, %v6158_v31  ;;  %v8414_v61 = vld [vmem:[#allocation40_spill] sm:$0xff] }
 0x227   : > { %v1960_v5 = vcombine.low %v6214_v12, %v6218_v55  ;;  %v1520_v33 = vcombine.low %v6248_v28, %v6231_v17  ;;  %v6270_v62 = vsel %vm8313_vm0, %v5794_v52, %v5962_v10  ;;  %v6275_v34 = vsel %vm8313_vm0, %v5799_v57, %v5964_v25  ;;  %v8413_v10 = vld [vmem:[#allocation66_spill] sm:$0xff]  ;;  %v8415_v25 = vld [vmem:[#allocation56_spill] sm:$0xff] }
 0x228   : > { %v1552_v40 = vcombine.low %v6270_v62, %v6253_v46  ;;  %v6291_v57 = vsel %vm8313_vm0, %v8414_v61, %v8413_v10  ;;  %v6295_v31 = vsel %vm8313_vm0, %v8415_v25, %v1078_v19  ;;  %v1903_v50 = vrot.slane %v1889_v16, %v5977_v56  ;;  %v8416_v19 = vld [vmem:[#allocation54_spill] sm:$0xff] }
 0x229   : > { %v1968_v21 = vrot.slane %v1960_v5, %v5950_v24  ;;  %2376 = vrot.lane.b32.xlu0 %v1908_v42, %s5330_s10  ;;  %v6304_v13 = vrot.slane %v1520_v33, %v5950_v24  ;;  %v1536_v9 = vcombine.low %v6291_v57, %v6275_v34  ;;  %v1871_v20 = vrot.slane %v1857_v45, %v5977_v56  ;;  %v8417_v5 = vld [vmem:[#allocation55_spill] sm:$0xff]  ;;  %v8478_v52 = vld [vmem:[#allocation22_spill] sm:$0xff] }
 0x22a   : > { %v6312_v15 = vsel %vm8313_vm0, %v8416_v19, %v6148_v35  ;;  %v6317_v42 = vsel %vm8313_vm0, %v8417_v5, %v6155_v59  ;;  %v6329_v35 = vrot.slane %v1552_v40, %v5950_v24  ;;  %v1961_v33 = vcombine.high %v6214_v12, %v6218_v55  ;;  %v8424_v40 = vld [vmem:[#allocation50_spill] sm:$0xff]  ;;  %v6367_v55 = vpop.permute.xlu1 %1121 }
 0x22b   : > { %v2008_v43 = vcombine.low %v1952_v58, %v1968_v21  ;;  %v2009_v36 = vcombine.high %v1952_v58, %v1968_v21  ;;  %v8418_v58 = vcombine.low %v6009_v54, %v6004_v38  ;;  %v8419_v21 = vcombine.low %v6066_v2, %v6075_v47 }
 0x22c   : > { %v1910_v45 = vcombine.low %v1871_v20, %v1903_v50  ;;  %v6361_v10 = vsel %vm8313_vm0, %v8424_v40, %v6107_v26  ;;  %v1929_v61 = vcombine.high %v6178_v6, %v6170_v49  ;;  %v1512_v26 = vrot.slane %v1504_v27, %v5950_v24 }
 0x22d   : > { %v6239_v30 = vrot.slane %v2008_v43, %v5977_v56  ;;  %2388 = vrot.lane.b32.xlu0 %v8411_v4, %s5331_s25  ;;  %v2023_v1 = vrot.slane %v2009_v36, %v5977_v56  ;;  %v8420_v43 = vld [vmem:[#allocation51_spill] sm:$0xff]  ;;  %v8421_v4 = vld [vmem:[#allocation52_spill] sm:$0xff]  ;;  %v2096_v36 = vcombine.low %v6312_v15, %v6295_v31  ;;  %v1913_v49 = vcombine.high %v6191_v44, %v6182_v63 }
 0x22e   : > { %v6334_v59 = vsel %vm8313_vm0, %v8420_v43, %v6119_v29  ;;  %v6339_v16 = vsel %vm8313_vm0, %v8421_v4, %v6130_v53  ;;  %v6351_v29 = vrot.slane %v1536_v9, %v5950_v24  ;;  %v6356_v53 = vsel %vm8313_vm0, %v8423_v41, %v6105_v48 }
 0x22f   : > { %v2041_v51 = vcombine.high %v6236_v39, %v6239_v30  ;;  %v2042_v37 = vcombine.low %v1991_v18, %v2023_v1  ;;  %v2064_v12 = vcombine.low %v6361_v10, %v6339_v16  ;;  %v1945_v48 = vcombine.high %v6202_v22, %v6195_v3 }
 0x230   : > { %v1600_v25 = vcombine.low %v6351_v29, %v6329_v35  ;;  %v2048_v9 = vcombine.low %v6356_v53, %v6334_v59  ;;  %v6381_v19 = vrot.slane %v2096_v36, %v5950_v24  ;;  %v6386_v6 = vrot.slane %v1961_v33, %v5950_v24 }
 0x231   : > { %2392 = vrot.lane.b32.xlu0 %v1909_v60, %s5331_s25  ;;  %2330 = vrot.lane.b32.xlu1 %v2041_v51, %s5327_s26  ;;  %v8422_v60 = vld [vmem:[#allocation53_spill] sm:$0xff]  ;;  %v1568_v3 = vcombine.low %v1512_v26, %v6304_v13  ;;  %v6393_v27 = vrot.slane %v2064_v12, %v5950_v24  ;;  %v6396_v5 = vrot.slane %v1929_v61, %v5950_v24 }
 0x232   : > { %v6346_v51 = vsel %vm8313_vm0, %v8422_v60, %v6139_v7  ;;  %v8425_v63 = vcombine.high %v6009_v54, %v6004_v38  ;;  %v8426_v44 = vcombine.high %v6066_v2, %v6075_v47  ;;  %v6411_v43 = vrot.slane %v2048_v9, %v5950_v24  ;;  %v6418_v60 = vpop.permute.xlu1 %1132 }
 0x233   : > { %v2080_v7 = vcombine.low %v6346_v51, %v6317_v42  ;;  %v6416_v36 = vrot.slane %v1913_v49, %v5950_v24  ;;  %v1911_v54 = vcombine.high %v1871_v20, %v1903_v50  ;;  %v2043_v33 = vcombine.high %v1991_v18, %v2023_v1  ;;  %v8427_v18 = vld [vmem:[#allocation79_spill] sm:$0xff] }
 0x234   : > { %v1576_v2 = vrot.slane %v1568_v3, %v5977_v56  ;;  %v2112_v47 = vcombine.low %v6411_v43, %v6393_v27  ;;  %v1601_v9 = vcombine.high %v6351_v29, %v6329_v35  ;;  %v8431_v29 = vld [vmem:[#allocation73_spill] sm:$0xff] }
 0x235   : > { %2404 = vrot.lane.b32.xlu0 %v8418_v58, %s5332_s9  ;;  %2342 = vrot.lane.b32.xlu1 %v8419_v21, %s5328_s5  ;;  %v6390_v22 = vrot.slane %v2080_v7, %v5950_v24  ;;  %v6399_v58 = vrot.slane %v1945_v48, %v5950_v24  ;;  %v1608_v21 = vrot.slane %v1600_v25, %v5977_v56 }
 0x236   : > { %v2120_v50 = vrot.slane %v2112_v47, %v5977_v56  ;;  %v1144_v20 = vpop.permute.xlu1 %1143  ;;  %v8428_v7 = vcombine.low %v6069_v14, %v8427_v18  ;;  %v1569_v48 = vcombine.high %v1512_v26, %v6304_v13  ;;  %v1553_v25 = vcombine.high %v6270_v62, %v6253_v46  ;;  %v8429_v26 = vld [vmem:[#allocation72_spill] sm:$0xff] }
 0x237   : > { %v2144_v4 = vcombine.low %v6390_v22, %v6381_v19  ;;  %v2024_v38 = vcombine.low %v6399_v58, %v6386_v6  ;;  %v1632_v40 = vcombine.low %v1576_v2, %v1608_v21  ;;  %v1633_v3 = vcombine.high %v1576_v2, %v1608_v21  ;;  %v8432_v21 = vld [vmem:[#allocation44_spill] sm:$0xff]  ;;  %v8438_v2 = vld [vmem:[#allocation82_spill] sm:$0xff] }
 0x238   : > { %v6450_v13 = vrot.slane %v1569_v48, %v5977_v56  ;;  %v1537_v46 = vcombine.high %v6291_v57, %v6275_v34  ;;  %v6455_v62 = vrot.slane %v1553_v25, %v5950_v24  ;;  %v8434_v34 = vld [vmem:[#allocation68_spill] sm:$0xff]  ;;  %v8440_v48 = vld [vmem:[#allocation75_spill] sm:$0xff]  ;;  %v8441_v25 = vld [vmem:[#allocation46_spill] sm:$0xff] }
 0x239   : > { %2408 = vrot.lane.b32.xlu0 %v1910_v45, %s5332_s9  ;;  %2346 = vrot.lane.b32.xlu1 %v2042_v37, %s5328_s5  ;;  %v1992_v45 = vcombine.low %v6416_v36, %v6396_v5  ;;  %v2152_v37 = vrot.slane %v2144_v4, %v5977_v56  ;;  %v2032_v41 = vrot.slane %v2024_v38, %v5977_v56  ;;  %v8430_v4 = vld [vmem:[#allocation43_spill] sm:$0xff]  ;;  %v8439_v47 = vld [vmem:[#allocation48_spill] sm:$0xff] }
 0x23a   : > { %v1155_v49 = vpop.permute.xlu1 %1154  ;;  %v6460_v35 = vsel %vm8313_vm0, %v8430_v4, %v8429_v26  ;;  %v8436_v38 = vld [vmem:[#allocation71_spill] sm:$0xff]  ;;  %v8444_v4 = vld [vmem:[#allocation74_spill] sm:$0xff] }
 0x23b   : > { %v2000_v1 = vrot.slane %v1992_v45, %v5977_v56  ;;  %v2176_v12 = vcombine.low %v2120_v50, %v2152_v37  ;;  %v6488_v45 = vsel %vm8313_vm0, %v8439_v47, %v8438_v2  ;;  %v8443_v26 = vld [vmem:[#allocation47_spill] sm:$0xff]  ;;  %v8447_v2 = vld [vmem:[#allocation81_spill] sm:$0xff]  ;;  %v8448_v47 = vld [vmem:[#allocation80_spill] sm:$0xff] }
 0x23d   : > { %2420 = vrot.lane.b32.xlu0 %v8425_v63, %s5333_s14  ;;  %2358 = vrot.lane.b32.xlu1 %v8426_v44, %s5329_s7  ;;  %v2044_v61 = vcombine.low %v2000_v1, %v2032_v41  ;;  %v1505_v63 = vcombine.high %v6282_v11, %v6261_v8  ;;  %v1521_v44 = vcombine.high %v6248_v28, %v6231_v17  ;;  %v8435_v11 = vld [vmem:[#allocation41_spill] sm:$0xff] }
 0x23e   : > { %v6465_v8 = vsel %vm8313_vm0, %v8432_v21, %v8431_v29  ;;  %v8433_v17 = vcombine.high %v6069_v14, %v8427_v18  ;;  %v6473_v28 = vrot.slane %v1601_v9, %v5977_v56  ;;  %v6478_v57 = vsel %vm8313_vm0, %v8435_v11, %v8434_v34  ;;  %v8445_v29 = vld [vmem:[#allocation45_spill] sm:$0xff] }
 0x23f   : > { %v2145_v14 = vcombine.high %v6390_v22, %v6381_v19  ;;  %v2177_v18 = vcombine.high %v2120_v50, %v2152_v37  ;;  %v6501_v9 = vsel %vm8313_vm0, %v8441_v25, %v8440_v48  ;;  %v2113_v22 = vcombine.high %v6411_v43, %v6393_v27  ;;  %v1166_v37 = vpop.permute.xlu1 %1165  ;;  %v8452_v48 = vld [vmem:[#allocation63_spill] sm:$0xff] }
 0x240   : > { %v6520_v50 = vrot.slane %v1521_v44, %v5950_v24  ;;  %v6528_v27 = vsel %vm8313_vm0, %v8445_v29, %v8444_v4  ;;  %v6571_v25 = vsel %vm8313_vm0, %v8452_v48, %v1155_v49  ;;  %v2065_v4 = vcombine.high %v6361_v10, %v6339_v16  ;;  %v8456_v16 = vld [vmem:[#allocation57_spill] sm:$0xff] }
 0x241   : > { %2424 = vrot.lane.b32.xlu0 %v1911_v54, %s5333_s14  ;;  %2362 = vrot.lane.b32.xlu1 %v2043_v33, %s5329_s7  ;;  %v8437_v54 = vld [vmem:[#allocation42_spill] sm:$0xff]  ;;  %v2159_v43 = vrot.slane %v2145_v14, %v5977_v56  ;;  %v8449_v14 = vcombine.low %v8447_v2, %v8448_v47  ;;  %v6613_v10 = vsel %vm8313_vm0, %v8456_v16, %v6220_v23 }
 0x242   : > { %v6483_v33 = vsel %vm8313_vm0, %v8437_v54, %v8436_v38  ;;  %v2127_v38 = vrot.slane %v2113_v22, %v5977_v56  ;;  %v8454_v22 = vld [vmem:[#allocation59_spill] sm:$0xff] }
 0x243   : > { %v6588_v49 = vsel %vm8313_vm0, %v8454_v22, %v6298_v32 }
 0x244   : > { %v2184_v29 = vcombine.low %v6613_v10, %v6588_v49 }
 0x245   : > { %2436 = vrot.lane.b32.xlu0 %v1632_v40, %s5334_s22  ;;  %2374 = vrot.lane.b32.xlu1 %v8428_v7, %s5330_s10  ;;  %v2025_v40 = vcombine.high %v6399_v58, %v6386_v6  ;;  %v2045_v7 = vcombine.high %v2000_v1, %v2032_v41  ;;  %v1688_v6 = vcombine.low %v6501_v9, %v6488_v45 }
 0x246   : > { %v1993_v58 = vcombine.high %v6416_v36, %v6396_v5  ;;  %v6517_v41 = vrot.slane %v1505_v63, %v5950_v24  ;;  %v6523_v1 = vrot.slane %v1537_v46, %v5950_v24  ;;  %v1634_v63 = vcombine.low %v6450_v13, %v6473_v28 }
 0x247   : > { %v2039_v36 = vrot.slane %v2025_v40, %v5977_v56  ;;  %v6549_v11 = vrot.slane %v1688_v6, %v5950_v24  ;;  %v2097_v40 = vcombine.high %v6312_v15, %v6295_v31  ;;  %v2178_v31 = vcombine.low %v2127_v38, %v2159_v43  ;;  %v8453_v6 = vld [vmem:[#allocation58_spill] sm:$0xff] }
 0x248   : > { %v1616_v44 = vcombine.low %v6523_v1, %v6455_v62  ;;  %v2007_v54 = vrot.slane %v1993_v58, %v5977_v56  ;;  %v8455_v58 = vld [vmem:[#allocation61_spill] sm:$0xff] }
 0x249   : > { %2440 = vrot.lane.b32.xlu0 %v2176_v12, %s5334_s22  ;;  %2378 = vrot.lane.b32.xlu1 %v2044_v61, %s5330_s10  ;;  %v1640_v12 = vcombine.low %v6478_v57, %v6460_v35  ;;  %v1656_v61 = vcombine.low %v6483_v33, %v6465_v8 }
 0x24a   : > { %v2046_v15 = vcombine.low %v2007_v54, %v2039_v36 }
 0x24b   : > { %v6539_v46 = vrot.slane %v1640_v12, %v5950_v24  ;;  %v6542_v21 = vrot.slane %v1656_v61, %v5950_v24  ;;  %v8451_v12 = vld [vmem:[#allocation62_spill] sm:$0xff] }
 0x24c   : > { %v6567_v61 = vsel %vm8313_vm0, %v8451_v12, %v1144_v20  ;;  %v6583_v20 = vsel %vm8313_vm0, %v8453_v6, %v6233_v0 }
 0x24d   : > { %2452 = vrot.lane.b32.xlu0 %v1633_v3, %s5335_s23  ;;  %2390 = vrot.lane.b32.xlu1 %v8433_v17, %s5331_s25  ;;  %v8442_v3 = vld [vmem:[#allocation76_spill] sm:$0xff] }
 0x24e   : > { %v6506_v19 = vsel %vm8313_vm0, %v8443_v26, %v8442_v3  ;;  %v8446_v17 = vld [vmem:[#allocation64_spill] sm:$0xff] }
 0x24f   : > { %v1672_v5 = vcombine.low %v6528_v27, %v6506_v19  ;;  %v6546_v34 = vsel %vm8313_vm0, %v8446_v17, %v1166_v37  ;;  %v6593_v37 = vsel %vm8313_vm0, %v8455_v58, %v6418_v60  ;;  %v6608_v60 = vrot.slane %v2097_v40, %v5950_v24 }
 0x250   : > { %v2232_v26 = vcombine.low %v6567_v61, %v6546_v34  ;;  %v2216_v0 = vcombine.low %v6593_v37, %v6571_v25  ;;  %v1584_v17 = vcombine.low %v6517_v41, %v6520_v50 }
 0x251   : > { %2456 = vrot.lane.b32.xlu0 %v2177_v18, %s5335_s23  ;;  %2394 = vrot.lane.b32.xlu1 %v2045_v7, %s5331_s25  ;;  %v8450_v18 = vld [vmem:[#allocation60_spill] sm:$0xff]  ;;  %v6574_v3 = vrot.slane %v1672_v5, %v5950_v24 }
 0x252   : > { %v6563_v7 = vsel %vm8313_vm0, %v8450_v18, %v6367_v55  ;;  %v2081_v55 = vcombine.high %v6346_v51, %v6317_v42  ;;  %v2049_v51 = vcombine.high %v6356_v53, %v6334_v59  ;;  %v2240_v5 = vrot.slane %v2232_v26, %v5950_v24 }
 0x253   : > { %v2200_v42 = vcombine.low %v6583_v20, %v6563_v7  ;;  %v1736_v32 = vcombine.low %v6574_v3, %v6549_v11  ;;  %v1704_v59 = vcombine.low %v6539_v46, %v6542_v21  ;;  %v2224_v40 = vrot.slane %v2216_v0, %v5950_v24 }
 0x254   : > { %v2095_v53 = vrot.slane %v2081_v55, %v5950_v24  ;;  %v2063_v12 = vrot.slane %v2049_v51, %v5950_v24  ;;  %v2192_v26 = vrot.slane %v2184_v29, %v5950_v24  ;;  %v2047_v55 = vcombine.high %v2007_v54, %v2039_v36 }
 0x255   : > { %2468 = vrot.lane.b32.xlu0 %v1634_v63, %s5336_s6  ;;  %2406 = vrot.lane.b32.xlu1 %v8449_v14, %s5332_s9  ;;  %v1635_v63 = vcombine.high %v6450_v13, %v6473_v28  ;;  %v2079_v14 = vrot.slane %v2065_v4, %v5950_v24  ;;  %v2208_v23 = vrot.slane %v2200_v42, %v5950_v24  ;;  %vm4791_vm0 = vcmask 261120  }
 0x256   : > { %v8457_v13 = vcombine.high %v8447_v2, %v8448_v47  ;;  %v1624_v28 = vrot.slane %v1616_v44, %v5977_v56  ;;  %v1744_v18 = vrot.slane %v1736_v32, %v5977_v56  ;;  %v2160_v48 = vcombine.low %v2095_v53, %v6608_v60 }
 0x257   : > { %v1592_v6 = vrot.slane %v1584_v17, %v5977_v56  ;;  %v1712_v22 = vrot.slane %v1704_v59, %v5977_v56  ;;  %v2128_v58 = vcombine.low %v2063_v12, %v2079_v14  ;;  %v2248_v2 = vcombine.low %v2192_v26, %v2208_v23 }
 0x258   : > { %v2168_v44 = vrot.slane %v2160_v48, %v5977_v56  ;;  %v1617_v54 = vcombine.high %v6523_v1, %v6455_v62  ;;  %v1737_v32 = vcombine.high %v6574_v3, %v6549_v11  ;;  %v1585_v29 = vcombine.high %v6517_v41, %v6520_v50 }
 0x259   : > { %2472 = vrot.lane.b32.xlu0 %v2178_v31, %s5336_s6  ;;  %2410 = vrot.lane.b32.xlu1 %v2046_v15, %s5332_s9  ;;  %v2280_v31 = vcombine.low %v2224_v40, %v2240_v5  ;;  %v2179_v15 = vcombine.high %v2127_v38, %v2159_v43  ;;  %v1636_v4 = vcombine.low %v1592_v6, %v1624_v28 }
 0x25a   : > { %v1768_v42 = vcombine.low %v1712_v22, %v1744_v18  ;;  %v2136_v0 = vrot.slane %v2128_v58, %v5977_v56  ;;  %v2256_v43 = vrot.slane %v2248_v2, %v5977_v56  ;;  %v1637_v51 = vcombine.high %v1592_v6, %v1624_v28 }
 0x25b   : > { %v2288_v47 = vrot.slane %v2280_v31, %v5977_v56  ;;  %v1769_v16 = vcombine.high %v1712_v22, %v1744_v18  ;;  %v1631_v17 = vrot.slane %v1617_v54, %v5977_v56  ;;  %v1751_v62 = vrot.slane %v1737_v32, %v5977_v56 }
 0x25c   : > { %v2180_v36 = vcombine.low %v2136_v0, %v2168_v44  ;;  %v2161_v1 = vcombine.high %v2095_v53, %v6608_v60  ;;  %v2281_v11 = vcombine.high %v2224_v40, %v2240_v5  ;;  %v2181_v3 = vcombine.high %v2136_v0, %v2168_v44  ;;  %v8460_v0 = vld [vmem:[#allocation20_spill] sm:$0xff] }
 0x25d   : > { %2484 = vrot.lane.b32.xlu0 %v1635_v63, %s5337_s8  ;;  %2422 = vrot.lane.b32.xlu1 %v8457_v13, %s5333_s14  ;;  %v2312_v38 = vcombine.low %v2256_v43, %v2288_v47  ;;  %v1705_v63 = vcombine.high %v6539_v46, %v6542_v21  ;;  %v2313_v59 = vcombine.high %v2256_v43, %v2288_v47 }
 0x25e   : > { %v1599_v13 = vrot.slane %v1585_v29, %v5977_v56  ;;  %v2129_v50 = vcombine.high %v2063_v12, %v2079_v14  ;;  %v2249_v46 = vcombine.high %v2192_v26, %v2208_v23  ;;  %v1689_v21 = vcombine.high %v6501_v9, %v6488_v45 }
 0x25f   : > { %v1719_v41 = vrot.slane %v1705_v63, %v5977_v56  ;;  %v2175_v28 = vrot.slane %v2161_v1, %v5977_v56  ;;  %v2295_v60 = vrot.slane %v2281_v11, %v5977_v56  ;;  %v1657_v40 = vcombine.high %v6483_v33, %v6465_v8 }
 0x260   : > { %v1638_v5 = vcombine.low %v1599_v13, %v1631_v17  ;;  %v1673_v14 = vcombine.high %v6528_v27, %v6506_v19  ;;  %v2143_v23 = vrot.slane %v2129_v50, %v5977_v56  ;;  %v2263_v18 = vrot.slane %v2249_v46, %v5977_v56 }
 0x261   : > { %2488 = vrot.lane.b32.xlu0 %v2179_v15, %s5337_s8  ;;  %2426 = vrot.lane.b32.xlu1 %v2047_v55, %s5333_s14  ;;  %v1770_v53 = vcombine.low %v1719_v41, %v1751_v62  ;;  %v1703_v45 = vrot.slane %v1689_v21, %v5950_v24  ;;  %v1641_v9 = vcombine.high %v6478_v57, %v6460_v35  ;;  %v8458_v35 = vld [vmem:[#allocation18_spill] sm:$0xff]  ;;  %v8459_v57 = vld [vmem:[#allocation17_spill] sm:$0xff] }
 0x262   : > { %v2233_v8 = vcombine.high %v6567_v61, %v6546_v34  ;;  %v2182_v33 = vcombine.low %v2143_v23, %v2175_v28  ;;  %v2314_v12 = vcombine.low %v2263_v18, %v2295_v60  ;;  %v1671_v19 = vrot.slane %v1657_v40, %v5950_v24 }
 0x263   : > { %v1687_v27 = vrot.slane %v1673_v14, %v5950_v24  ;;  %v2201_v48 = vcombine.high %v6583_v20, %v6563_v7  ;;  %v2217_v26 = vcombine.high %v6593_v37, %v6571_v25  ;;  %v447_v31 = vsub.f32 %v8459_v57, %v8458_v35 }
 0x264   : > { %v1639_v61 = vcombine.high %v1599_v13, %v1631_v17  ;;  %v1655_v15 = vrot.slane %v1641_v9, %v5950_v24  ;;  %v2185_v55 = vcombine.high %v6613_v10, %v6588_v49  ;;  %v2247_v6 = vrot.slane %v2233_v8, %v5950_v24  ;;  %v6704_v49 = vpop.permute.xlu0 %2324  ;;  %v8462_v17 = vld [vmem:[#allocation23_spill] sm:$0xff]  ;;  %v8463_v13 = vld [vmem:[#allocation24_spill] sm:$0xff]  ;;  %v8465_v9 = vld [vmem:[#allocation26_spill] sm:$0xff] }
 0x265   : > { %2500 = vrot.lane.b32.xlu0 %v1636_v4, %s5338_s20  ;;  %2438 = vrot.lane.b32.xlu1 %v1768_v42, %s5334_s22  ;;  %v1752_v34 = vcombine.low %v1687_v27, %v1703_v45  ;;  %v1771_v7 = vcombine.high %v1719_v41, %v1751_v62  ;;  %v2215_v25 = vrot.slane %v2201_v48, %v5950_v24  ;;  %v451_v22 = vmul.f32 0.5, %v447_v31  ;;  %v8467_v48 = vld [vmem:[#allocation32_spill] sm:$0xff] }
 0x266   : > { %v1720_v20 = vcombine.low %v1655_v15, %v1671_v19  ;;  %v2231_v37 = vrot.slane %v2217_v26, %v5950_v24  ;;  %v2199_v2 = vrot.slane %v2185_v55, %v5950_v24  ;;  %v2183_v10 = vcombine.high %v2143_v23, %v2175_v28  ;;  %v8468_v26 = vld [vmem:[#allocation31_spill] sm:$0xff]  ;;  %v6746_v55 = vpop.permute.xlu1 %2326 }
 0x267   : > { %v1760_v58 = vrot.slane %v1752_v34, %v5977_v56  ;;  %v2315_v47 = vcombine.high %v2263_v18, %v2295_v60  ;;  %v2638_v43 = vrot.slane %v451_v22, %v8460_v0  ;;  %v2660_v62 = vrot.slane %v451_v22, %v8462_v17  ;;  %v8469_v34 = vld [vmem:[#allocation30_spill] sm:$0xff] }
 0x268   : > { %v2296_v44 = vcombine.low %v2231_v37, %v2247_v6  ;;  %v1728_v4 = vrot.slane %v1720_v20, %v5977_v56  ;;  %v2264_v42 = vcombine.low %v2199_v2, %v2215_v25  ;;  %v1753_v1 = vcombine.high %v1687_v27, %v1703_v45 }
 0x269   : > { %2504 = vrot.lane.b32.xlu0 %v2180_v36, %s5338_s20  ;;  %2442 = vrot.lane.b32.xlu1 %v2312_v38, %s5334_s22  ;;  %v2671_v41 = vrot.slane %v451_v22, %v8463_v13  ;;  %v2297_v46 = vcombine.high %v2231_v37, %v2247_v6  ;;  %v2693_v8 = vrot.slane %v451_v22, %v8465_v9 }
 0x26a   : > { %v2304_v36 = vrot.slane %v2296_v44, %v5977_v56  ;;  %v1772_v54 = vcombine.low %v1728_v4, %v1760_v58  ;;  %v2272_v32 = vrot.slane %v2264_v42, %v5977_v56  ;;  %v1767_v50 = vrot.slane %v1753_v1, %v5977_v56 }
 0x26b   : > { %v2311_v14 = vrot.slane %v2297_v46, %v5977_v56  ;;  %v448_v35 = vsub.f32 %v8468_v26, %v8467_v48 }
 0x26c   : > { %v2316_v63 = vcombine.low %v2272_v32, %v2304_v36  ;;  %v2317_v28 = vcombine.high %v2272_v32, %v2304_v36 }
 0x26d   : > { %2516 = vrot.lane.b32.xlu0 %v1637_v51, %s5339_s11  ;;  %2454 = vrot.lane.b32.xlu1 %v1769_v16, %s5335_s23  ;;  %v8461_v51 = vld [vmem:[#allocation19_spill] sm:$0xff] }
 0x26e   : > { %v2649_v16 = vrot.slane %v451_v22, %v8461_v51 }
 0x271   : > { %2520 = vrot.lane.b32.xlu0 %v2181_v3, %s5339_s11  ;;  %2458 = vrot.lane.b32.xlu1 %v2313_v59, %s5335_s23  ;;  %v1773_v3 = vcombine.high %v1728_v4, %v1760_v58  ;;  %v1721_v59 = vcombine.high %v1655_v15, %v1671_v19  ;;  %v8466_v19 = vld [vmem:[#allocation27_spill] sm:$0xff]  ;;  %v452_v15 = vmul.f32 0.5, %v448_v35 }
 0x272   : > { %v2704_v27 = vrot.slane %v451_v22, %v8466_v19 }
 0x273   : > { %v1735_v60 = vrot.slane %v1721_v59, %v5977_v56  ;;  %v2726_v20 = vrot.slane %v452_v15, %v8460_v0  ;;  %v2737_v58 = vrot.slane %v452_v15, %v8461_v51  ;;  %v2748_v44 = vrot.slane %v452_v15, %v8462_v17  ;;  %v8471_v59 = vld [vmem:[#allocation35_spill] sm:$0xff] }
 0x274   : > { %v2759_v4 = vrot.slane %v452_v15, %v8463_v13  ;;  %v2792_v1 = vrot.slane %v452_v15, %v8466_v19 }
 0x275   : > { %2532 = vrot.lane.b32.xlu0 %v1638_v5, %s5340_s29  ;;  %2470 = vrot.lane.b32.xlu1 %v1770_v53, %s5336_s6  ;;  %v2265_v5 = vcombine.high %v2199_v2, %v2215_v25  ;;  %v8464_v53 = vld [vmem:[#allocation25_spill] sm:$0xff]  ;;  %v1774_v18 = vcombine.low %v1735_v60, %v1767_v50  ;;  %v1775_v31 = vcombine.high %v1735_v60, %v1767_v50 }
 0x276   : > { %v2682_v40 = vrot.slane %v451_v22, %v8464_v53  ;;  %v2770_v36 = vrot.slane %v452_v15, %v8464_v53 }
 0x277   : > { %v2279_v45 = vrot.slane %v2265_v5, %v5977_v56 }
 0x279   : > { %2536 = vrot.lane.b32.xlu0 %v2182_v33, %s5340_s29  ;;  %2474 = vrot.lane.b32.xlu1 %v2314_v12, %s5336_s6  ;;  %v2318_v12 = vcombine.low %v2279_v45, %v2311_v14 }
 0x27d   : > { %2548 = vrot.lane.b32.xlu0 %v1639_v61, %s8314_s30  ;;  %2486 = vrot.lane.b32.xlu1 %v1771_v7, %s5337_s8  ;;  %v2715_v61 = vrot.slane %v451_v22, %v8469_v34  ;;  %v2319_v7 = vcombine.high %v2279_v45, %v2311_v14 }
 0x281   : > { %2552 = vrot.lane.b32.xlu0 %v2183_v10, %s8314_s30  ;;  %2490 = vrot.lane.b32.xlu1 %v2315_v47, %s5337_s8 }
 0x283   : > { %v6711_v38 = vpop.permute.xlu0 %2328 }
 0x285   : > { %2640 = vbcast.lane.b32.xlu0 %v2638_v43, 256  ;;  %2502 = vrot.lane.b32.xlu1 %v1772_v54, %s5338_s20 }
 0x287   : > { %v6716_v29 = vpop.permute.xlu0 %2340 }
 0x289   : > { %2651 = vbcast.lane.b32.xlu0 %v2649_v16, 256  ;;  %2506 = vrot.lane.b32.xlu1 %v2316_v63, %s5338_s20 }
 0x28b   : > { %v6720_v11 = vpop.permute.xlu0 %2344 }
 0x28d   : > { %2662 = vbcast.lane.b32.xlu0 %v2660_v62, 256  ;;  %2518 = vrot.lane.b32.xlu1 %v1773_v3, %s5339_s11  ;;  %v8470_v3 = vld [vmem:[#allocation36_spill] sm:$0xff] }
 0x28f   : > { %v6725_v21 = vpop.permute.xlu0 %2356 }
 0x291   : > { %2673 = vbcast.lane.b32.xlu0 %v2671_v41, 256  ;;  %2522 = vrot.lane.b32.xlu1 %v2317_v28, %s5339_s11  ;;  %v2803_v28 = vrot.slane %v452_v15, %v8469_v34 }
 0x293   : > { %v6731_v23 = vpop.permute.xlu0 %2360 }
 0x295   : > { %2684 = vbcast.lane.b32.xlu0 %v2682_v40, 256  ;;  %2534 = vrot.lane.b32.xlu1 %v1774_v18, %s5340_s29 }
 0x297   : > { %v6736_v33 = vpop.permute.xlu0 %2372 }
 0x299   : > { %2695 = vbcast.lane.b32.xlu0 %v2693_v8, 256  ;;  %2538 = vrot.lane.b32.xlu1 %v2318_v12, %s5340_s29 }
 0x29b   : > { %v6742_v57 = vpop.permute.xlu0 %2376 }
 0x29d   : > { %2706 = vbcast.lane.b32.xlu0 %v2704_v27, 256  ;;  %2550 = vrot.lane.b32.xlu1 %v1775_v31, %s8314_s30 }
 0x29f   : > { %v6748_v6 = vpop.permute.xlu0 %2388 }
 0x2a1   : > { %2717 = vbcast.lane.b32.xlu0 %v2715_v61, 256  ;;  %2554 = vrot.lane.b32.xlu1 %v2319_v7, %s8314_s30  ;;  %s6940_s30 = scalar_lea.vmem [#allocation10], %s5610_s13  ;;  %s8657_s13 = smov 30  }
 0x2a3   : > { %v6752_v25 = vpop.permute.xlu1 %2330  ;;  %v6754_v37 = vpop.permute.xlu0 %2392 }
 0x2a5   : > { %2728 = vbcast.lane.b32.xlu0 %v2726_v20, 256  ;;  %2644 = vbcast.lane.b32.xlu1 %v2638_v43, 264 }
 0x2a7   : > { %v6757_v22 = vpop.permute.xlu1 %2342  ;;  %v6759_v2 = vpop.permute.xlu0 %2404 }
 0x2a9   : > { %2739 = vbcast.lane.b32.xlu0 %v2737_v58, 256  ;;  %2655 = vbcast.lane.b32.xlu1 %v2649_v16, 264  ;;  %v2781_v16 = vrot.slane %v452_v15, %v8465_v9 }
 0x2ab   : > { %v6762_v10 = vpop.permute.xlu1 %2346  ;;  %v6764_v47 = vpop.permute.xlu0 %2408 }
 0x2ad   : > { %2750 = vbcast.lane.b32.xlu0 %v2748_v44, 256  ;;  %2666 = vbcast.lane.b32.xlu1 %v2660_v62, 264 }
 0x2af   : > { %v6767_v42 = vpop.permute.xlu1 %2358  ;;  %v6769_v43 = vpop.permute.xlu0 %2420 }
 0x2b1   : > { %2761 = vbcast.lane.b32.xlu0 %v2759_v4, 256  ;;  %2677 = vbcast.lane.b32.xlu1 %v2671_v41, 264  ;;  %v449_v41 = vsub.f32 %v8471_v59, %v8470_v3 }
 0x2b3   : > { %v6772_v54 = vpop.permute.xlu1 %2362  ;;  %v6774_v32 = vpop.permute.xlu0 %2424  ;;  %v453_v60 = vmul.f32 0.5, %v449_v41  ;;  %v8477_v41 = vld [vmem:[#allocation21_spill] sm:$0xff] }
 0x2b4   : > { %v450_v56 = vsub.f32 %v8478_v52, %v8477_v41  ;;  %v8482_v41 = vld [vmem:[#allocation70_spill] sm:$0xff] }
 0x2b5   : > { %2772 = vbcast.lane.b32.xlu0 %v2770_v36, 256  ;;  %2688 = vbcast.lane.b32.xlu1 %v2682_v40, 264  ;;  %v2814_v14 = vrot.slane %v453_v60, %v8460_v0  ;;  %v6807_v48 = vrot.slane %v453_v60, %v8462_v17  ;;  %v6815_v31 = vrot.slane %v453_v60, %v8463_v13 }
 0x2b6   : > { %v6823_v7 = vrot.slane %v453_v60, %v8464_v53 }
 0x2b7   : > { %v6777_v63 = vpop.permute.xlu1 %2374  ;;  %v6779_v62 = vpop.permute.xlu0 %2436 }
 0x2b9   : > { %2783 = vbcast.lane.b32.xlu0 %v2781_v16, 256  ;;  %2699 = vbcast.lane.b32.xlu1 %v2693_v8, 264  ;;  %v6799_v8 = vrot.slane %v453_v60, %v8461_v51 }
 0x2bb   : > { %v6784_v50 = vpop.permute.xlu1 %2378  ;;  %v6786_v46 = vpop.permute.xlu0 %2440 }
 0x2bc   : > { %8472 = vst [vmem:[#allocation39_spill] sm:$0xff] %v6784_v50 }
 0x2bd   : > { %2794 = vbcast.lane.b32.xlu0 %v2792_v1, 256  ;;  %2710 = vbcast.lane.b32.xlu1 %v2704_v27, 264 }
 0x2bf   : > { %v6789_v5 = vpop.permute.xlu1 %2390  ;;  %v6791_v40 = vpop.permute.xlu0 %2452 }
 0x2c1   : > { %2805 = vbcast.lane.b32.xlu0 %v2803_v28, 256  ;;  %2721 = vbcast.lane.b32.xlu1 %v2715_v61, 264 }
 0x2c3   : > { %v6794_v18 = vpop.permute.xlu1 %2394  ;;  %v6796_v45 = vpop.permute.xlu0 %2456 }
 0x2c4   : > { %8473 = vst [vmem:[#allocation66_spill] sm:$0xff] %v6794_v18 }
 0x2c5   : > { %2816 = vbcast.lane.b32.xlu0 %v2814_v14, 256  ;;  %2732 = vbcast.lane.b32.xlu1 %v2726_v20, 264 }
 0x2c7   : > { %v6801_v12 = vpop.permute.xlu1 %2406  ;;  %v6803_v27 = vpop.permute.xlu0 %2468 }
 0x2c9   : > { %2827 = vbcast.lane.b32.xlu0 %v6799_v8, 256  ;;  %2743 = vbcast.lane.b32.xlu1 %v2737_v58, 264 }
 0x2cb   : > { %v6809_v26 = vpop.permute.xlu1 %2410  ;;  %v6811_v35 = vpop.permute.xlu0 %2472 }
 0x2cc   : > { %8474 = vst [vmem:[#allocation40_spill] sm:$0xff] %v6809_v26  ;;  %v6849_v26 = vmul.f32 0.5, %v450_v56 }
 0x2cd   : > { %2754 = vbcast.lane.b32.xlu1 %v2748_v44, 264  ;;  %2838 = vbcast.lane.b32.xlu0 %v6807_v48, 256  ;;  %v6831_v44 = vrot.slane %v453_v60, %v8465_v9 }
 0x2ce   : > { %v6856_v52 = vrot.slane %v6849_v26, %v8460_v0 }
 0x2cf   : > { %v6817_v61 = vpop.permute.xlu1 %2422  ;;  %v6819_v15 = vpop.permute.xlu0 %2484 }
 0x2d1   : > { %2765 = vbcast.lane.b32.xlu1 %v2759_v4, 264  ;;  %2849 = vbcast.lane.b32.xlu0 %v6815_v31, 256  ;;  %v6837_v4 = vrot.slane %v453_v60, %v8466_v19 }
 0x2d3   : > { %v6825_v20 = vpop.permute.xlu1 %2426  ;;  %v6827_v58 = vpop.permute.xlu0 %2488 }
 0x2d4   : > { %8475 = vst [vmem:[#allocation56_spill] sm:$0xff] %v6825_v20  ;;  %v6847_v20 = vrot.slane %v453_v60, %v8469_v34 }
 0x2d5   : > { %2776 = vbcast.lane.b32.xlu1 %v2770_v36, 264  ;;  %2860 = vbcast.lane.b32.xlu0 %v6823_v7, 256 }
 0x2d7   : > { %v6833_v3 = vpop.permute.xlu1 %2438  ;;  %v2501_v59 = vpop.permute.xlu0 %2500 }
 0x2d8   : > { %8476 = vst [vmem:[#allocation54_spill] sm:$0xff] %v6833_v3 }
 0x2d9   : > { %2787 = vbcast.lane.b32.xlu1 %v2781_v16, 264  ;;  %2871 = vbcast.lane.b32.xlu0 %v6831_v44, 256 }
 0x2db   : > { %v6841_v24 = vpop.permute.xlu1 %2442  ;;  %v6843_v36 = vpop.permute.xlu0 %2504 }
 0x2dc   : > { %8479 = vst [vmem:[#allocation55_spill] sm:$0xff] %v6841_v24 }
 0x2dd   : > { %2798 = vbcast.lane.b32.xlu1 %v2792_v1, 264  ;;  %2882 = vbcast.lane.b32.xlu0 %v6837_v4, 256  ;;  %v8481_v1 = vld [vmem:[#allocation69_spill] sm:$0xff] }
 0x2de   : > { %v8483_v60 = vcombine.low %v8481_v1, %v8482_v41  ;;  %v8485_v1 = vld [vmem:[#allocation84_spill] sm:$0xff] }
 0x2df   : > { %v6851_v16 = vpop.permute.xlu1 %2454  ;;  %v2517_v18 = vpop.permute.xlu0 %2516 }
 0x2e0   : > { %8480 = vst [vmem:[#allocation51_spill] sm:$0xff] %v6851_v16  ;;  %v2561_v56 = vsel %vm2560_vm1, %v8483_v60, %v6704_v49  ;;  %v6874_v49 = vrot.slane %v6849_v26, %v8461_v51 }
 0x2e1   : > { %2809 = vbcast.lane.b32.xlu1 %v2803_v28, 264  ;;  %2893 = vbcast.lane.b32.xlu0 %v6847_v20, 256  ;;  %v2566_v24 = vsel %vm2565_vm2, %v2561_v56, %v6716_v29  ;;  %v8484_v29 = vld [vmem:[#allocation83_spill] sm:$0xff] }
 0x2e2   : > { %v2571_v3 = vsel %vm2570_vm3, %v2566_v24, %v6725_v21  ;;  %v8486_v41 = vcombine.low %v8484_v29, %v8485_v1 }
 0x2e3   : > { %v6865_v16 = vpop.permute.xlu1 %2458  ;;  %v2521_v28 = vpop.permute.xlu0 %2520  ;;  %v2576_v50 = vsel %vm2575_vm4, %v2571_v3, %v6736_v33 }
 0x2e4   : > { %v2563_v60 = vsel %vm2560_vm1, %v8486_v41, %v6711_v38  ;;  %v2581_v24 = vsel %vm2580_vm5, %v2576_v50, %v6748_v6 }
 0x2e5   : > { %2820 = vbcast.lane.b32.xlu1 %v2814_v14, 264  ;;  %2904 = vbcast.lane.b32.xlu0 %v6856_v52, 256  ;;  %v2568_v21 = vsel %vm2565_vm2, %v2563_v60, %v6720_v11  ;;  %v2586_v33 = vsel %vm2585_vm6, %v2581_v24, %v6759_v2  ;;  %v6901_v2 = vrot.slane %v6849_v26, %v8462_v17 }
 0x2e6   : > { %v2573_v56 = vsel %vm2570_vm3, %v2568_v21, %v6731_v23  ;;  %v2591_v38 = vsel %vm2590_vm7, %v2586_v33, %v6769_v43 }
 0x2e7   : > { %v6887_v14 = vpop.permute.xlu1 %2470  ;;  %v2533_v3 = vpop.permute.xlu0 %2532  ;;  %v2578_v6 = vsel %vm2575_vm4, %v2573_v56, %v6742_v57  ;;  %v2596_v11 = vsel %vm2595_vm8, %v2591_v38, %v6779_v62  ;;  %v8487_v56 = vld [vmem:[#allocation16_spill] sm:$0xff]  ;;  %v8488_v38 = vld [vmem:[#allocation15_spill] sm:$0xff] }
 0x2e8   : > { %v2583_v23 = vsel %vm2580_vm5, %v2578_v6, %v6754_v37  ;;  %v2601_v43 = vsel %vm2600_vm9, %v2596_v11, %v6791_v40 }
 0x2e9   : > { %2831 = vbcast.lane.b32.xlu1 %v6799_v8, 264  ;;  %2915 = vbcast.lane.b32.xlu0 %v6874_v49, 256  ;;  %v2588_v57 = vsel %vm2585_vm6, %v2583_v23, %v6764_v47  ;;  %v2606_v62 = vsel %vm2605_vm10, %v2601_v43, %v6803_v27  ;;  %v6924_v27 = vrot.slane %v6849_v26, %v8463_v13 }
 0x2ea   : > { %v2593_v29 = vsel %vm2590_vm7, %v2588_v57, %v6774_v32  ;;  %v2611_v37 = vsel %vm2610_vm11, %v2606_v62, %v6819_v15  ;;  %v6979_v23 = vrot.slane %v6849_v26, %v8469_v34 }
 0x2eb   : > { %v6911_v50 = vpop.permute.xlu1 %2474  ;;  %v2537_v8 = vpop.permute.xlu0 %2536  ;;  %v2598_v40 = vsel %vm2595_vm8, %v2593_v29, %v6786_v46  ;;  %v2616_v47 = vsel %vm8325_vm12, %v2611_v37, %v2501_v59 }
 0x2ec   : > { %v2603_v32 = vsel %vm2600_vm9, %v2598_v40, %v6796_v45  ;;  %v2621_v15 = vsel %vm8318_vm13, %v2616_v47, %v2517_v18  ;;  %v6948_v18 = vrot.slane %v6849_v26, %v8464_v53 }
 0x2ed   : > { %2842 = vbcast.lane.b32.xlu1 %v6807_v48, 264  ;;  %2926 = vbcast.lane.b32.xlu0 %v6901_v2, 256  ;;  %v2608_v46 = vsel %vm2605_vm10, %v2603_v32, %v6811_v35  ;;  %v2626_v59 = vsel %vm8317_vm14, %v2621_v15, %v2533_v3 }
 0x2ee   : > { %v2613_v41 = vsel %vm2610_vm11, %v2608_v46, %v6827_v58 }
 0x2ef   : > { %v6932_v1 = vpop.permute.xlu1 %2486  ;;  %v2549_v48 = vpop.permute.xlu0 %2548  ;;  %v2618_v24 = vsel %vm8325_vm12, %v2613_v41, %v6843_v36  ;;  %v8494_v41 = vld [vmem:[#allocation54_spill] sm:$0xff] }
 0x2f0   : > { %v2631_v60 = vsel %vm8316_vm15, %v2626_v59, %v2549_v48  ;;  %v2623_v45 = vsel %vm8318_vm13, %v2618_v24, %v2521_v28  ;;  %v6969_v28 = vrot.slane %v6849_v26, %v8466_v19  ;;  %v8497_v24 = vld [vmem:[#allocation40_spill] sm:$0xff] }
 0x2f1   : > { %4792 = vst.msk [vmem:[%s6940_s30] sm:$0xff] %vm4791_vm0, %v2631_v60  ;;  %2853 = vbcast.lane.b32.xlu1 %v6815_v31, 264  ;;  %2937 = vbcast.lane.b32.xlu0 %v6924_v27, 256  ;;  %v2628_v35 = vsel %vm8317_vm14, %v2623_v45, %v2537_v8  ;;  %v6961_v31 = vrot.slane %v6849_v26, %v8465_v9  ;;  %v8490_v8 = vld [vmem:[#allocation78_spill] sm:$0xff]  ;;  %v8496_v60 = vld [vmem:[#allocation51_spill] sm:$0xff] }
 0x2f3   : > { %v6952_v58 = vpop.permute.xlu1 %2490  ;;  %v2553_v36 = vpop.permute.xlu0 %2552 }
 0x2f4   : > { %v2633_v21 = vsel %vm8316_vm15, %v2628_v35, %v2553_v36 }
 0x2f5   : > { %4794 = vst.msk [vmem:[%s6940_s30 + $0x10] sm:$0xff] %vm4791_vm0, %v2633_v21  ;;  %2864 = vbcast.lane.b32.xlu1 %v6823_v7, 264  ;;  %2948 = vbcast.lane.b32.xlu0 %v6948_v18, 256  ;;  %v455_v7 = vadd.f32 %v8488_v38, %v8487_v56  ;;  %v8498_v21 = vld [vmem:[#allocation56_spill] sm:$0xff] }
 0x2f7   : > { %v2503_v33 = vpop.permute.xlu1 %2502  ;;  %v6963_v3 = vpop.permute.xlu0 %2640 }
 0x2f9   : > { %2875 = vbcast.lane.b32.xlu1 %v6831_v44, 264  ;;  %2959 = vbcast.lane.b32.xlu0 %v6961_v31, 256  ;;  %v6981_v44 = vmul.f32 0.5, %v455_v7  ;;  %v8499_v7 = vld [vmem:[#allocation55_spill] sm:$0xff] }
 0x2fb   : > { %v2507_v6 = vpop.permute.xlu1 %2506  ;;  %v6973_v11 = vpop.permute.xlu0 %2651  ;;  %v6989_v62 = vrot.slane %v6981_v44, %v8460_v0  ;;  %v7008_v15 = vrot.slane %v6981_v44, %v8461_v51 }
 0x2fd   : > { %2886 = vbcast.lane.b32.xlu1 %v6837_v4, 264  ;;  %2970 = vbcast.lane.b32.xlu0 %v6969_v28, 256  ;;  %v8489_v4 = vld [vmem:[#allocation77_spill] sm:$0xff] }
 0x2fe   : > { %v8491_v29 = vcombine.low %v8489_v4, %v8490_v8 }
 0x2ff   : > { %v2519_v43 = vpop.permute.xlu1 %2518  ;;  %v6983_v57 = vpop.permute.xlu0 %2662 }
 0x300   : > { %v2562_v26 = vsel %vm2560_vm1, %v8491_v29, %v6746_v55  ;;  %v8492_v55 = vcombine.low %v6236_v39, %v6239_v30  ;;  %v8493_v30 = vld [vmem:[#allocation39_spill] sm:$0xff] }
 0x301   : > { %2897 = vbcast.lane.b32.xlu1 %v6847_v20, 264  ;;  %2981 = vbcast.lane.b32.xlu0 %v6979_v23, 256  ;;  %v2567_v37 = vsel %vm2565_vm2, %v2562_v26, %v6757_v22 }
 0x302   : > { %v2572_v20 = vsel %vm2570_vm3, %v2567_v37, %v6767_v42  ;;  %v2564_v22 = vsel %vm2560_vm1, %v8492_v55, %v6752_v25 }
 0x303   : > { %v2523_v40 = vpop.permute.xlu1 %2522  ;;  %v6998_v47 = vpop.permute.xlu0 %2673  ;;  %v2577_v32 = vsel %vm2575_vm4, %v2572_v20, %v6777_v63  ;;  %v2569_v63 = vsel %vm2565_vm2, %v2564_v22, %v6762_v10  ;;  %v7035_v10 = vrot.slane %v6981_v44, %v8462_v17 }
 0x304   : > { %v2582_v42 = vsel %vm2580_vm5, %v2577_v32, %v6789_v5  ;;  %v2574_v48 = vsel %vm2570_vm3, %v2569_v63, %v6772_v54 }
 0x305   : > { %2908 = vbcast.lane.b32.xlu1 %v6856_v52, 264  ;;  %2992 = vbcast.lane.b32.xlu0 %v6989_v62, 256  ;;  %v2587_v52 = vsel %vm2585_vm6, %v2582_v42, %v6801_v12  ;;  %v2579_v25 = vsel %vm2575_vm4, %v2574_v48, %v8493_v30  ;;  %v8495_v12 = vld [vmem:[#allocation66_spill] sm:$0xff]  ;;  %v3067_v30 = vrot.slane %v6981_v44, %v8469_v34 }
 0x306   : > { %v2592_v39 = vsel %vm2590_vm7, %v2587_v52, %v6817_v61  ;;  %v2584_v54 = vsel %vm2580_vm5, %v2579_v25, %v8495_v12  ;;  %v8501_v52 = vld [vmem:[#allocation28_spill] sm:$0xff] }
 0x307   : > { %v2535_v46 = vpop.permute.xlu1 %2534  ;;  %v7021_v59 = vpop.permute.xlu0 %2684  ;;  %v2597_v5 = vsel %vm2595_vm8, %v2592_v39, %v8494_v41  ;;  %v2589_v45 = vsel %vm2585_vm6, %v2584_v54, %v8497_v24 }
 0x308   : > { %v2602_v61 = vsel %vm2600_vm9, %v2597_v5, %v8496_v60  ;;  %v2594_v56 = vsel %vm2590_vm7, %v2589_v45, %v8498_v21 }
 0x309   : > { %2919 = vbcast.lane.b32.xlu1 %v6874_v49, 264  ;;  %3003 = vbcast.lane.b32.xlu0 %v7008_v15, 256  ;;  %v2607_v35 = vsel %vm2605_vm10, %v2602_v61, %v6887_v14  ;;  %v2599_v4 = vsel %vm2595_vm8, %v2594_v56, %v8499_v7  ;;  %v3023_v14 = vrot.slane %v6981_v44, %v8463_v13  ;;  %v8505_v56 = vld [vmem:[#allocation33_spill] sm:$0xff] }
 0x30a   : > { %v2612_v38 = vsel %vm2610_vm11, %v2607_v35, %v6932_v1  ;;  %v2604_v29 = vsel %vm2600_vm9, %v2599_v4, %v6865_v16  ;;  %v3034_v16 = vrot.slane %v6981_v44, %v8464_v53 }
 0x30b   : > { %v2539_v36 = vpop.permute.xlu1 %2538  ;;  %v7045_v49 = vpop.permute.xlu0 %2695  ;;  %v2617_v8 = vsel %vm8325_vm12, %v2612_v38, %v2503_v33  ;;  %v2609_v1 = vsel %vm2605_vm10, %v2604_v29, %v6911_v50  ;;  %v8506_v38 = vld [vmem:[#allocation34_spill] sm:$0xff] }
 0x30c   : > { %v2622_v26 = vsel %vm8318_vm13, %v2617_v8, %v2519_v43  ;;  %v457_v7 = vadd.f32 %v8506_v38, %v8505_v56 }
 0x30d   : > { %2930 = vbcast.lane.b32.xlu1 %v6901_v2, 264  ;;  %3014 = vbcast.lane.b32.xlu0 %v7035_v10, 256  ;;  %v2627_v37 = vsel %vm8317_vm14, %v2622_v26, %v2535_v46  ;;  %v2614_v2 = vsel %vm2610_vm11, %v2609_v1, %v6952_v58  ;;  %v8502_v46 = vld [vmem:[#allocation29_spill] sm:$0xff] }
 0x30e   : > { %v2619_v55 = vsel %vm8325_vm12, %v2614_v2, %v2507_v6  ;;  %v456_v48 = vadd.f32 %v8502_v46, %v8501_v52  ;;  %v7151_v29 = vmul.f32 0.5, %v457_v7 }
 0x30f   : > { %v2551_v20 = vpop.permute.xlu1 %2550  ;;  %v7064_v33 = vpop.permute.xlu0 %2706  ;;  %v2624_v50 = vsel %vm8318_vm13, %v2619_v55, %v2523_v40  ;;  %v3056_v40 = vrot.slane %v6981_v44, %v8466_v19 }
 0x310   : > { %v2632_v32 = vsel %vm8316_vm15, %v2627_v37, %v2551_v20  ;;  %v2629_v43 = vsel %vm8317_vm14, %v2624_v50, %v2539_v36  ;;  %v7101_v25 = vmul.f32 0.5, %v456_v48  ;;  %v3166_v37 = vrot.slane %v7151_v29, %v8460_v0 }
 0x311   : > { %4793 = vst.msk [vmem:[%s6940_s30 + $0x8] sm:$0xff] %vm4791_vm0, %v2632_v32  ;;  %2941 = vbcast.lane.b32.xlu1 %v6924_v27, 264  ;;  %3025 = vbcast.lane.b32.xlu0 %v3023_v14, 256  ;;  %v3045_v27 = vrot.slane %v6981_v44, %v8465_v9  ;;  %v3188_v32 = vrot.slane %v7151_v29, %v8462_v17 }
 0x312   : > { %v3078_v5 = vrot.slane %v7101_v25, %v8460_v0  ;;  %v3210_v50 = vrot.slane %v7151_v29, %v8464_v53  ;;  %v3232_v52 = vrot.slane %v7151_v29, %v8466_v19 }
 0x313   : > { %v2555_v22 = vpop.permute.xlu1 %2554  ;;  %v7077_v42 = vpop.permute.xlu0 %2717 }
 0x314   : > { %v2634_v58 = vsel %vm8316_vm15, %v2629_v43, %v2555_v22  ;;  %v8511_v43 = vld [vmem:[#allocation37_spill] sm:$0xff]  ;;  %v8512_v22 = vld [vmem:[#allocation38_spill] sm:$0xff] }
 0x315   : > { %4795 = vst.msk [vmem:[%s6940_s30 + $0x18] sm:$0xff] %vm4791_vm0, %v2634_v58  ;;  %2952 = vbcast.lane.b32.xlu1 %v6948_v18, 264  ;;  %3036 = vbcast.lane.b32.xlu0 %v3034_v16, 256  ;;  %v458_v58 = vadd.f32 %v8512_v22, %v8511_v43  ;;  %vm8528_vm0 = vcmask 7168  }
 0x316   : > { %vm8529_vm15 = vmmov %vm8528_vm0 }
 0x317   : > { %v7085_v6 = vpop.permute.xlu1 %2644  ;;  %v7087_v63 = vpop.permute.xlu0 %2728  ;;  %v462_v46 = vmul.f32 0.5, %v458_v58  ;;  %vm8531_vm14 = vmmov %vm8528_vm0 }
 0x318   : > { %8500 = vst [vmem:[#allocation52_spill] sm:$0xff] %v7085_v6  ;;  %vm8532_vm13 = vmmov %vm8528_vm0 }
 0x319   : > { %2963 = vbcast.lane.b32.xlu1 %v6961_v31, 264  ;;  %3047 = vbcast.lane.b32.xlu0 %v3045_v27, 256  ;;  %v3298_v22 = vrot.slane %v462_v46, %v8464_v53  ;;  %vm8569_vm12 = vmmov %vm8528_vm0 }
 0x31b   : > { %v7094_v39 = vpop.permute.xlu1 %2655  ;;  %v7096_v18 = vpop.permute.xlu0 %2739 }
 0x31d   : > { %2974 = vbcast.lane.b32.xlu1 %v6969_v28, 264  ;;  %3058 = vbcast.lane.b32.xlu0 %v3056_v40, 256  ;;  %v3089_v28 = vrot.slane %v7101_v25, %v8461_v51 }
 0x31f   : > { %v7103_v31 = vpop.permute.xlu1 %2666  ;;  %v7105_v41 = vpop.permute.xlu0 %2750 }
 0x320   : > { %8503 = vst [vmem:[#allocation53_spill] sm:$0xff] %v7103_v31 }
 0x321   : > { %2985 = vbcast.lane.b32.xlu1 %v6979_v23, 264  ;;  %3069 = vbcast.lane.b32.xlu0 %v3067_v30, 256  ;;  %v3100_v23 = vrot.slane %v7101_v25, %v8462_v17 }
 0x323   : > { %v7110_v12 = vpop.permute.xlu1 %2677  ;;  %v7112_v54 = vpop.permute.xlu0 %2761 }
 0x325   : > { %2996 = vbcast.lane.b32.xlu1 %v6989_v62, 264  ;;  %3080 = vbcast.lane.b32.xlu0 %v3078_v5, 256  ;;  %v3111_v62 = vrot.slane %v7101_v25, %v8463_v13 }
 0x327   : > { %v7117_v44 = vpop.permute.xlu1 %2688  ;;  %v7119_v60 = vpop.permute.xlu0 %2772 }
 0x328   : > { %8504 = vst [vmem:[#allocation49_spill] sm:$0xff] %v7117_v44 }
 0x329   : > { %3007 = vbcast.lane.b32.xlu1 %v7008_v15, 264  ;;  %3091 = vbcast.lane.b32.xlu0 %v3089_v28, 256  ;;  %v3122_v15 = vrot.slane %v7101_v25, %v8464_v53  ;;  %v3177_v53 = vrot.slane %v7151_v29, %v8461_v51 }
 0x32b   : > { %v7124_v61 = vpop.permute.xlu1 %2699  ;;  %v7126_v24 = vpop.permute.xlu0 %2783 }
 0x32d   : > { %3018 = vbcast.lane.b32.xlu1 %v7035_v10, 264  ;;  %3102 = vbcast.lane.b32.xlu0 %v3100_v23, 256  ;;  %v3133_v10 = vrot.slane %v7101_v25, %v8465_v9 }
 0x32f   : > { %v7131_v45 = vpop.permute.xlu1 %2710  ;;  %v7133_v35 = vpop.permute.xlu0 %2794 }
 0x331   : > { %3029 = vbcast.lane.b32.xlu1 %v3023_v14, 264  ;;  %3113 = vbcast.lane.b32.xlu0 %v3111_v62, 256  ;;  %v3144_v14 = vrot.slane %v7101_v25, %v8466_v19 }
 0x333   : > { %v7137_v36 = vpop.permute.xlu1 %2721  ;;  %v7139_v21 = vpop.permute.xlu0 %2805 }
 0x335   : > { %3040 = vbcast.lane.b32.xlu1 %v3034_v16, 264  ;;  %3124 = vbcast.lane.b32.xlu0 %v3122_v15, 256 }
 0x337   : > { %v7145_v4 = vpop.permute.xlu1 %2732  ;;  %v7147_v8 = vpop.permute.xlu0 %2816 }
 0x338   : > { %8507 = vst [vmem:[#allocation50_spill] sm:$0xff] %v7145_v4 }
 0x339   : > { %3051 = vbcast.lane.b32.xlu1 %v3045_v27, 264  ;;  %3135 = vbcast.lane.b32.xlu0 %v3133_v10, 256 }
 0x33b   : > { %v7153_v26 = vpop.permute.xlu1 %2743  ;;  %v7155_v1 = vpop.permute.xlu0 %2827 }
 0x33c   : > { %8508 = vst [vmem:[#allocation79_spill] sm:$0xff] %v7153_v26 }
 0x33d   : > { %3062 = vbcast.lane.b32.xlu1 %v3056_v40, 264  ;;  %3146 = vbcast.lane.b32.xlu0 %v3144_v14, 256 }
 0x33f   : > { %v7159_v20 = vpop.permute.xlu1 %2754  ;;  %v7161_v2 = vpop.permute.xlu0 %2838 }
 0x340   : > { %8509 = vst [vmem:[#allocation72_spill] sm:$0xff] %v7159_v20  ;;  %v3221_v20 = vrot.slane %v7151_v29, %v8465_v9 }
 0x341   : > { %3073 = vbcast.lane.b32.xlu1 %v3067_v30, 264  ;;  %3168 = vbcast.lane.b32.xlu0 %v3166_v37, 256 }
 0x343   : > { %v7165_v55 = vpop.permute.xlu1 %2765  ;;  %v7167_v16 = vpop.permute.xlu0 %2849 }
 0x344   : > { %8510 = vst [vmem:[#allocation43_spill] sm:$0xff] %v7165_v55 }
 0x345   : > { %3084 = vbcast.lane.b32.xlu1 %v3078_v5, 264  ;;  %3190 = vbcast.lane.b32.xlu0 %v3188_v32, 256  ;;  %v3254_v5 = vrot.slane %v462_v46, %v8460_v0  ;;  %v3155_v0 = vrot.slane %v7101_v25, %v8469_v34  ;;  %v3199_v25 = vrot.slane %v7151_v29, %v8463_v13 }
 0x347   : > { %v7173_v27 = vpop.permute.xlu1 %2776  ;;  %v7175_v40 = vpop.permute.xlu0 %2860 }
 0x348   : > { %8513 = vst [vmem:[#allocation73_spill] sm:$0xff] %v7173_v27 }
 0x349   : > { %3095 = vbcast.lane.b32.xlu1 %v3089_v28, 264  ;;  %3212 = vbcast.lane.b32.xlu0 %v3210_v50, 256  ;;  %v3276_v28 = vrot.slane %v462_v46, %v8462_v17 }
 0x34b   : > { %v7179_v48 = vpop.permute.xlu1 %2787  ;;  %v7181_v30 = vpop.permute.xlu0 %2871 }
 0x34c   : > { %8514 = vst [vmem:[#allocation44_spill] sm:$0xff] %v7179_v48 }
 0x34d   : > { %3106 = vbcast.lane.b32.xlu1 %v3100_v23, 264  ;;  %3234 = vbcast.lane.b32.xlu0 %v3232_v52, 256 }
 0x34f   : > { %v7184_v56 = vpop.permute.xlu1 %2798  ;;  %v7186_v38 = vpop.permute.xlu0 %2882 }
 0x350   : > { %8515 = vst [vmem:[#allocation68_spill] sm:$0xff] %v7184_v56 }
 0x351   : > { %3117 = vbcast.lane.b32.xlu1 %v3111_v62, 264  ;;  %3256 = vbcast.lane.b32.xlu0 %v3254_v5, 256  ;;  %v3320_v62 = vrot.slane %v462_v46, %v8466_v19 }
 0x353   : > { %v7189_v7 = vpop.permute.xlu1 %2809  ;;  %v7191_v43 = vpop.permute.xlu0 %2893 }
 0x354   : > { %8516 = vst [vmem:[#allocation41_spill] sm:$0xff] %v7189_v7 }
 0x355   : > { %3128 = vbcast.lane.b32.xlu1 %v3122_v15, 264  ;;  %3278 = vbcast.lane.b32.xlu0 %v3276_v28, 256 }
 0x357   : > { %v7194_v23 = vpop.permute.xlu1 %2820  ;;  %v7196_v58 = vpop.permute.xlu0 %2904 }
 0x358   : > { %8517 = vst [vmem:[#allocation71_spill] sm:$0xff] %v7194_v23 }
 0x359   : > { %3139 = vbcast.lane.b32.xlu1 %v3133_v10, 264  ;;  %3300 = vbcast.lane.b32.xlu0 %v3298_v22, 256 }
 0x35b   : > { %v7201_v17 = vpop.permute.xlu1 %2831  ;;  %v7203_v4 = vpop.permute.xlu0 %2915 }
 0x35c   : > { %8518 = vst [vmem:[#allocation42_spill] sm:$0xff] %v7201_v17  ;;  %v7235_v17 = vrot.slane %v462_v46, %v8463_v13 }
 0x35d   : > { %3157 = vbcast.lane.b32.xlu1 %v3155_v0, 256  ;;  %3322 = vbcast.lane.b32.xlu0 %v3320_v62, 256 }
 0x35f   : > { %v7207_v15 = vpop.permute.xlu1 %2842  ;;  %v7209_v27 = vpop.permute.xlu0 %2926 }
 0x360   : > { %8519 = vst [vmem:[#allocation82_spill] sm:$0xff] %v7207_v15 }
 0x361   : > { %3179 = vbcast.lane.b32.xlu1 %v3177_v53, 256  ;;  %3150 = vbcast.lane.b32.xlu0 %v3144_v14, 264  ;;  %v3243_v14 = vrot.slane %v7151_v29, %v8469_v34 }
 0x363   : > { %v7213_v10 = vpop.permute.xlu1 %2853  ;;  %v7215_v19 = vpop.permute.xlu0 %2937 }
 0x364   : > { %8520 = vst [vmem:[#allocation48_spill] sm:$0xff] %v7213_v10 }
 0x365   : > { %3201 = vbcast.lane.b32.xlu1 %v3199_v25, 256  ;;  %3172 = vbcast.lane.b32.xlu0 %v3166_v37, 264  ;;  %v3265_v37 = vrot.slane %v462_v46, %v8461_v51 }
 0x367   : > { %v7219_v26 = vpop.permute.xlu1 %2864  ;;  %v7221_v56 = vpop.permute.xlu0 %2948 }
 0x368   : > { %8521 = vst [vmem:[#allocation75_spill] sm:$0xff] %v7219_v26 }
 0x369   : > { %3223 = vbcast.lane.b32.xlu1 %v3221_v20, 256  ;;  %3194 = vbcast.lane.b32.xlu0 %v3188_v32, 264 }
 0x36b   : > { %v7225_v48 = vpop.permute.xlu1 %2875  ;;  %v7227_v55 = vpop.permute.xlu0 %2959 }
 0x36c   : > { %8522 = vst [vmem:[#allocation46_spill] sm:$0xff] %v7225_v48 }
 0x36d   : > { %3245 = vbcast.lane.b32.xlu1 %v3243_v14, 256  ;;  %3216 = vbcast.lane.b32.xlu0 %v3210_v50, 264  ;;  %v7243_v50 = vrot.slane %v462_v46, %v8465_v9 }
 0x36f   : > { %v7230_v7 = vpop.permute.xlu1 %2886  ;;  %v7232_v23 = vpop.permute.xlu0 %2970 }
 0x370   : > { %8523 = vst [vmem:[#allocation76_spill] sm:$0xff] %v7230_v7 }
 0x371   : > { %3267 = vbcast.lane.b32.xlu1 %v3265_v37, 256  ;;  %3238 = vbcast.lane.b32.xlu0 %v3232_v52, 264  ;;  %v7249_v52 = vrot.slane %v462_v46, %v8469_v34 }
 0x373   : > { %v7237_v32 = vpop.permute.xlu1 %2897  ;;  %v7239_v29 = vpop.permute.xlu0 %2981 }
 0x374   : > { %8524 = vst [vmem:[#allocation47_spill] sm:$0xff] %v7237_v32 }
 0x375   : > { %3289 = vbcast.lane.b32.xlu1 %v7235_v17, 256  ;;  %3260 = vbcast.lane.b32.xlu0 %v3254_v5, 264 }
 0x377   : > { %v7245_v51 = vpop.permute.xlu1 %2908  ;;  %v2993_v26 = vpop.permute.xlu0 %2992 }
 0x378   : > { %8525 = vst [vmem:[#allocation74_spill] sm:$0xff] %v7245_v51  ;;  %v3339_v9 = vsel %vm8528_vm0, %v6963_v3, %v2993_v26  ;;  %v8533_v3 = vld [vmem:[#allocation65_spill] sm:$0xff] }
 0x379   : > { %3311 = vbcast.lane.b32.xlu1 %v7243_v50, 256  ;;  %3282 = vbcast.lane.b32.xlu0 %v3276_v28, 264 }
 0x37b   : > { %v7251_v13 = vpop.permute.xlu1 %2919  ;;  %v3004_v15 = vpop.permute.xlu0 %3003 }
 0x37c   : > { %8526 = vst [vmem:[#allocation45_spill] sm:$0xff] %v7251_v13  ;;  %v3341_v13 = vsel %vm8531_vm14, %v6973_v11, %v3004_v15  ;;  %vm8538_vm14 = vmmov %vm8528_vm0 }
 0x37d   : > { %3333 = vbcast.lane.b32.xlu1 %v7249_v52, 256  ;;  %3304 = vbcast.lane.b32.xlu0 %v3298_v22, 264 }
 0x37f   : > { %v7254_v48 = vpop.permute.xlu1 %2930  ;;  %v3015_v5 = vpop.permute.xlu0 %3014 }
 0x380   : > { %8527 = vst [vmem:[#allocation64_spill] sm:$0xff] %v7254_v48  ;;  %v3343_v51 = vsel %vm8529_vm15, %v6983_v57, %v3015_v5  ;;  %vm8540_vm15 = vmmov %vm8528_vm0 }
 0x381   : > { %v3404_v10 = vcombine.high %v3339_v9, %v3343_v51  ;;  %3161 = vbcast.lane.b32.xlu1 %v3155_v0, 264  ;;  %3326 = vbcast.lane.b32.xlu0 %v3320_v62, 264  ;;  %v3403_v34 = vcombine.low %v3339_v9, %v3343_v51 }
 0x383   : > { %v7260_v46 = vpop.permute.xlu1 %2941  ;;  %v3026_v28 = vpop.permute.xlu0 %3025  ;;  %v3411_v26 = vrot.slane %v3403_v34, %v8533_v3  ;;  %v3418_v57 = vrot.slane %v3404_v10, %v8533_v3 }
 0x384   : > { %8530 = vst [vmem:[#allocation81_spill] sm:$0xff] %v7260_v46  ;;  %v3345_v22 = vsel %vm8532_vm13, %v6998_v47, %v3026_v28  ;;  %vm8537_vm13 = vmmov %vm8528_vm0 }
 0x385   : > { %v3419_v48 = vcombine.low %v3341_v13, %v3345_v22  ;;  %v3420_v7 = vcombine.high %v3341_v13, %v3345_v22  ;;  %3183 = vbcast.lane.b32.xlu1 %v3177_v53, 264 }
 0x387   : > { %v3427_v0 = vrot.slane %v3419_v48, %v8533_v3  ;;  %v3434_v62 = vrot.slane %v3420_v7, %v8533_v3  ;;  %v7270_v51 = vpop.permute.xlu1 %2952  ;;  %v3037_v5 = vpop.permute.xlu0 %3036 }
 0x388   : > { %8534 = vst [vmem:[#allocation80_spill] sm:$0xff] %v7270_v51  ;;  %v3347_v10 = vsel %vm8537_vm13, %v7021_v59, %v3037_v5  ;;  %vm8554_vm13 = vmmov %vm8528_vm0 }
 0x389   : > { %v3468_v9 = vcombine.high %v3411_v26, %v3427_v0  ;;  %v3483_v46 = vcombine.low %v3418_v57, %v3434_v62  ;;  %v3484_v11 = vcombine.high %v3418_v57, %v3434_v62  ;;  %3205 = vbcast.lane.b32.xlu1 %v3199_v25, 264  ;;  %v3467_v51 = vcombine.low %v3411_v26, %v3427_v0 }
 0x38b   : > { %v7272_v15 = vpop.permute.xlu1 %2963  ;;  %v3048_v47 = vpop.permute.xlu0 %3047 }
 0x38c   : > { %8535 = vst [vmem:[#allocation60_spill] sm:$0xff] %v7272_v15  ;;  %v3349_v25 = vsel %vm8540_vm15, %v7045_v49, %v3048_v47  ;;  %vm8556_vm15 = vmmov %vm8528_vm0 }
 0x38d   : > { %3227 = vbcast.lane.b32.xlu1 %v3221_v20, 264 }
 0x38f   : > { %v7274_v53 = vpop.permute.xlu1 %2974  ;;  %v3059_v13 = vpop.permute.xlu0 %3058 }
 0x390   : > { %8536 = vst [vmem:[#allocation62_spill] sm:$0xff] %v7274_v53  ;;  %v3351_v48 = vsel %vm8538_vm14, %v7064_v33, %v3059_v13  ;;  %vm8555_vm14 = vmmov %vm8528_vm0 }
 0x391   : > { %v3436_v7 = vcombine.high %v3347_v10, %v3351_v48  ;;  %3249 = vbcast.lane.b32.xlu1 %v3243_v14, 264  ;;  %v3435_v34 = vcombine.low %v3347_v10, %v3351_v48 }
 0x393   : > { %v7280_v28 = vpop.permute.xlu1 %2985  ;;  %v3070_v22 = vpop.permute.xlu0 %3069  ;;  %v3443_v59 = vrot.slane %v3435_v34, %v8533_v3  ;;  %v3450_v33 = vrot.slane %v3436_v7, %v8533_v3 }
 0x394   : > { %8539 = vst [vmem:[#allocation63_spill] sm:$0xff] %v7280_v28  ;;  %v3353_v20 = vsel %vm8528_vm0, %v7077_v42, %v3070_v22  ;;  %v8542_v42 = vld [vmem:[#allocation67_spill] sm:$0xff] }
 0x395   : > { %v3451_v57 = vcombine.low %v3349_v25, %v3353_v20  ;;  %v3452_v62 = vcombine.high %v3349_v25, %v3353_v20  ;;  %3271 = vbcast.lane.b32.xlu1 %v3265_v37, 264  ;;  %v7294_v37 = vrot.slane %v3467_v51, %v8542_v42  ;;  %v7297_v26 = vrot.slane %v3468_v9, %v8542_v42 }
 0x396   : > { %v7300_v0 = vrot.slane %v3483_v46, %v8542_v42  ;;  %v7317_v9 = vrot.slane %v3484_v11, %v8542_v42 }
 0x397   : > { %v3459_v14 = vrot.slane %v3451_v57, %v8533_v3  ;;  %v3466_v5 = vrot.slane %v3452_v62, %v8533_v3  ;;  %v7290_v13 = vpop.permute.xlu1 %2996  ;;  %v3081_v10 = vpop.permute.xlu0 %3080  ;;  %8543 = vst [vmem:[#allocation59_spill] sm:$0xff] %v7294_v37 }
 0x398   : > { %8541 = vst [vmem:[#allocation58_spill] sm:$0xff] %v7290_v13  ;;  %8546 = vst [vmem:[#allocation18_spill] sm:$0xff] %v7317_v9 }
 0x399   : > { %v3499_v48 = vcombine.low %v3443_v59, %v3459_v14  ;;  %v3500_v49 = vcombine.high %v3443_v59, %v3459_v14  ;;  %v3515_v47 = vcombine.low %v3450_v33, %v3466_v5  ;;  %v3516_v15 = vcombine.high %v3450_v33, %v3466_v5  ;;  %3293 = vbcast.lane.b32.xlu1 %v7235_v17, 264 }
 0x39b   : > { %v7303_v7 = vrot.slane %v3499_v48, %v8542_v42  ;;  %v7306_v34 = vrot.slane %v3500_v49, %v8542_v42  ;;  %v7309_v22 = vrot.slane %v3515_v47, %v8542_v42  ;;  %v7312_v17 = vrot.slane %v3516_v15, %v8542_v42  ;;  %v7314_v51 = vpop.permute.xlu1 %3007  ;;  %v3092_v25 = vpop.permute.xlu0 %3091 }
 0x39c   : > { %v7366_v9 = vsel %vm8555_vm14, %v7096_v18, %v3092_v25  ;;  %vm8559_vm14 = vmmov %vm8528_vm0 }
 0x39d   : > { %8544 = vst [vmem:[#allocation61_spill] sm:$0xff] %v7303_v7  ;;  %8545 = vst [vmem:[#allocation57_spill] sm:$0xff] %v7312_v17  ;;  %3315 = vbcast.lane.b32.xlu1 %v7243_v50, 264  ;;  %v3532_v46 = vcombine.high %v7294_v37, %v7303_v7 }
 0x39f   : > { %v7336_v33 = vpop.permute.xlu1 %3018  ;;  %4495 = vrot.lane.b32.xlu0 %v3532_v46, %s5327_s26  ;;  %v3103_v14 = vpop.permute.xlu0 %3102 }
 0x3a0   : > { %8547 = vst [vmem:[#allocation17_spill] sm:$0xff] %v7336_v33 }
 0x3a1   : > { %3337 = vbcast.lane.b32.xlu1 %v7249_v52, 264 }
 0x3a3   : > { %v7340_v5 = vpop.permute.xlu1 %3029  ;;  %v3114_v48 = vpop.permute.xlu0 %3113 }
 0x3a4   : > { %v7362_v28 = vsel %vm8554_vm13, %v7112_v54, %v3114_v48  ;;  %vm8558_vm13 = vmmov %vm8528_vm0 }
 0x3a7   : > { %v7342_v49 = vpop.permute.xlu1 %3040  ;;  %v3125_v47 = vpop.permute.xlu0 %3124 }
 0x3a8   : > { %8548 = vst [vmem:[#allocation20_spill] sm:$0xff] %v7342_v49 }
 0x3ab   : > { %v7344_v11 = vpop.permute.xlu1 %3051  ;;  %v3136_v50 = vpop.permute.xlu0 %3135 }
 0x3af   : > { %v7346_v62 = vpop.permute.xlu1 %3062  ;;  %v3147_v59 = vpop.permute.xlu0 %3146 }
 0x3b0   : > { %v7382_v54 = vsel %vm8558_vm13, %v7133_v35, %v3147_v59  ;;  %vm8563_vm13 = vmmov %vm8528_vm0 }
 0x3b3   : > { %v7348_v15 = vpop.permute.xlu1 %3073  ;;  %v3169_v20 = vpop.permute.xlu0 %3168 }
 0x3b7   : > { %v7350_v57 = vpop.permute.xlu1 %3084  ;;  %v3191_v7 = vpop.permute.xlu0 %3190 }
 0x3b8   : > { %8549 = vst [vmem:[#allocation19_spill] sm:$0xff] %v7350_v57  ;;  %v7370_v57 = vsel %vm8556_vm15, %v7105_v41, %v3103_v14  ;;  %v7388_v41 = vsel %vm8559_vm14, %v7119_v60, %v3125_v47  ;;  %vm8560_vm15 = vmmov %vm8528_vm0 }
 0x3b9   : > { %v3571_v14 = vcombine.low %v7388_v41, %v7382_v54  ;;  %vm8564_vm14 = vmmov %vm8528_vm0 }
 0x3bb   : > { %v7352_v46 = vpop.permute.xlu1 %3095  ;;  %v3213_v17 = vpop.permute.xlu0 %3212 }
 0x3bc   : > { %8550 = vst [vmem:[#allocation23_spill] sm:$0xff] %v7352_v46 }
 0x3bf   : > { %v7354_v52 = vpop.permute.xlu1 %3106  ;;  %v3235_v48 = vpop.permute.xlu0 %3234 }
 0x3c0   : > { %8551 = vst [vmem:[#allocation24_spill] sm:$0xff] %v7354_v52  ;;  %v3555_v52 = vcombine.low %v7366_v9, %v7362_v28 }
 0x3c2   : > { %v7391_v25 = vrot.slane %v3555_v52, %v8533_v3  ;;  %v7411_v52 = vrot.slane %v3571_v14, %v8533_v3 }
 0x3c3   : > { %v7356_v37 = vpop.permute.xlu1 %3117 }
 0x3c4   : > { %8552 = vst [vmem:[#allocation25_spill] sm:$0xff] %v7356_v37 }
 0x3c7   : > { %v7358_v53 = vpop.permute.xlu1 %3128 }
 0x3c8   : > { %8553 = vst [vmem:[#allocation26_spill] sm:$0xff] %v7358_v53  ;;  %v7378_v53 = vsel %vm8528_vm0, %v7087_v63, %v3081_v10  ;;  %v7397_v10 = vsel %vm8560_vm15, %v7126_v24, %v3136_v50  ;;  %v3257_v50 = vpop.permute.xlu0 %3256  ;;  %vm8565_vm15 = vmmov %vm8528_vm0 }
 0x3c9   : > { %v3539_v18 = vcombine.low %v7378_v53, %v7370_v57 }
 0x3cb   : > { %v7374_v46 = vpop.permute.xlu1 %3139  ;;  %v7404_v59 = vrot.slane %v3539_v18, %v8533_v3 }
 0x3cc   : > { %8557 = vst [vmem:[#allocation27_spill] sm:$0xff] %v7374_v46 }
 0x3cd   : > { %v3603_v47 = vcombine.low %v7404_v59, %v7391_v25 }
 0x3cf   : > { %v3158_v63 = vpop.permute.xlu1 %3157  ;;  %v7419_v18 = vrot.slane %v3603_v47, %v8542_v42  ;;  %v3279_v47 = vpop.permute.xlu0 %3278 }
 0x3d0   : > { %v7401_v35 = vsel %vm8528_vm0, %v7139_v21, %v3158_v63 }
 0x3d1   : > { %v3587_v60 = vcombine.low %v7397_v10, %v7401_v35  ;;  %8561 = vst [vmem:[#allocation32_spill] sm:$0xff] %v7419_v18 }
 0x3d3   : > { %v7414_v46 = vrot.slane %v3587_v60, %v8533_v3  ;;  %v3180_v24 = vpop.permute.xlu1 %3179  ;;  %v7432_v60 = vsel %vm8564_vm14, %v7161_v2, %v3191_v7  ;;  %vm8567_vm14 = vmmov %vm8528_vm0 }
 0x3d4   : > { %v7436_v6 = vsel %vm8565_vm15, %v7155_v1, %v3180_v24  ;;  %v3379_v7 = vsel %vm8567_vm14, %v7175_v40, %v3213_v17  ;;  %vm8568_vm15 = vmmov %vm8528_vm0 }
 0x3d5   : > { %v3635_v21 = vcombine.low %v7411_v52, %v7414_v46  ;;  %vm8574_vm14 = vmmov %vm8528_vm0 }
 0x3d7   : > { %v7422_v63 = vrot.slane %v3635_v21, %v8542_v42  ;;  %v3202_v37 = vpop.permute.xlu1 %3201 }
 0x3d8   : > { %v7426_v32 = vsel %vm8563_vm13, %v7167_v16, %v3202_v37  ;;  %v7445_v37 = vsel %vm8528_vm0, %v7147_v8, %v3169_v20  ;;  %vm8566_vm13 = vmmov %vm8528_vm0 }
 0x3d9   : > { %8562 = vst [vmem:[#allocation31_spill] sm:$0xff] %v7422_v63  ;;  %v3668_v14 = vcombine.high %v7419_v18, %v7422_v63  ;;  %v3963_v21 = vcombine.low %v7436_v6, %v7426_v32  ;;  %v3383_v2 = vsel %vm8566_vm13, %v7186_v38, %v3235_v48  ;;  %v3947_v1 = vcombine.low %v7445_v37, %v7432_v60  ;;  %v3301_v63 = vpop.permute.xlu0 %3300  ;;  %vm8573_vm13 = vmmov %vm8528_vm0 }
 0x3da   : > { %v3979_v24 = vcombine.low %v3379_v7, %v3383_v2 }
 0x3db   : > { %v3224_v13 = vpop.permute.xlu1 %3223  ;;  %4497 = vrot.lane.b32.xlu1 %v3668_v14, %s5327_s26  ;;  %v3971_v44 = vrot.slane %v3963_v21, %v8533_v3  ;;  %v3955_v20 = vrot.slane %v3947_v1, %v8533_v3 }
 0x3dc   : > { %v3381_v16 = vsel %vm8568_vm15, %v7181_v30, %v3224_v13  ;;  %v3987_v48 = vrot.slane %v3979_v24, %v8533_v3  ;;  %vm8575_vm15 = vmmov %vm8528_vm0 }
 0x3dd   : > { %v4011_v18 = vcombine.low %v3955_v20, %v3971_v44  ;;  %v3323_v31 = vpop.permute.xlu0 %3322 }
 0x3df   : > { %v3246_v14 = vpop.permute.xlu1 %3245  ;;  %v7462_v21 = vrot.slane %v4011_v18, %v8542_v42 }
 0x3e0   : > { %v3385_v8 = vsel %vm8569_vm12, %v7191_v43, %v3246_v14  ;;  %vm8572_vm12 = vmmov %vm8528_vm0  ;;  %v7475_v14 = vsel %vm8528_vm0, %v7209_v27, %v3279_v47  ;;  %v7492_v27 = vsel %vm8575_vm15, %v7232_v23, %v3323_v31  ;;  %v8577_v23 = vcombine.low %v7297_v26, %v7306_v34 }
 0x3e1   : > { %v3995_v38 = vcombine.low %v3381_v16, %v3385_v8  ;;  %8570 = vst [vmem:[#allocation30_spill] sm:$0xff] %v7462_v21  ;;  %vm8585_vm15 = vmmov %vm8528_vm0 }
 0x3e3   : > { %v4003_v49 = vrot.slane %v3995_v38, %v8533_v3  ;;  %v3268_v40 = vpop.permute.xlu1 %3267  ;;  %v4012_v38 = vcombine.high %v3955_v20, %v3971_v44 }
 0x3e4   : > { %v7479_v18 = vsel %vm8573_vm13, %v7203_v4, %v3268_v40  ;;  %v7496_v4 = vpop.permute.xlu0 %3150  ;;  %vm8578_vm13 = vmmov %vm8528_vm0 }
 0x3e5   : > { %v4043_v17 = vcombine.low %v3987_v48, %v4003_v49  ;;  %v4044_v1 = vcombine.high %v3987_v48, %v4003_v49  ;;  %v7488_v49 = vsel %vm8574_vm14, %v7196_v58, %v3257_v50  ;;  %v4026_v58 = vrot.slane %v4012_v38, %v8542_v42  ;;  %vm8584_vm14 = vmmov %vm8528_vm0 }
 0x3e6   : > { %v4083_v44 = vcombine.low %v7488_v49, %v7475_v14  ;;  %v3980_v38 = vcombine.high %v3379_v7, %v3383_v2  ;;  %v3636_v2 = vcombine.high %v7411_v52, %v7414_v46  ;;  %v8581_v52 = vcombine.high %v7297_v26, %v7306_v34 }
 0x3e7   : > { %v7465_v30 = vrot.slane %v4043_v17, %v8542_v42  ;;  %v3290_v13 = vpop.permute.xlu1 %3289  ;;  %v4058_v47 = vrot.slane %v4044_v1, %v8542_v42 }
 0x3e8   : > { %v7469_v43 = vsel %vm8572_vm12, %v7215_v19, %v3290_v13  ;;  %vm8576_vm12 = vmmov %vm8528_vm0  ;;  %v3996_v13 = vcombine.high %v3381_v16, %v3385_v8  ;;  %v7525_v19 = vpop.permute.xlu0 %3172  ;;  %v3948_v16 = vcombine.high %v7445_v37, %v7432_v60 }
 0x3e9   : > { %8571 = vst [vmem:[#allocation36_spill] sm:$0xff] %v7465_v30  ;;  %v4076_v24 = vcombine.high %v7462_v21, %v7465_v30  ;;  %v4099_v17 = vcombine.low %v7479_v18, %v7469_v43  ;;  %v7501_v20 = vsel %vm8576_vm12, %v7221_v56, %v3301_v63  ;;  %v4091_v63 = vrot.slane %v4083_v44, %v8533_v3  ;;  %vm8586_vm12 = vmmov %vm8528_vm0  ;;  %v8641_v21 = vld [vmem:[#allocation60_spill] sm:$0xff] }
 0x3ea   : > { %v4115_v48 = vcombine.low %v7501_v20, %v7492_v27  ;;  %v7536_v7 = vrot.slane %v3996_v13, %v8533_v3 }
 0x3eb   : > { %v3312_v33 = vpop.permute.xlu1 %3311  ;;  %4499 = vrot.lane.b32.xlu0 %v4076_v24, %s5327_s26  ;;  %v4107_v50 = vrot.slane %v4099_v17, %v8533_v3  ;;  %v4077_v24 = vcombine.low %v4026_v58, %v4058_v47 }
 0x3ec   : > { %v7513_v40 = vsel %vm8528_vm0, %v7227_v55, %v3312_v33  ;;  %v4123_v17 = vrot.slane %v4115_v48, %v8533_v3  ;;  %v7562_v37 = vpop.permute.xlu0 %3194 }
 0x3ed   : > { %v4147_v55 = vcombine.low %v4091_v63, %v4107_v50  ;;  %v4148_v34 = vcombine.high %v4091_v63, %v4107_v50  ;;  %v3556_v50 = vcombine.high %v7366_v9, %v7362_v28  ;;  %v3572_v63 = vcombine.high %v7388_v41, %v7382_v54 }
 0x3ee   : > { %v3540_v28 = vcombine.high %v7378_v53, %v7370_v57  ;;  %v4100_v53 = vcombine.high %v7479_v18, %v7469_v43 }
 0x3ef   : > { %v3334_v31 = vpop.permute.xlu1 %3333  ;;  %4511 = vrot.lane.b32.xlu0 %v8577_v23, %s5328_s5  ;;  %v3964_v23 = vcombine.high %v7436_v6, %v7426_v32  ;;  %v3604_v6 = vcombine.high %v7404_v59, %v7391_v25  ;;  %v7541_v32 = vrot.slane %v3980_v38, %v8533_v3  ;;  %v7547_v48 = vrot.slane %v4147_v55, %v8542_v42 }
 0x3f0   : > { %v7517_v56 = vsel %vm8578_vm13, %v7239_v29, %v3334_v31  ;;  %v7559_v25 = vrot.slane %v3948_v16, %v8533_v3  ;;  %v3650_v59 = vrot.slane %v3636_v2, %v8542_v42  ;;  %v3588_v55 = vcombine.high %v7397_v10, %v7401_v35  ;;  %v7586_v2 = vpop.permute.xlu0 %3216  ;;  %vm8587_vm13 = vmmov %vm8528_vm0 }
 0x3f1   : > { %v4131_v1 = vcombine.low %v7513_v40, %v7517_v56  ;;  %v7544_v44 = vrot.slane %v3964_v23, %v8533_v3  ;;  %8579 = vst [vmem:[#allocation35_spill] sm:$0xff] %v7547_v48  ;;  %v4059_v31 = vcombine.low %v7541_v32, %v7536_v7  ;;  %v3618_v38 = vrot.slane %v3604_v6, %v8542_v42 }
 0x3f2   : > { %v4162_v10 = vrot.slane %v4148_v34, %v8542_v42  ;;  %v7599_v9 = vrot.slane %v3588_v55, %v8533_v3  ;;  %v4132_v54 = vcombine.high %v7513_v40, %v7517_v56  ;;  %v7616_v40 = vrot.slane %v3540_v28, %v8533_v3 }
 0x3f3   : > { %v4139_v33 = vrot.slane %v4131_v1, %v8533_v3  ;;  %v7528_v29 = vpop.permute.xlu1 %3161  ;;  %4515 = vrot.lane.b32.xlu0 %v4077_v24, %s5328_s5  ;;  %v4078_v1 = vcombine.high %v4026_v58, %v4058_v47  ;;  %v4027_v26 = vcombine.low %v7559_v25, %v7544_v44  ;;  %v4067_v47 = vrot.slane %v4059_v31, %v8542_v42 }
 0x3f4   : > { %v7607_v31 = vrot.slane %v3572_v63, %v8533_v3  ;;  %v4084_v56 = vcombine.high %v7488_v49, %v7475_v14  ;;  %v8583_v14 = vcombine.high %v7300_v0, %v7309_v22  ;;  %v7641_v49 = vsel %vm8584_vm14, %v7137_v36, %v7348_v15  ;;  %vm8590_vm14 = vmmov %vm8528_vm0 }
 0x3f5   : > { %v4179_v8 = vcombine.low %v4123_v17, %v4139_v33  ;;  %v4180_v13 = vcombine.high %v4123_v17, %v4139_v33  ;;  %v3669_v17 = vcombine.low %v3618_v38, %v3650_v59  ;;  %v4035_v16 = vrot.slane %v4027_v26, %v8542_v42 }
 0x3f6   : > { %v7631_v26 = vrot.slane %v4100_v53, %v8533_v3  ;;  %v4060_v34 = vcombine.high %v7541_v32, %v7536_v7  ;;  %v7658_v36 = vsel %vm8585_vm15, %v7110_v12, %v7340_v5  ;;  %v7669_v7 = vsel %vm8528_vm0, %v7131_v45, %v7346_v62  ;;  %v8589_v45 = vld [vmem:[#allocation53_spill] sm:$0xff]  ;;  %vm8593_vm15 = vmmov %vm8528_vm0 }
 0x3f7   : > { %v7550_v60 = vrot.slane %v4179_v8, %v8542_v42  ;;  %v7552_v46 = vpop.permute.xlu1 %3183  ;;  %4527 = vrot.lane.b32.xlu0 %v8581_v52, %s5329_s7  ;;  %v4194_v58 = vrot.slane %v4180_v13, %v8542_v42  ;;  %v8582_v8 = vcombine.low %v7300_v0, %v7309_v22  ;;  %v4079_v41 = vcombine.low %v4035_v16, %v4067_v47 }
 0x3f8   : > { %v7604_v52 = vrot.slane %v3556_v50, %v8533_v3  ;;  %v4116_v13 = vcombine.high %v7501_v20, %v7492_v27  ;;  %v7623_v27 = vrot.slane %v4132_v54, %v8533_v3  ;;  %v3670_v20 = vcombine.high %v3618_v38, %v3650_v59 }
 0x3f9   : > { %8580 = vst [vmem:[#allocation21_spill] sm:$0xff] %v7550_v60  ;;  %v4212_v24 = vcombine.high %v7547_v48, %v7550_v60  ;;  %v4213_v6 = vcombine.low %v4162_v10, %v4194_v58  ;;  %v7644_v59 = vrot.slane %v4084_v56, %v8533_v3  ;;  %v4080_v55 = vcombine.high %v4035_v16, %v4067_v47 }
 0x3fa   : > { %v3619_v43 = vcombine.low %v7616_v40, %v7604_v52  ;;  %v7628_v18 = vrot.slane %v4116_v13, %v8533_v3  ;;  %v7664_v50 = vsel %vm8586_vm12, %v7124_v61, %v7344_v11  ;;  %v4028_v32 = vcombine.high %v7559_v25, %v7544_v44  ;;  %v8588_v11 = vld [vmem:[#allocation17_spill] sm:$0xff]  ;;  %v8591_v44 = vld [vmem:[#allocation20_spill] sm:$0xff]  ;;  %vm8596_vm12 = vmmov %vm8528_vm0 }
 0x3fb   : > { %v7571_v23 = vpop.permute.xlu1 %3205  ;;  %4531 = vrot.lane.b32.xlu0 %v4078_v1, %s5329_s7  ;;  %4501 = vrot.lane.b32.xlu1 %v4212_v24, %s5327_s26  ;;  %v3651_v1 = vcombine.low %v7607_v31, %v7599_v9  ;;  %v3239_v24 = vpop.permute.xlu0 %3238  ;;  %v4163_v47 = vcombine.low %v7644_v59, %v7631_v26  ;;  %v7682_v61 = vsel %vm8587_vm13, %v7094_v39, %v7314_v51  ;;  %v8592_v25 = vld [vmem:[#allocation49_spill] sm:$0xff]  ;;  %v8594_v51 = vld [vmem:[#allocation58_spill] sm:$0xff]  ;;  %vm8602_vm13 = vmmov %vm8528_vm0  ;;  %s5342_s26 = smov 32  }
 0x3fc   : > { %v4195_v0 = vcombine.low %v7628_v18, %v7623_v27  ;;  %v3627_v15 = vrot.slane %v3619_v43, %v8542_v42  ;;  %v7687_v62 = vsel %vm8590_vm14, %v8589_v45, %v8588_v11  ;;  %v3723_v5 = vcombine.low %v7664_v50, %v7641_v49  ;;  %v8599_v43 = vld [vmem:[#allocation57_spill] sm:$0xff]  ;;  %vm8604_vm14 = vmmov %vm8528_vm0  ;;  %v8607_v11 = vld [vmem:[#allocation82_spill] sm:$0xff] }
 0x3fd   : > { %v7647_v38 = vrot.slane %v3651_v1, %v8542_v42  ;;  %v4074_v63 = vrot.slane %v4060_v34, %v8542_v42  ;;  %v3691_v28 = vcombine.low %v7682_v61, %v7658_v36  ;;  %v4042_v53 = vrot.slane %v4028_v32, %v8542_v42  ;;  %v8605_v32 = vld [vmem:[#allocation46_spill] sm:$0xff] }
 0x3fe   : > { %v4203_v16 = vrot.slane %v4195_v0, %v8542_v42  ;;  %v4171_v56 = vrot.slane %v4163_v47, %v8542_v42  ;;  %v7724_v34 = vrot.slane %v3723_v5, %v8533_v3 }
 0x3ff   : > { %v7589_v35 = vpop.permute.xlu1 %3227  ;;  %4543 = vrot.lane.b32.xlu0 %v8582_v8, %s5330_s10  ;;  %4513 = vrot.lane.b32.xlu1 %v3669_v17, %s5328_s5  ;;  %v4214_v17 = vcombine.high %v4162_v10, %v4194_v58  ;;  %v7675_v12 = vpop.permute.xlu0 %3260  ;;  %v7694_v58 = vsel %vm8593_vm15, %v8592_v25, %v8591_v44  ;;  %v3671_v39 = vcombine.low %v3627_v15, %v7647_v38  ;;  %v8595_v10 = vld [vmem:[#allocation52_spill] sm:$0xff]  ;;  %vm8606_vm15 = vmmov %vm8528_vm0 }
 0x400   : > { %v7702_v8 = vsel %vm8596_vm12, %v8595_v10, %v8594_v51  ;;  %v3707_v54 = vcombine.low %v7694_v58, %v7669_v7  ;;  %v7738_v47 = vsel %vm8606_vm15, %v8605_v32, %v7589_v35  ;;  %vm8608_vm12 = vmmov %vm8528_vm0  ;;  %v4081_v44 = vcombine.low %v4042_v53, %v4074_v63  ;;  %v8609_v35 = vld [vmem:[#allocation75_spill] sm:$0xff] }
 0x401   : > { %v3675_v13 = vcombine.low %v7702_v8, %v7687_v62  ;;  %v7743_v45 = vsel %vm8608_vm12, %v8607_v11, %v7562_v37  ;;  %v4215_v25 = vcombine.low %v4171_v56, %v4203_v16  ;;  %v7758_v51 = vsel %vm8528_vm0, %v8609_v35, %v7586_v2  ;;  %v8610_v37 = vld [vmem:[#allocation42_spill] sm:$0xff]  ;;  %vm8616_vm15 = vmmov %vm8528_vm0 }
 0x402   : > { %v3672_v11 = vcombine.high %v3627_v15, %v7647_v38  ;;  %vm8619_vm12 = vmmov %vm8528_vm0 }
 0x403   : > { %v3250_v57 = vpop.permute.xlu1 %3249  ;;  %4547 = vrot.lane.b32.xlu0 %v4079_v41, %s5330_s10  ;;  %4517 = vrot.lane.b32.xlu1 %v4213_v6, %s5328_s5  ;;  %v8597_v41 = vld [vmem:[#allocation47_spill] sm:$0xff]  ;;  %v7745_v5 = vpop.permute.xlu0 %3282  ;;  %v7777_v2 = vrot.slane %v3675_v13, %v8533_v3  ;;  %v3620_v13 = vcombine.high %v7616_v40, %v7604_v52  ;;  %v4082_v40 = vcombine.high %v4042_v53, %v4074_v63  ;;  %s4818_s5 = scalar_lea.sflag [#allocation4], %s5607_s12 }
 0x404   : > { %v7710_v6 = vsel %vm8528_vm0, %v8597_v41, %v3250_v57  ;;  %v8601_v57 = vld [vmem:[#allocation76_spill] sm:$0xff]  ;;  %v8612_v41 = vld [vmem:[#allocation71_spill] sm:$0xff] }
 0x405   : > { %v7728_v0 = vsel %vm8602_vm13, %v8601_v57, %v3239_v24  ;;  %v4267_v24 = vcombine.low %v7738_v47, %v7710_v6  ;;  %vm8611_vm13 = vmmov %vm8528_vm0  ;;  %v8620_v53 = vld [vmem:[#allocation27_spill] sm:$0xff] }
 0x406   : > { %v7763_v10 = vsel %vm8611_vm13, %v8610_v37, %v7552_v46  ;;  %v8615_v37 = vld [vmem:[#allocation41_spill] sm:$0xff]  ;;  %vm8623_vm13 = vmmov %vm8528_vm0 }
 0x407   : > { %4559 = vrot.lane.b32.xlu0 %v8583_v14, %s5331_s25  ;;  %4529 = vrot.lane.b32.xlu1 %v3670_v20, %s5329_s7  ;;  %v7653_v22 = vpop.permute.xlu1 %3271  ;;  %v8598_v20 = vld [vmem:[#allocation18_spill] sm:$0xff]  ;;  %v3305_v35 = vpop.permute.xlu0 %3304 }
 0x408   : > { %v8600_v14 = vcombine.low %v8598_v20, %v8599_v43 }
 0x40b   : > { %4563 = vrot.lane.b32.xlu0 %v4080_v55, %s5331_s25  ;;  %4533 = vrot.lane.b32.xlu1 %v4214_v17, %s5329_s7  ;;  %v7716_v1 = vpop.permute.xlu1 %3293  ;;  %v8603_v55 = vld [vmem:[#allocation48_spill] sm:$0xff]  ;;  %s5029_s7 = sshll.u32 (%p8683_p6), %s5392_s19, 1 }
 0x40c   : > { %v7733_v17 = vsel %vm8604_vm14, %v8603_v55, %v7571_v23  ;;  %v7750_v23 = vrot.slane %v3691_v28, %v8533_v3  ;;  %vm8613_vm14 = vmmov %vm8528_vm0  ;;  %v4251_v28 = vcombine.low %v7758_v51, %v7728_v0  ;;  %v7786_v55 = vrot.slane %v4267_v24, %v8533_v3 }
 0x40d   : > { %v4196_v24 = vcombine.high %v7628_v18, %v7623_v27  ;;  %v8621_v27 = vld [vmem:[#allocation44_spill] sm:$0xff] }
 0x40e   : > { %v7832_v18 = vsel %vm8528_vm0, %v8621_v27, %v8620_v53  ;;  %v8631_v53 = vld [vmem:[#allocation73_spill] sm:$0xff]  ;;  %v3327_v27 = vpop.permute.xlu0 %3326 }
 0x40f   : > { %4575 = vrot.lane.b32.xlu0 %v8600_v14, %s5332_s9  ;;  %4545 = vrot.lane.b32.xlu1 %v3671_v39, %s5330_s10  ;;  %v7753_v39 = vrot.slane %v3707_v54, %v8533_v3  ;;  %v7768_v14 = vsel %vm8613_vm14, %v8612_v41, %v7525_v19  ;;  %v4235_v54 = vcombine.low %v7763_v10, %v7733_v17  ;;  %v3316_v32 = vpop.permute.xlu1 %3315  ;;  %vm8626_vm14 = vmmov %vm8528_vm0 }
 0x410   : > { %v3652_v19 = vcombine.high %v7607_v31, %v7599_v9  ;;  %v4219_v57 = vcombine.low %v7768_v14, %v7743_v45  ;;  %v8614_v31 = vcombine.high %v8598_v20, %v8599_v43  ;;  %v7818_v20 = vsel %vm8616_vm15, %v8615_v37, %v7528_v29  ;;  %v8622_v29 = vld [vmem:[#allocation68_spill] sm:$0xff]  ;;  %vm8629_vm15 = vmmov %vm8528_vm0 }
 0x411   : > { %v3771_v46 = vcombine.low %v7753_v39, %v7724_v34  ;;  %v7797_v9 = vrot.slane %v4235_v54, %v8533_v3  ;;  %v4216_v41 = vcombine.high %v4171_v56, %v4203_v16  ;;  %v3634_v54 = vrot.slane %v3620_v13, %v8542_v42  ;;  %v8625_v13 = vld [vmem:[#allocation79_spill] sm:$0xff]  ;;  %v8627_v37 = vld [vmem:[#allocation24_spill] sm:$0xff] }
 0x412   : > { %v7808_v15 = vrot.slane %v3652_v19, %v8542_v42  ;;  %v7811_v52 = vrot.slane %v4219_v57, %v8533_v3  ;;  %v8618_v19 = vld [vmem:[#allocation43_spill] sm:$0xff]  ;;  %v7837_v57 = vsel %vm8623_vm13, %v8622_v29, %v7496_v4  ;;  %v4164_v16 = vcombine.high %v7644_v59, %v7631_v26  ;;  %vm8636_vm13 = vmmov %vm8528_vm0 }
 0x413   : > { %4579 = vrot.lane.b32.xlu0 %v4081_v44, %s5332_s9  ;;  %4549 = vrot.lane.b32.xlu1 %v4215_v25, %s5330_s10  ;;  %v3739_v44 = vcombine.low %v7777_v2, %v7750_v23  ;;  %v7794_v25 = vrot.slane %v4251_v28, %v8533_v3  ;;  %v7805_v38 = vrot.slane %v3771_v46, %v8542_v42  ;;  %v8617_v46 = vld [vmem:[#allocation25_spill] sm:$0xff]  ;;  %s4826_s10 = ssub.s32 (%p8683_p6), 3, %s5029_s7 }
 0x414   : > { %v7827_v63 = vsel %vm8619_vm12, %v8618_v19, %v8617_v46  ;;  %v4283_v56 = vcombine.low %v7811_v52, %v7797_v9  ;;  %v8628_v46 = vld [vmem:[#allocation72_spill] sm:$0xff]  ;;  %v3859_v26 = vcombine.low %v7832_v18, %v7818_v20  ;;  %v8630_v19 = vld [vmem:[#allocation26_spill] sm:$0xff]  ;;  %vm8632_vm12 = vmmov %vm8528_vm0  ;;  %p4827_p5 = scmp.lt.s32.totalorder (%p8683_p6), %s4826_s10, 2 }
 0x415   : > { %v4315_v43 = vcombine.low %v7794_v25, %v7786_v55  ;;  %v3747_v28 = vrot.slane %v3739_v44, %v8542_v42  ;;  %v8624_v44 = vld [vmem:[#allocation23_spill] sm:$0xff]  ;;  %v7853_v4 = vsel %vm8629_vm15, %v8628_v46, %v8627_v37  ;;  %v8634_v37 = vld [vmem:[#allocation50_spill] sm:$0xff]  ;;  %vm8640_vm15 = vmmov %vm8528_vm0 }
 0x416   : > { %v4291_v48 = vrot.slane %v4283_v56, %v8542_v42  ;;  %v8644_v56 = vld [vmem:[#allocation64_spill] sm:$0xff] }
 0x417   : > { %4591 = vrot.lane.b32.xlu0 %v8614_v31, %s5333_s14  ;;  %4561 = vrot.lane.b32.xlu1 %v3672_v11, %s5331_s25  ;;  %v3338_v11 = vpop.permute.xlu1 %3337  ;;  %v7848_v31 = vsel %vm8626_vm14, %v8625_v13, %v8624_v44  ;;  %v3803_v59 = vcombine.low %v3747_v28, %v7805_v38  ;;  %v4323_v29 = vrot.slane %v4315_v43, %v8542_v42  ;;  %v8633_v13 = vld [vmem:[#allocation19_spill] sm:$0xff]  ;;  %vm8638_vm14 = vmmov %vm8528_vm0 }
 0x418   : > { %v3673_v44 = vcombine.low %v3634_v54, %v7808_v15  ;;  %v7869_v46 = vsel %vm8528_vm0, %v8634_v37, %v8633_v13  ;;  %v3827_v33 = vcombine.low %v7848_v31, %v7827_v63  ;;  %v4178_v43 = vrot.slane %v4164_v16, %v8542_v42  ;;  %v8637_v37 = vld [vmem:[#allocation62_spill] sm:$0xff] }
 0x419   : > { %v7886_v13 = vrot.slane %v3859_v26, %v8533_v3  ;;  %v7890_v30 = vsel %vm8638_vm14, %v8637_v37, %v3327_v27  ;;  %v4347_v27 = vcombine.low %v4291_v48, %v4323_v29  ;;  %vm8648_vm14 = vmmov %vm8528_vm0 }
 0x41a   : > { %v7909_v37 = vrot.slane %v3827_v33, %v8533_v3 }
 0x41b   : > { %4595 = vrot.lane.b32.xlu0 %v4082_v40, %s5333_s14  ;;  %4565 = vrot.lane.b32.xlu1 %v4216_v41, %s5331_s25  ;;  %v7861_v40 = vsel %vm8632_vm12, %v8631_v53, %v8630_v19  ;;  %v4210_v41 = vrot.slane %v4196_v24, %v8542_v42  ;;  %v8635_v19 = vld [vmem:[#allocation63_spill] sm:$0xff]  ;;  %v3811_v24 = vcombine.low %v7869_v46, %v7853_v4  ;;  %vm8642_vm12 = vmmov %vm8528_vm0 }
 0x41c   : > { %v3843_v60 = vcombine.low %v7861_v40, %v7837_v57  ;;  %v7877_v53 = vsel %vm8636_vm13, %v8635_v19, %v3338_v11  ;;  %v8639_v11 = vld [vmem:[#allocation81_spill] sm:$0xff]  ;;  %v7899_v16 = vsel %vm8642_vm12, %v8641_v21, %v3316_v32  ;;  %vm8646_vm13 = vmmov %vm8528_vm0 }
 0x41d   : > { %v7895_v19 = vsel %vm8640_vm15, %v8639_v11, %v7716_v1  ;;  %8643 = vst [vmem:[#allocation22_spill] sm:$0xff] %v7899_v16  ;;  %v4403_v26 = vcombine.low %v7899_v16, %v7877_v53  ;;  %v8645_v11 = vld [vmem:[#allocation80_spill] sm:$0xff]  ;;  %v8647_v32 = vld [vmem:[#allocation45_spill] sm:$0xff]  ;;  %vm8650_vm15 = vmmov %vm8528_vm0 }
 0x41e   : > { %v7912_v1 = vrot.slane %v3843_v60, %v8533_v3  ;;  %v7916_v21 = vsel %vm8646_vm13, %v8645_v11, %v3305_v35  ;;  %v3772_v35 = vcombine.high %v7753_v39, %v7724_v34  ;;  %v7941_v11 = vrot.slane %v3811_v24, %v8533_v3 }
 0x41f   : > { %4607 = vrot.lane.b32.xlu0 %v3803_v59, %s5334_s22  ;;  %4577 = vrot.lane.b32.xlu1 %v3673_v44, %s5332_s9  ;;  %v7904_v59 = vsel %vm8528_vm0, %v8644_v56, %v7745_v5  ;;  %v4217_v44 = vcombine.low %v4178_v43, %v4210_v41  ;;  %v7921_v5 = vsel %vm8648_vm14, %v8647_v32, %v7653_v22  ;;  %v8649_v56 = vld [vmem:[#allocation74_spill] sm:$0xff] }
 0x420   : > { %v7926_v16 = vsel %vm8650_vm15, %v8649_v56, %v7675_v12  ;;  %v4387_v33 = vcombine.low %v7916_v21, %v7890_v30  ;;  %v4371_v60 = vcombine.low %v7921_v5, %v7895_v19  ;;  %v3907_v12 = vcombine.low %v7912_v1, %v7886_v13 }
 0x421   : > { %8651 = vst [vmem:[#allocation69_spill] sm:$0xff] %v7926_v16  ;;  %v4355_v22 = vcombine.low %v7926_v16, %v7904_v59  ;;  %v7944_v32 = vrot.slane %v4403_v26, %v8533_v3  ;;  %v3674_v56 = vcombine.high %v3634_v54, %v7808_v15  ;;  %v3875_v34 = vcombine.low %v7941_v11, %v7909_v37 }
 0x422   : > { %v7953_v39 = vrot.slane %v4387_v33, %v8533_v3  ;;  %v7956_v16 = vrot.slane %v4371_v60, %v8533_v3  ;;  %v3786_v15 = vrot.slane %v3772_v35, %v8542_v42  ;;  %v4218_v54 = vcombine.high %v4178_v43, %v4210_v41 }
 0x423   : > { %4581 = vrot.lane.b32.xlu1 %v4217_v44, %s5332_s9  ;;  %4611 = vrot.lane.b32.xlu0 %v4347_v27, %s5334_s22  ;;  %v3804_v44 = vcombine.high %v3747_v28, %v7805_v38  ;;  %v3740_v27 = vcombine.high %v7777_v2, %v7750_v23  ;;  %v7962_v38 = vrot.slane %v4355_v22, %v8533_v3 }
 0x424   : > { %v3915_v23 = vrot.slane %v3907_v12, %v8542_v42  ;;  %v4316_v2 = vcombine.high %v7794_v25, %v7786_v55  ;;  %v4451_v28 = vcombine.low %v7953_v39, %v7944_v32  ;;  %v4348_v24 = vcombine.high %v4291_v48, %v4323_v29 }
 0x425   : > { %v3754_v26 = vrot.slane %v3740_v27, %v8542_v42  ;;  %v3883_v33 = vrot.slane %v3875_v34, %v8542_v42  ;;  %v4284_v60 = vcombine.high %v7811_v52, %v7797_v9  ;;  %v4419_v35 = vcombine.low %v7962_v38, %v7956_v16 }
 0x426   : > { %v3724_v55 = vcombine.high %v7664_v50, %v7641_v49  ;;  %v4330_v25 = vrot.slane %v4316_v2, %v8542_v42  ;;  %v4459_v48 = vrot.slane %v4451_v28, %v8542_v42  ;;  %v3692_v43 = vcombine.high %v7682_v61, %v7658_v36 }
 0x427   : > { %4593 = vrot.lane.b32.xlu1 %v3674_v56, %s5333_s14  ;;  %4623 = vrot.lane.b32.xlu0 %v3804_v44, %s5335_s23  ;;  %v3939_v41 = vcombine.low %v3883_v33, %v3915_v23  ;;  %v3805_v29 = vcombine.low %v3754_v26, %v3786_v15  ;;  %v3708_v9 = vcombine.high %v7694_v58, %v7669_v7 }
 0x428   : > { %v4298_v52 = vrot.slane %v4284_v60, %v8542_v42  ;;  %v4427_v22 = vrot.slane %v4419_v35, %v8542_v42  ;;  %v3676_v49 = vcombine.high %v7702_v8, %v7687_v62  ;;  %v7992_v50 = vrot.slane %v3724_v55, %v8533_v3 }
 0x429   : > { %v4268_v36 = vcombine.high %v7738_v47, %v7710_v6  ;;  %v7997_v7 = vrot.slane %v3692_v43, %v8533_v3  ;;  %v8000_v58 = vrot.slane %v3708_v9, %v8533_v3  ;;  %v4252_v56 = vcombine.high %v7758_v51, %v7728_v0 }
 0x42a   : > { %v4349_v61 = vcombine.low %v4298_v52, %v4330_v25  ;;  %v4483_v12 = vcombine.low %v4427_v22, %v4459_v48  ;;  %v4236_v62 = vcombine.high %v7763_v10, %v7733_v17  ;;  %v8009_v8 = vrot.slane %v3676_v49, %v8533_v3 }
 0x42b   : > { %4597 = vrot.lane.b32.xlu1 %v4218_v54, %s5333_s14  ;;  %4627 = vrot.lane.b32.xlu0 %v4348_v24, %s5335_s23  ;;  %v3787_v6 = vcombine.low %v8000_v58, %v7992_v50  ;;  %v4220_v47 = vcombine.high %v7768_v14, %v7743_v45  ;;  %v3908_v44 = vcombine.high %v7912_v1, %v7886_v13 }
 0x42c   : > { %v8018_v0 = vrot.slane %v4268_v36, %v8533_v3  ;;  %v3806_v17 = vcombine.high %v3754_v26, %v3786_v15  ;;  %v3940_v51 = vcombine.high %v3883_v33, %v3915_v23  ;;  %v3755_v10 = vcombine.low %v8009_v8, %v7997_v7 }
 0x42d   : > { %v3876_v27 = vcombine.high %v7941_v11, %v7909_v37  ;;  %v8025_v34 = vrot.slane %v4252_v56, %v8533_v3  ;;  %v8028_v2 = vrot.slane %v4236_v62, %v8533_v3  ;;  %v3795_v45 = vrot.slane %v3787_v6, %v8542_v42 }
 0x42e   : > { %v8034_v14 = vrot.slane %v4220_v47, %v8533_v3  ;;  %v3922_v13 = vrot.slane %v3908_v44, %v8542_v42  ;;  %v4452_v1 = vcombine.high %v7953_v39, %v7944_v32  ;;  %v4350_v11 = vcombine.high %v4298_v52, %v4330_v25  ;;  %v8652_v25 = vld [vmem:[#allocation22_spill] sm:$0xff] }
 0x42f   : > { %4609 = vrot.lane.b32.xlu1 %v3939_v41, %s5334_s22  ;;  %4639 = vrot.lane.b32.xlu0 %v3805_v29, %s5336_s6  ;;  %v4331_v37 = vcombine.low %v8025_v34, %v8018_v0  ;;  %v4484_v15 = vcombine.high %v4427_v22, %v4459_v48  ;;  %v3763_v23 = vrot.slane %v3755_v10, %v8542_v42  ;;  %v8655_v10 = vld [vmem:[#allocation31_spill] sm:$0xff] }
 0x430   : > { %v3890_v28 = vrot.slane %v3876_v27, %v8542_v42  ;;  %v4299_v54 = vcombine.low %v8034_v14, %v8028_v2  ;;  %v4420_v24 = vcombine.high %v7962_v38, %v7956_v16  ;;  %v3860_v26 = vcombine.high %v7832_v18, %v7818_v20 }
 0x431   : > { %v4339_v32 = vrot.slane %v4331_v37, %v8542_v42  ;;  %v4466_v39 = vrot.slane %v4452_v1, %v8542_v42  ;;  %v3807_v33 = vcombine.low %v3763_v23, %v3795_v45  ;;  %v3844_v35 = vcombine.high %v7861_v40, %v7837_v57 }
 0x432   : > { %v3941_v60 = vcombine.low %v3890_v28, %v3922_v13  ;;  %v3828_v55 = vcombine.high %v7848_v31, %v7827_v63  ;;  %v4307_v16 = vrot.slane %v4299_v54, %v8542_v42  ;;  %v4434_v38 = vrot.slane %v4420_v24, %v8542_v42 }
 0x433   : > { %4643 = vrot.lane.b32.xlu0 %v4349_v61, %s5336_s6  ;;  %4613 = vrot.lane.b32.xlu1 %v4483_v12, %s5334_s22  ;;  %v3874_v20 = vrot.slane %v3860_v26, %v8533_v3  ;;  %v3812_v18 = vcombine.high %v7869_v46, %v7853_v4  ;;  %v4404_v48 = vcombine.high %v8652_v25, %v7877_v53  ;;  %v8653_v46 = vld [vmem:[#allocation69_spill] sm:$0xff]  ;;  %v8661_v25 = vld [vmem:[#allocation59_spill] sm:$0xff] }
 0x434   : > { %v4351_v57 = vcombine.low %v4307_v16, %v4339_v32  ;;  %v4485_v40 = vcombine.low %v4434_v38, %v4466_v39  ;;  %v3858_v63 = vrot.slane %v3844_v35, %v8533_v3  ;;  %v3842_v31 = vrot.slane %v3828_v55, %v8533_v3  ;;  %v8658_v55 = vld [vmem:[#allocation30_spill] sm:$0xff] }
 0x435   : > { %v4388_v41 = vcombine.high %v7916_v21, %v7890_v30  ;;  %v4372_v29 = vcombine.high %v7921_v5, %v7895_v19  ;;  %v3788_v4 = vcombine.high %v8000_v58, %v7992_v50  ;;  %v4356_v53 = vcombine.high %v8653_v46, %v7904_v59 }
 0x436   : > { %v3923_v43 = vcombine.low %v3858_v63, %v3874_v20  ;;  %v3826_v9 = vrot.slane %v3812_v18, %v8533_v3  ;;  %v4418_v52 = vrot.slane %v4404_v48, %v8533_v3  ;;  %v3808_v22 = vcombine.high %v3763_v23, %v3795_v45  ;;  %v8662_v48 = vld [vmem:[#allocation61_spill] sm:$0xff] }
 0x437   : > { %4655 = vrot.lane.b32.xlu0 %v3806_v17, %s5337_s8  ;;  %4625 = vrot.lane.b32.xlu1 %v3940_v51, %s5335_s23  ;;  %v3942_v30 = vcombine.high %v3890_v28, %v3922_v13  ;;  %v3756_v19 = vcombine.high %v8009_v8, %v7997_v7  ;;  %v4402_v5 = vrot.slane %v4388_v41, %v8533_v3  ;;  %v8654_v51 = vld [vmem:[#allocation32_spill] sm:$0xff]  ;;  %v4496_v28 = vpop.permute.xlu0 %4495 }
 0x438   : > { %v3891_v21 = vcombine.low %v3826_v9, %v3842_v31  ;;  %v4386_v49 = vrot.slane %v4372_v29, %v8533_v3  ;;  %v3802_v59 = vrot.slane %v3788_v4, %v8542_v42  ;;  %v4370_v50 = vrot.slane %v4356_v53, %v8533_v3 }
 0x439   : > { %v3931_v36 = vrot.slane %v3923_v43, %v8542_v42  ;;  %v4332_v61 = vcombine.high %v8025_v34, %v8018_v0  ;;  %v4467_v12 = vcombine.low %v4402_v5, %v4418_v52  ;;  %v4352_v7 = vcombine.high %v4307_v16, %v4339_v32  ;;  %v8659_v16 = vld [vmem:[#allocation36_spill] sm:$0xff] }
 0x43a   : > { %v4486_v58 = vcombine.high %v4434_v38, %v4466_v39  ;;  %v3770_v56 = vrot.slane %v3756_v19, %v8542_v42  ;;  %v3899_v62 = vrot.slane %v3891_v21, %v8542_v42  ;;  %v4300_v8 = vcombine.high %v8034_v14, %v8028_v2 }
 0x43b   : > { %4659 = vrot.lane.b32.xlu0 %v4350_v11, %s5337_s8  ;;  %4629 = vrot.lane.b32.xlu1 %v4484_v15, %s5335_s23  ;;  %v4435_v6 = vcombine.low %v4370_v50, %v4386_v49  ;;  %v4346_v3 = vrot.slane %v4332_v61, %v8542_v42  ;;  %v4475_v47 = vrot.slane %v4467_v12, %v8542_v42 }
 0x43c   : > { %v3809_v0 = vcombine.low %v3770_v56, %v3802_v59  ;;  %v3943_v17 = vcombine.low %v3899_v62, %v3931_v36  ;;  %v8656_v27 = vcombine.low %v8654_v51, %v8655_v10  ;;  %v4314_v45 = vrot.slane %v4300_v8, %v8542_v42 }
 0x43d   : > { %v4443_v2 = vrot.slane %v4435_v6, %v8542_v42  ;;  %v3924_v37 = vcombine.high %v3858_v63, %v3874_v20  ;;  %v3810_v1 = vcombine.high %v3770_v56, %v3802_v59  ;;  %v3944_v11 = vcombine.high %v3899_v62, %v3931_v36 }
 0x43e   : > { %v4353_v14 = vcombine.low %v4314_v45, %v4346_v3  ;;  %v3892_v15 = vcombine.high %v3826_v9, %v3842_v31  ;;  %v4468_v54 = vcombine.high %v4402_v5, %v4418_v52  ;;  %v4354_v24 = vcombine.high %v4314_v45, %v4346_v3 }
 0x43f   : > { %4671 = vrot.lane.b32.xlu0 %v3807_v33, %s5338_s20  ;;  %4641 = vrot.lane.b32.xlu1 %v3941_v60, %s5336_s6  ;;  %v4487_v13 = vcombine.low %v4443_v2, %v4475_v47  ;;  %v3938_v23 = vrot.slane %v3924_v37, %v8542_v42  ;;  %v4488_v26 = vcombine.high %v4443_v2, %v4475_v47 }
 0x440   : > { %v3906_v32 = vrot.slane %v3892_v15, %v8542_v42  ;;  %v4436_v39 = vcombine.high %v4370_v50, %v4386_v49  ;;  %v4482_v33 = vrot.slane %v4468_v54, %v8542_v42  ;;  %v8660_v38 = vcombine.low %v8658_v55, %v8659_v16 }
 0x442   : > { %v3945_v35 = vcombine.low %v3906_v32, %v3938_v23  ;;  %v4450_v18 = vrot.slane %v4436_v39, %v8542_v42  ;;  %v3946_v4 = vcombine.high %v3906_v32, %v3938_v23 }
 0x443   : > { %4675 = vrot.lane.b32.xlu0 %v4351_v57, %s5338_s20  ;;  %4645 = vrot.lane.b32.xlu1 %v4485_v40, %s5336_s6  ;;  %v8663_v57 = vcombine.low %v8661_v25, %v8662_v48 }
 0x444   : > { %v4489_v31 = vcombine.low %v4450_v18, %v4482_v33  ;;  %v4490_v53 = vcombine.high %v4450_v18, %v4482_v33 }
 0x445   : > { %v4731_v40 = vsel %vm2560_vm1, %v8663_v57, %v4496_v28 }
 0x447   : > { %4687 = vrot.lane.b32.xlu0 %v3808_v22, %s5339_s11  ;;  %4657 = vrot.lane.b32.xlu1 %v3942_v30, %s5337_s8  ;;  %v8664_v22 = vld [vmem:[#allocation35_spill] sm:$0xff]  ;;  %v8665_v30 = vld [vmem:[#allocation21_spill] sm:$0xff] }
 0x448   : > { %v8666_v19 = vcombine.low %v8664_v22, %v8665_v30 }
 0x44b   : > { %4691 = vrot.lane.b32.xlu0 %v4352_v7, %s5339_s11  ;;  %4661 = vrot.lane.b32.xlu1 %v4486_v58, %s5337_s8 }
 0x44d   : > { %v4498_v44 = vpop.permute.xlu1 %4497 }
 0x44e   : > { %v4732_v34 = vsel %vm2560_vm1, %v8656_v27, %v4498_v44 }
 0x44f   : > { %4703 = vrot.lane.b32.xlu0 %v3809_v0, %s5340_s29  ;;  %4673 = vrot.lane.b32.xlu1 %v3943_v17, %s5338_s20 }
 0x453   : > { %4707 = vrot.lane.b32.xlu0 %v4353_v14, %s5340_s29  ;;  %4677 = vrot.lane.b32.xlu1 %v4487_v13, %s5338_s20 }
 0x457   : > { %4719 = vrot.lane.b32.xlu0 %v3810_v1, %s8657_s13  ;;  %4689 = vrot.lane.b32.xlu1 %v3944_v11, %s5339_s11 }
 0x45b   : > { %4723 = vrot.lane.b32.xlu0 %v4354_v24, %s8657_s13  ;;  %4693 = vrot.lane.b32.xlu1 %v4488_v26, %s5339_s11 }
 0x45d   : > { %v4500_v60 = vpop.permute.xlu0 %4499 }
 0x45e   : > { %v4733_v20 = vsel %vm2560_vm1, %v8660_v38, %v4500_v60 }
 0x45f   : > { %4705 = vrot.lane.b32.xlu1 %v3945_v35, %s5340_s29 }
 0x461   : > { %v4512_v63 = vpop.permute.xlu0 %4511 }
 0x462   : > { %v4735_v41 = vsel %vm2565_vm2, %v4731_v40, %v4512_v63 }
 0x463   : > { %4709 = vrot.lane.b32.xlu1 %v4489_v31, %s5340_s29 }
 0x465   : > { %v4516_v29 = vpop.permute.xlu0 %4515 }
 0x466   : > { %v4737_v46 = vsel %vm2565_vm2, %v4733_v20, %v4516_v29 }
 0x467   : > { %4721 = vrot.lane.b32.xlu1 %v3946_v4, %s8657_s13 }
 0x469   : > { %v4528_v42 = vpop.permute.xlu0 %4527 }
 0x46a   : > { %v4739_v43 = vsel %vm2570_vm3, %v4735_v41, %v4528_v42 }
 0x46b   : > { %4725 = vrot.lane.b32.xlu1 %v4490_v53, %s8657_s13 }
 0x46d   : > { %v4502_v9 = vpop.permute.xlu1 %4501  ;;  %v4532_v52 = vpop.permute.xlu0 %4531 }
 0x46e   : > { %v4734_v21 = vsel %vm2560_vm1, %v8666_v19, %v4502_v9  ;;  %v4741_v5 = vsel %vm2570_vm3, %v4737_v46, %v4532_v52  ;;  %vm8667_vm1 = vcmask 195584  }
 0x46f   : > { %vm8675_vm14 = vmmov %vm8667_vm1 }
 0x471   : > { %v4514_v49 = vpop.permute.xlu1 %4513  ;;  %v4544_v59 = vpop.permute.xlu0 %4543 }
 0x472   : > { %v4736_v50 = vsel %vm2565_vm2, %v4732_v34, %v4514_v49  ;;  %v4743_v36 = vsel %vm2575_vm4, %v4739_v43, %v4544_v59 }
 0x475   : > { %v4518_v61 = vpop.permute.xlu1 %4517  ;;  %v4548_v12 = vpop.permute.xlu0 %4547 }
 0x476   : > { %v4738_v7 = vsel %vm2565_vm2, %v4734_v21, %v4518_v61  ;;  %v4745_v58 = vsel %vm2575_vm4, %v4741_v5, %v4548_v12  ;;  %vm8668_vm2 = vcmask 211968  }
 0x477   : > { %vm8672_vm12 = vmmov %vm8668_vm2 }
 0x478   : > { %vm8676_vm15 = vmmov %vm8668_vm2 }
 0x479   : > { %v4530_v56 = vpop.permute.xlu1 %4529  ;;  %v4560_v62 = vpop.permute.xlu0 %4559 }
 0x47a   : > { %v4740_v8 = vsel %vm2570_vm3, %v4736_v50, %v4530_v56  ;;  %v4747_v6 = vsel %vm2580_vm5, %v4743_v36, %v4560_v62 }
 0x47d   : > { %v4534_v3 = vpop.permute.xlu1 %4533  ;;  %v4564_v47 = vpop.permute.xlu0 %4563 }
 0x47e   : > { %v4742_v44 = vsel %vm2570_vm3, %v4738_v7, %v4534_v3  ;;  %v4749_v0 = vsel %vm2580_vm5, %v4745_v58, %v4564_v47  ;;  %vm8669_vm3 = vcmask 228352  }
 0x47f   : > { %vm8673_vm0 = vmmov %vm8669_vm3 }
 0x481   : > { %v4546_v17 = vpop.permute.xlu1 %4545  ;;  %v4576_v51 = vpop.permute.xlu0 %4575 }
 0x482   : > { %v4744_v10 = vsel %vm2575_vm4, %v4740_v8, %v4546_v17  ;;  %v4751_v4 = vsel %vm2585_vm6, %v4747_v6, %v4576_v51 }
 0x485   : > { %v4550_v27 = vpop.permute.xlu1 %4549  ;;  %v4580_v34 = vpop.permute.xlu0 %4579 }
 0x486   : > { %v4746_v45 = vsel %vm2575_vm4, %v4742_v44, %v4550_v27  ;;  %v4753_v52 = vsel %vm2585_vm6, %v4749_v0, %v4580_v34  ;;  %vm8670_vm4 = vcmask 244736  }
 0x487   : > { %vm8674_vm13 = vmmov %vm8670_vm4 }
 0x489   : > { %v4562_v2 = vpop.permute.xlu1 %4561  ;;  %v4592_v14 = vpop.permute.xlu0 %4591 }
 0x48a   : > { %v4748_v13 = vsel %vm2580_vm5, %v4744_v10, %v4562_v2  ;;  %v4755_v53 = vsel %vm2590_vm7, %v4751_v4, %v4592_v14 }
 0x48d   : > { %v4566_v37 = vpop.permute.xlu1 %4565  ;;  %v4596_v1 = vpop.permute.xlu0 %4595 }
 0x48e   : > { %v4750_v11 = vsel %vm2580_vm5, %v4746_v45, %v4566_v37  ;;  %v4757_v21 = vsel %vm2590_vm7, %v4753_v52, %v4596_v1  ;;  %vm8671_vm5 = vmmov %vm8667_vm1 }
 0x491   : > { %v4578_v15 = vpop.permute.xlu1 %4577  ;;  %v4608_v23 = vpop.permute.xlu0 %4607 }
 0x492   : > { %v4759_v43 = vsel %vm2595_vm8, %v4755_v53, %v4608_v23  ;;  %v4752_v17 = vsel %vm2585_vm6, %v4748_v13, %v4578_v15 }
 0x495   : > { %v4582_v28 = vpop.permute.xlu1 %4581  ;;  %v4612_v54 = vpop.permute.xlu0 %4611 }
 0x496   : > { %v4761_v49 = vsel %vm2595_vm8, %v4757_v21, %v4612_v54  ;;  %v4754_v45 = vsel %vm2585_vm6, %v4750_v11, %v4582_v28  ;;  %vm8678_vm6 = vmmov %vm8670_vm4 }
 0x499   : > { %v4594_v24 = vpop.permute.xlu1 %4593  ;;  %v4624_v26 = vpop.permute.xlu0 %4623 }
 0x49a   : > { %v4763_v9 = vsel %vm2600_vm9, %v4759_v43, %v4624_v26  ;;  %v4756_v10 = vsel %vm2590_vm7, %v4752_v17, %v4594_v24 }
 0x49d   : > { %v4598_v32 = vpop.permute.xlu1 %4597  ;;  %v4628_v39 = vpop.permute.xlu0 %4627 }
 0x49e   : > { %v4765_v50 = vsel %vm2600_vm9, %v4761_v49, %v4628_v39  ;;  %v4758_v37 = vsel %vm2590_vm7, %v4754_v45, %v4598_v32  ;;  %vm8679_vm7 = vmmov %vm8671_vm5 }
 0x4a1   : > { %v4610_v33 = vpop.permute.xlu1 %4609  ;;  %v4640_v60 = vpop.permute.xlu0 %4639 }
 0x4a2   : > { %v4767_v22 = vsel %vm2605_vm10, %v4763_v9, %v4640_v60  ;;  %v4760_v27 = vsel %vm2595_vm8, %v4756_v10, %v4610_v33 }
 0x4a5   : > { %v4614_v35 = vpop.permute.xlu1 %4613  ;;  %v4644_v55 = vpop.permute.xlu0 %4643 }
 0x4a6   : > { %v4769_v61 = vsel %vm2605_vm10, %v4765_v50, %v4644_v55  ;;  %v4762_v23 = vsel %vm2595_vm8, %v4758_v37, %v4614_v35  ;;  %vm8680_vm8 = vmmov %vm8668_vm2 }
 0x4a9   : > { %v4626_v16 = vpop.permute.xlu1 %4625  ;;  %v4656_v38 = vpop.permute.xlu0 %4655 }
 0x4aa   : > { %v4771_v5 = vsel %vm2610_vm11, %v4767_v22, %v4656_v38  ;;  %v4764_v34 = vsel %vm2600_vm9, %v4760_v27, %v4626_v16 }
 0x4ad   : > { %v4630_v20 = vpop.permute.xlu1 %4629  ;;  %v4660_v18 = vpop.permute.xlu0 %4659 }
 0x4ae   : > { %v4773_v56 = vsel %vm2610_vm11, %v4769_v61, %v4660_v18  ;;  %v4766_v15 = vsel %vm2600_vm9, %v4762_v23, %v4630_v20  ;;  %vm8681_vm9 = vmmov %vm8673_vm0 }
 0x4b1   : > { %v4642_v25 = vpop.permute.xlu1 %4641  ;;  %v4672_v48 = vpop.permute.xlu0 %4671 }
 0x4b2   : > { %v4775_v59 = vsel %vm8667_vm1, %v4771_v5, %v4672_v48  ;;  %v4768_v2 = vsel %vm2605_vm10, %v4764_v34, %v4642_v25  ;;  %vm8677_vm1 = vmmov %vm8673_vm0 }
 0x4b5   : > { %v4646_v57 = vpop.permute.xlu1 %4645  ;;  %v4676_v40 = vpop.permute.xlu0 %4675 }
 0x4b6   : > { %v4777_v8 = vsel %vm8671_vm5, %v4773_v56, %v4676_v40  ;;  %v4770_v24 = vsel %vm2605_vm10, %v4766_v15, %v4646_v57  ;;  %vm8682_vm10 = vmmov %vm8670_vm4 }
 0x4b9   : > { %v4658_v63 = vpop.permute.xlu1 %4657  ;;  %v4688_v31 = vpop.permute.xlu0 %4687 }
 0x4ba   : > { %v4779_v36 = vsel %vm8668_vm2, %v4775_v59, %v4688_v31  ;;  %v4772_v1 = vsel %vm2610_vm11, %v4768_v2, %v4658_v63  ;;  %vm4812_vm2 = vcmask 523520  }
 0x4bd   : > { %v4662_v41 = vpop.permute.xlu1 %4661  ;;  %v4692_v29 = vpop.permute.xlu0 %4691 }
 0x4be   : > { %v4781_v6 = vsel %vm8672_vm12, %v4777_v8, %v4692_v29  ;;  %v4774_v26 = vsel %vm2610_vm11, %v4770_v24, %v4662_v41 }
 0x4c1   : > { %v4674_v46 = vpop.permute.xlu1 %4673  ;;  %v4704_v42 = vpop.permute.xlu0 %4703 }
 0x4c2   : > { %v4783_v12 = vsel %vm8669_vm3, %v4779_v36, %v4704_v42  ;;  %v4776_v13 = vsel %vm8675_vm14, %v4772_v1, %v4674_v46 }
 0x4c5   : > { %v4678_v30 = vpop.permute.xlu1 %4677  ;;  %v4708_v19 = vpop.permute.xlu0 %4707 }
 0x4c6   : > { %v4785_v3 = vsel %vm8673_vm0, %v4781_v6, %v4708_v19  ;;  %v4778_v39 = vsel %vm8679_vm7, %v4774_v26, %v4678_v30 }
 0x4c9   : > { %v4690_v7 = vpop.permute.xlu1 %4689  ;;  %v4720_v58 = vpop.permute.xlu0 %4719 }
 0x4ca   : > { %v4787_v62 = vsel %vm8670_vm4, %v4783_v12, %v4720_v58  ;;  %v4780_v54 = vsel %vm8676_vm15, %v4776_v13, %v4690_v7 }
 0x4cb   : > { %4800 = vrot.lane.b32.xlu0 %v4787_v62, %s5342_s26 }
 0x4cd   : > { %v4694_v47 = vpop.permute.xlu1 %4693  ;;  %v4724_v44 = vpop.permute.xlu0 %4723 }
 0x4ce   : > { %v4789_v0 = vsel %vm8674_vm13, %v4785_v3, %v4724_v44  ;;  %v4782_v33 = vsel %vm8680_vm8, %v4778_v39, %v4694_v47 }
 0x4cf   : > { %4804 = vrot.lane.b32.xlu0 %v4789_v0, %s5342_s26 }
 0x4d1   : > { %v4706_v51 = vpop.permute.xlu1 %4705 }
 0x4d2   : > { %v4784_v11 = vsel %vm8677_vm1, %v4780_v54, %v4706_v51 }
 0x4d5   : > { %v4710_v14 = vpop.permute.xlu1 %4709 }
 0x4d6   : > { %v4786_v60 = vsel %vm8681_vm9, %v4782_v33, %v4710_v14 }
 0x4d9   : > { %v4722_v28 = vpop.permute.xlu1 %4721 }
 0x4da   : > { %v4788_v32 = vsel %vm8678_vm6, %v4784_v11, %v4722_v28 }
 0x4db   : > { %4802 = vrot.lane.b32.xlu1 %v4788_v32, %s5342_s26 }
 0x4dd   : > { %v4726_v35 = vpop.permute.xlu1 %4725 }
 0x4de   : > { %v4790_v55 = vsel %vm8682_vm10, %v4786_v60, %v4726_v35 }
 0x4df   : > { %4806 = vrot.lane.b32.xlu1 %v4790_v55, %s5342_s26 }
 0x53d   : > { %v4801_v16 = vpop.permute.xlu0 %4800 }
 0x53e   : > { %4813 = vst.msk [vmem:[%s6940_s30] sm:$0xff] %vm4812_vm2, %v4801_v16 }
 0x541   : > { %v4805_v38 = vpop.permute.xlu0 %4804 }
 0x542   : > { %4815 = vst.msk [vmem:[%s6940_s30 + $0x10] sm:$0xff] %vm4812_vm2, %v4805_v38 }
 0x54d   : > { %v4803_v20 = vpop.permute.xlu1 %4802 }
 0x54e   : > { %4814 = vst.msk [vmem:[%s6940_s30 + $0x8] sm:$0xff] %vm4812_vm2, %v4803_v20  ;;  %4824 = sbr.rel (!%p8683_p6) target bundleno = 1390 (0x56e), region = 56 }
 0x551   : > { %v4807_v18 = vpop.permute.xlu1 %4806 }
 0x552   : > { %4816 = vst.msk [vmem:[%s6940_s30 + $0x18] sm:$0xff] %vm4812_vm2, %v4807_v18 }
 0x553   : > { %s8699_s10 = smov (!%p4827_p5, %s4826_s10), 2 }
 0x554   : > { %s8201_s25 = sshll.u32 %s8699_s10, 8 }
 0x555   : > { %s4832_s9 = ssub.s32 512, %s8201_s25 }
 0x556   : > { %4833 = vsyncadd %s4818_s5, %s4832_s9  ;;  %p5032_p13 = scmp.ne.s32.totalorder %s8201_s25, 0  ;;  %s5062_s27 = sshll.u32 %s5392_s19, 9 }
 0x557   : > { %s8211_s23 = scalar_lea.hbm %s8263_s4, %s5062_s27  ;;  %s4840_s6 = sshll.u32 %s6940_s30, 4  ;;  %s8214_s6 = int_to_ptr.vmem [resolvable:$true] %s4840_s6 }
 0x558   : > { %s5239_s8 = scalar_lea.vmem %s8214_s6, %s8201_s25  ;;  %s5343_s20 = smov [#allocation10]  }
 0x559   : > { %p5240_p4 = scmp.ne.s32.totalorder %s8214_s6, %s5239_s8  ;;  %s5243_s11 = sshll.u32 %s5343_s20, 4  ;;  %s5244_s11 = int_to_ptr.vmem [resolvable:$false] %s5243_s11 }
 0x55a   : > { %s5245_s19 = scalar_lea.vmem %s5244_s11, 1024  ;;  %p5246_p8 = scmp.lt.s32.totalorder %s8214_s6, %s5244_s11 }
 0x55b   : > { %p5241_p2 = pnand %p5240_p4, %p5032_p13  ;;  %p5247_p0 = scmp.lt.s32.totalorder %s5245_s19, %s5239_s8 }
 0x55d   : > { %p5242_p7 = pneg %p5241_p2  ;;  %p5248_p12 = por %p5247_p0, %p5246_p8 }
 0x55f   : > { %p5249_p10 = pnand %p5248_p12, %p5242_p7 }
 0x561   : > { %5252 = shalt.err (!%p5249_p10)
}
 0x562   : > { %s5253_s29 = scalar_lea.hbm %s8211_s23, %s8201_s25  ;;  %s5257_s26 = scalar_lea.hbm %s8263_s4, 768 }
 0x563   : > { %p5254_p1 = scmp.ne.s32.totalorder %s8211_s23, %s5253_s29  ;;  %p5258_p11 = scmp.lt.s32.totalorder %s8211_s23, %s8263_s4 }
 0x564   : > { %p5259_p6 = scmp.lt.s32.totalorder %s5257_s26, %s5253_s29 }
 0x565   : > { %p5255_p3 = pnand %p5254_p1, %p5032_p13 }
 0x566   : > { %p5260_p5 = por %p5259_p6, %p5258_p11 }
 0x567   : > { %p5256_p9 = pneg %p5255_p3 }
 0x569   : > { %p5261_p4 = pnand %p5260_p5, %p5256_p9 }
 0x56b   : > { %5264 = shalt.err (!%p5261_p4)
}
 0x56c   : > { %s5344_s9 = smov 128   ;;  %s5345_s27 = smov 8  }
 0x56d   : > { %4846 = dma.vmem_to_hbm [thread:$0]  (%p5032_p13), %s8214_s6, %s8201_s25, %s8211_s23, %s4818_s5, %s5344_s9, %s5344_s9, %s5345_s27  }
 0x56e PF: > { %s4855_s14 = sand.u32 1, %s5299_s15   ;;  %p8684_p2 = scmp.ne.s32.totalorder %s8337_s28, 0 }
 0x56f   : > { %p8685_p7 = scmp.ge.s32.totalorder %s5311_s18, 2  ;;  %s4856_s22 = scalar_lea.sflag [#allocation4], %s4855_s14 }
 0x571   : > { %p5071_p8 = pnand %p8685_p7, %p8684_p2 }
 0x573   : > { %p5072_p0 = pneg %p5071_p8 }
 0x575   : > { %5294 = dma.done.wait (%p5072_p0), %s4856_s22, 512  }
 0x576   : > { %5296 = vsyncadd (%p5072_p0), %s4856_s22, 4294966784  ;;  %p23_p12 = scmp.ge.s32.totalorder %s5396_s21, 4   ;;  %s8686_s15 = smov %s5303_s16 }
 0x577   : > { %s8687_s16 = smov %s5307_s17  ;;  %s8688_s17 = smov %s5408_s24 }
 0x578   : > { %s8689_s18 = smov %s5396_s21  ;;  %25 = sbr.rel (!%p23_p12) target bundleno = 9 (0x9), region = 118 }
 0x57d   :  { %4861 = vsyncpa [#allocation3], 1 }
 0x57e   :  { %4863 = vsyncpa [#allocation3 + $0x1], 1 }
 0x57f   :  { %4864 = vsyncpa [#allocation6], 1 }
 0x580   :  { %4866 = vsyncpa [#allocation6 + $0x1], 1 }
 0x581   :  { %4867 = vsyncpa [#allocation9], 1 }
 0x582   :  { %4869 = vsyncpa [#allocation9 + $0x1], 1 }
 0x583   :  { %4870 = vsyncpa [#allocation4], 1 }
 0x584   :  { %4872 = vsyncpa [#allocation4 + $0x1], 1 }

// kernel: tpu_custom_call.1
= control target key start
LH: loop header
LB: loop body
LE: loop exit
PB: predicated region body
PF: predicated region fallthrough
CT: control target
= control target key end

     0   :  { %s1582_s0 = inlined_call_operand.hbm [shape: f32[8,16,16], index: 0, kind: input, shape index: {}]   ;;  %s1583_s1 = inlined_call_operand.hbm [shape: f32[8,16,16], index: 1, kind: input, shape index: {}]   ;;  %s1584_s2 = inlined_call_operand.hbm [shape: f32[8,16,16], index: 2, kind: input, shape index: {}]   ;;  %s1585_s3 = inlined_call_operand.hbm [shape: f32[8,16,16], index: 3, kind: input, shape index: {}]   ;;  %s1586_s4 = inlined_call_operand.hbm [shape: f32[8,16,64], index: 4, kind: output, shape index: {}]  }
   0x1   :  { %1596 = sst [smem:[#allocation18_spill]] %s1582_s0 }
   0x2   :  { %1597 = sst [smem:[#allocation19_spill]] %s1583_s1 }
   0x3   :  { %9 = vsyncpa [#allocation3], 0 }
   0x4   :  { %11 = vsyncpa [#allocation3 + $0x1], 0 }
   0x5   :  { %12 = vsyncpa [#allocation6], 0 }
   0x6   :  { %14 = vsyncpa [#allocation6 + $0x1], 0 }
   0x7   :  { %15 = vsyncpa [#allocation9], 0 }
   0x8   :  { %17 = vsyncpa [#allocation9 + $0x1], 0 }
   0x9   :  { %18 = vsyncpa [#allocation4], 0 }
   0xa   :  { %20 = vsyncpa [#allocation4 + $0x1], 0  ;;  %s1088_s15 = smov 0   ;;  %s1090_s16 = smov 0  }
   0xb   :  { %s1092_s17 = smov 0   ;;  %s1094_s18 = smov 0  }
   0xc LB: > { %1598 = sst [smem:[#allocation15_spill]] %s1045_s17  ;;  %s1109_s19 = sadd.s32 4294967295, %s1049_s18   ;;  %s1049_s18 = sphi %s1094_s18, %s1617_s18   ;;  %s1045_s17 = sphi %s1092_s17, %s1619_s17   ;;  %s1041_s16 = sphi %s1090_s16, %s1621_s16   ;;  %s1037_s15 = sphi %s1088_s15, %s1620_s15  }
   0xd   : > { %s756_s20 = sadd.s32 4294967294, %s1049_s18   ;;  %s1113_s21 = sadd.s32 1, %s1049_s18  }
   0xe   : > { %1599 = sst [smem:[#allocation16_spill]] %s1113_s21  ;;  %s33_s22 = sadd.s32 1, %s1045_s17 }
   0xf   : > { %s30_s23 = ssub.s32 %s1049_s18, %s1113_s21  ;;  %p40_p0 = scmp.ne.s32.totalorder %s1045_s17, %s1041_s16 }
  0x10   : > { %p31_p1 = scmp.eq.s32.totalorder %s30_s23, 0  ;;  %p41_p2 = scmp.eq.s32.totalorder %s1049_s18, 0 }
  0x11   : > { %p46_p3 = scmp.ne.s32.totalorder %s1041_s16, %s1037_s15  ;;  %p47_p4 = scmp.eq.s32.totalorder %s1109_s19, 0 }
  0x12   : > { %s1125_s24 = scalar_select %p31_p1, %s1045_s17, %s33_s22  }
  0x13   : > { %p42_p5 = por %p41_p2, %p40_p0  ;;  %p1127_p6 = por %p47_p4, %p46_p3 }
  0x14   : > { %1600 = sst [smem:[#allocation17_spill]] %s1125_s24  ;;  %p148_p7 = scmp.eq.s32.totalorder %s1109_s19, 1 }
  0x15   : > { %s1601_s25 = scalar_select %p1127_p6, 1, 0 }
  0x16   : > { %p154_p8 = scmp.eq.s32.totalorder %s756_s20, 1  ;;  %p824_p10 = scmp.lt.s32.totalorder %s1049_s18, 2 }
  0x17   : > { %p1134_p11 = por %p148_p7, %p40_p0  ;;  %s1143_s28 = sand.u32 1, %s1045_s17  }
  0x18   : > { %p1138_p12 = por %p154_p8, %p46_p3  ;;  %s1146_s29 = sshll.u32 %s1049_s18, 10 }
  0x19   : > { %s1602_s26 = scalar_select %p1134_p11, 1, 0 }
  0x1a   : > { %s1603_s27 = scalar_select %p1138_p12, 1, 0 }
  0x1b   : > { %s1149_s30 = sshll.u32 %s1143_s28, 6  ;;  %p1151_p13 = pnand %p824_p10, %p42_p5 }
  0x1c   : > { %s196_s6 = sand.u32 1, %s1049_s18   ;;  %s1605_s1 = sld [smem:[#allocation19_spill]] }
  0x1d   : > { %s200_s10 = scalar_lea.vmem [#allocation5], %s1149_s30  ;;  %s1166_s12 = scalar_lea.sflag [#allocation6], %s196_s6 }
  0x1e   : > { %s208_s11 = sshll.u32 %s200_s10, 4  ;;  %p1172_p2 = pneg %p1151_p13  ;;  %s1163_s11 = int_to_ptr.vmem [resolvable:$true] %s208_s11 }
  0x22   : > { %s1160_s9 = scalar_lea.hbm %s1605_s1, %s1146_s29  ;;  %s870_s23 = scalar_lea.hbm %s1605_s1, 2048 }
  0x23   : > { %s865_s13 = scalar_lea.hbm %s1160_s9, 1024  ;;  %p871_p5 = scmp.lt.s32.totalorder %s1160_s9, %s1605_s1 }
  0x24   : > { %p866_p1 = scmp.ne.s32.totalorder %s1160_s9, %s865_s13  ;;  %p872_p7 = scmp.lt.s32.totalorder %s870_s23, %s865_s13 }
  0x26   : > { %p868_p3 = pnand %p1172_p2, %p866_p1  ;;  %p873_p8 = por %p872_p7, %p871_p5 }
  0x28   : > { %p869_p4 = pneg %p868_p3 }
  0x2a   : > { %p874_p10 = pnand %p873_p8, %p869_p4 }
  0x2c   : > { %877 = shalt.err (!%p874_p10)
}
  0x2d   : > { %s878_s6 = scalar_lea.vmem %s1163_s11, 1024  ;;  %s1051_s10 = smov [#allocation5]  }
  0x2e   : > { %p879_p9 = scmp.ne.s32.totalorder %s1163_s11, %s878_s6  ;;  %s883_s20 = sshll.u32 %s1051_s10, 4  ;;  %s884_s20 = int_to_ptr.vmem [resolvable:$false] %s883_s20 }
  0x2f   : > { %s885_s22 = scalar_lea.vmem %s884_s20, 2048  ;;  %p886_p0 = scmp.lt.s32.totalorder %s1163_s11, %s884_s20 }
  0x30   : > { %p881_p1 = pnand %p879_p9, %p1172_p2  ;;  %p887_p12 = scmp.lt.s32.totalorder %s885_s22, %s878_s6 }
  0x32   : > { %p882_p3 = pneg %p881_p1  ;;  %p888_p11 = por %p887_p12, %p886_p0 }
  0x34   : > { %p889_p6 = pnand %p888_p11, %p882_p3 }
  0x36   : > { %892 = shalt.err (!%p889_p6)
}
  0x37   : > { %s1589_s13 = smov 128   ;;  %s1591_s23 = smov 8  }
  0x38   : > { %813 = dma.hbm_to_vmem [thread:$0]  (!%p1151_p13), %s1160_s9, 1024, %s1163_s11, %s1166_s12, %s1589_s13, %s1589_s13, %s1591_s23  }
  0x39   : > { %p260_p9 = scmp.lt.s32.totalorder %s1049_s18, 3  ;;  %s1607_s0 = sld [smem:[#allocation18_spill]] }
  0x3a   : > { %p1608_p6 = scmp.ge.s32.totalorder %s1049_s18, 1  ;;  %s178_s20 = scalar_lea.vmem [#allocation2], %s1149_s30 }
  0x3b   : > { %s186_s22 = sshll.u32 %s178_s20, 4  ;;  %s175_s1 = scalar_lea.sflag [#allocation3], %s1143_s28  ;;  %s1212_s22 = int_to_ptr.vmem [resolvable:$true] %s186_s22 }
  0x3c   : > { %p1207_p11 = pnand %p1608_p6, %p260_p9 }
  0x3e   : > { %s1609_s10 = scalar_select %p1207_p11, 1, 0 }
  0x3f   : > { %s1203_s6 = scalar_lea.hbm %s1607_s0, %s1146_s29  ;;  %s898_s8 = scalar_lea.hbm %s1607_s0, 2048 }
  0x40   : > { %s893_s9 = scalar_lea.hbm %s1203_s6, 1024  ;;  %p899_p5 = scmp.lt.s32.totalorder %s1203_s6, %s1607_s0 }
  0x41   : > { %p894_p12 = scmp.ne.s32.totalorder %s1203_s6, %s893_s9  ;;  %p900_p7 = scmp.lt.s32.totalorder %s898_s8, %s893_s9 }
  0x43   : > { %p896_p0 = pnand %p894_p12, %p1172_p2  ;;  %p901_p8 = por %p900_p7, %p899_p5 }
  0x45   : > { %p897_p4 = pneg %p896_p0 }
  0x47   : > { %p902_p10 = pnand %p901_p8, %p897_p4 }
  0x49   : > { %905 = shalt.err (!%p902_p10)
}
  0x4a   : > { %s906_s20 = scalar_lea.vmem %s1212_s22, 1024  ;;  %s1054_s24 = smov [#allocation2]  }
  0x4b   : > { %p907_p1 = scmp.ne.s32.totalorder %s1212_s22, %s906_s20  ;;  %s911_s11 = sshll.u32 %s1054_s24, 4  ;;  %s912_s11 = int_to_ptr.vmem [resolvable:$false] %s911_s11 }
  0x4c   : > { %s913_s7 = scalar_lea.vmem %s912_s11, 2048  ;;  %p914_p6 = scmp.lt.s32.totalorder %s1212_s22, %s912_s11 }
  0x4d   : > { %p909_p3 = pnand %p907_p1, %p1172_p2  ;;  %p915_p12 = scmp.lt.s32.totalorder %s913_s7, %s906_s20 }
  0x4f   : > { %p910_p9 = pneg %p909_p3  ;;  %p916_p0 = por %p915_p12, %p914_p6 }
  0x51   : > { %p917_p11 = pnand %p916_p0, %p910_p9 }
  0x53   : > { %920 = shalt.err (!%p917_p11)
}
  0x54   : > { %s1610_s13 = smov 8   ;;  %s1611_s23 = smov 128  }
  0x55   : > { %810 = dma.hbm_to_vmem [thread:$0]  (!%p1151_p13), %s1203_s6, 1024, %s1212_s22, %s175_s1, %s1611_s23, %s1611_s23, %s1610_s13  }
  0x56   : > { %s1242_s8 = scalar_lea.hbm %s1584_s2, %s1146_s29  ;;  %s222_s20 = scalar_lea.vmem [#allocation7], %s1149_s30 }
  0x57   : > { %s230_s11 = sshll.u32 %s222_s20, 4  ;;  %s921_s7 = scalar_lea.hbm %s1242_s8, 1024  ;;  %s231_s11 = int_to_ptr.vmem [resolvable:$true] %s230_s11 }
  0x58   : > { %p922_p11 = scmp.ne.s32.totalorder %s1242_s8, %s921_s7  ;;  %s926_s1 = scalar_lea.hbm %s1584_s2, 2048 }
  0x59   : > { %p927_p7 = scmp.lt.s32.totalorder %s1242_s8, %s1584_s2  ;;  %p928_p8 = scmp.lt.s32.totalorder %s926_s1, %s921_s7 }
  0x5a   : > { %p924_p4 = pnand %p922_p11, %p1172_p2 }
  0x5b   : > { %p929_p10 = por %p928_p8, %p927_p7 }
  0x5c   : > { %p925_p5 = pneg %p924_p4 }
  0x5e   : > { %p930_p1 = pnand %p929_p10, %p925_p5 }
  0x60   : > { %933 = shalt.err (!%p930_p1)
}
  0x61   : > { %s934_s9 = scalar_lea.vmem %s231_s11, 1024  ;;  %s1055_s24 = smov [#allocation7]  }
  0x62   : > { %p935_p3 = scmp.ne.s32.totalorder %s231_s11, %s934_s9  ;;  %s939_s20 = sshll.u32 %s1055_s24, 4  ;;  %s940_s20 = int_to_ptr.vmem [resolvable:$false] %s939_s20 }
  0x63   : > { %s941_s21 = scalar_lea.vmem %s940_s20, 2048  ;;  %p942_p12 = scmp.lt.s32.totalorder %s231_s11, %s940_s20 }
  0x64   : > { %p937_p9 = pnand %p935_p3, %p1172_p2  ;;  %p943_p0 = scmp.lt.s32.totalorder %s941_s21, %s934_s9 }
  0x66   : > { %p938_p6 = pneg %p937_p9  ;;  %p944_p11 = por %p943_p0, %p942_p12 }
  0x68   : > { %p945_p4 = pnand %p944_p11, %p938_p6 }
  0x6a   : > { %948 = shalt.err (!%p945_p4)
}
  0x6b   : > { %816 = dma.hbm_to_vmem [thread:$0]  (!%p1151_p13), %s1242_s8, 1024, %s231_s11, %s1166_s12, %s1611_s23, %s1611_s23, %s1610_s13  }
  0x6c   : > { %s1269_s7 = scalar_lea.hbm %s1585_s3, %s1146_s29  ;;  %s244_s21 = scalar_lea.vmem [#allocation8], %s1149_s30 }
  0x6d   : > { %s252_s1 = sshll.u32 %s244_s21, 4  ;;  %s241_s6 = scalar_lea.sflag [#allocation9], %s1143_s28  ;;  %s1272_s1 = int_to_ptr.vmem [resolvable:$true] %s252_s1 }
  0x6e   : > { %s949_s22 = scalar_lea.hbm %s1269_s7, 1024  ;;  %s954_s8 = scalar_lea.hbm %s1585_s3, 2048 }
  0x6f   : > { %p950_p5 = scmp.ne.s32.totalorder %s1269_s7, %s949_s22  ;;  %p955_p10 = scmp.lt.s32.totalorder %s1269_s7, %s1585_s3 }
  0x70   : > { %p956_p1 = scmp.lt.s32.totalorder %s954_s8, %s949_s22 }
  0x71   : > { %p952_p7 = pnand %p950_p5, %p1172_p2 }
  0x72   : > { %p957_p3 = por %p956_p1, %p955_p10 }
  0x73   : > { %p953_p8 = pneg %p952_p7 }
  0x75   : > { %p958_p9 = pnand %p957_p3, %p953_p8 }
  0x77   : > { %961 = shalt.err (!%p958_p9)
}
  0x78   : > { %s962_s28 = scalar_lea.vmem %s1272_s1, 1024  ;;  %s1056_s30 = smov [#allocation8]  }
  0x79   : > { %p963_p6 = scmp.ne.s32.totalorder %s1272_s1, %s962_s28  ;;  %s967_s24 = sshll.u32 %s1056_s30, 4  ;;  %s968_s24 = int_to_ptr.vmem [resolvable:$false] %s967_s24 }
  0x7a   : > { %s969_s20 = scalar_lea.vmem %s968_s24, 2048  ;;  %p970_p11 = scmp.lt.s32.totalorder %s1272_s1, %s968_s24 }
  0x7b   : > { %p965_p12 = pnand %p963_p6, %p1172_p2  ;;  %p971_p4 = scmp.lt.s32.totalorder %s969_s20, %s962_s28 }
  0x7d   : > { %p966_p0 = pneg %p965_p12  ;;  %p972_p5 = por %p971_p4, %p970_p11 }
  0x7f   : > { %p973_p7 = pnand %p972_p5, %p966_p0 }
  0x81   : > { %976 = shalt.err (!%p973_p7)
}
  0x82   : > { %819 = dma.hbm_to_vmem [thread:$0]  (!%p1151_p13), %s1269_s7, 1024, %s1272_s1, %s241_s6, %s1611_s23, %s1611_s23, %s1610_s13  }
  0x83   : > { %p1612_p2 = scmp.ne.s32.totalorder %s1609_s10, 0 }
  0x84   : > { %s1301_s14 = sand.u32 (!%p1612_p2), 1, %s1041_s16   ;;  %p1613_p8 = scmp.ne.s32.totalorder (!%p1612_p2), %s1601_s25, 0 }
  0x85   : > { %264 = sbr.rel (%p1612_p2) target bundleno = 328 (0x148), region = 36  ;;  %s1304_s0 = sshll.u32 (!%p1612_p2), %s1301_s14, 6 }
  0x86   : > { %s267_s17 = scalar_lea.sflag (!%p1612_p2), [#allocation3], %s1301_s14  ;;  %s1308_s5 = scalar_lea.vmem (!%p1612_p2), [#allocation2], %s1304_s0 }
  0x8a   : > { %1020 = dma.done.wait (%p1613_p8), %s267_s17, 1024  }
  0x8b   : > { %1022 = vsyncadd (%p1613_p8), %s267_s17, 4294966272  ;;  %s275_s10 = sand.u32 1, %s1109_s19   ;;  %s1316_s23 = scalar_lea.vmem [#allocation5], %s1304_s0 }
  0x8c   : > { %s276_s13 = scalar_lea.sflag [#allocation6], %s275_s10 }
  0x8d   : > { %1024 = dma.done.wait (%p1613_p8), %s276_s13, 2048  }
  0x8e   : > { %1026 = vsyncadd (%p1613_p8), %s276_s13, 4294965248  ;;  %s1323_s7 = scalar_lea.vmem [#allocation7], %s1304_s0  ;;  %s294_s21 = scalar_lea.sflag [#allocation9], %s1301_s14 }
  0x8f   : > { %s1327_s1 = scalar_lea.vmem [#allocation8], %s1304_s0 }
  0x90   : > { %1028 = dma.done.wait (%p1613_p8), %s294_s21, 1024  }
  0x91   : > { %1030 = vsyncadd (%p1613_p8), %s294_s21, 4294966272  ;;  %v344_v0 = vld [vmem:[%s1308_s5 + $0x10] sm:$0xff]  ;;  %v342_v5 = vld [vmem:[%s1308_s5] sm:$0xff]  ;;  %vm470_vm0 = vcmask 130048   ;;  %s1057_s25 = smov 16   ;;  %s1415_s6 = scalar_lea.vmem [#allocation10], %s1304_s0 }
  0x92   : > { %v352_v1 = vld [vmem:[%s1316_s23 + $0x10] sm:$0xff]  ;;  %v350_v6 = vld [vmem:[%s1316_s23] sm:$0xff]  ;;  %v1350_v12 = vld [vmem:[%s1308_s5 + $0x18] sm:$0xff]  ;;  %s1058_s22 = smov 32   ;;  %s1059_s9 = smov 48   ;;  %vm511_vm1 = vcmask 261248  }
  0x93   : > { %v360_v2 = vld [vmem:[%s1323_s7 + $0x10] sm:$0xff]  ;;  %v358_v10 = vld [vmem:[%s1323_s7] sm:$0xff]  ;;  %v1361_v17 = vld [vmem:[%s1316_s23 + $0x18] sm:$0xff]  ;;  %vm552_vm2 = vcmask 392448   ;;  %vm593_vm3 = vcmask 523648   ;;  %s796_s12 = sshll.u32 %s1109_s19, 10 }
  0x94   : > { %v368_v3 = vld [vmem:[%s1327_s1 + $0x10] sm:$0xff]  ;;  %v1337_v4 = vsub.f32 %v352_v1, %v360_v2  ;;  %v1343_v8 = vadd.f32 %v360_v2, %v352_v1  ;;  %v366_v11 = vld [vmem:[%s1327_s1] sm:$0xff]  ;;  %v1354_v14 = vadd.f32 %v358_v10, %v350_v6  ;;  %v1356_v15 = vsub.f32 %v350_v6, %v358_v10  ;;  %v1364_v18 = vld [vmem:[%s1323_s7 + $0x18] sm:$0xff]  ;;  %s617_s8 = sshll.u32 %s1415_s6, 4  ;;  %s1533_s28 = scalar_lea.hbm %s1586_s4, %s796_s12  ;;  %s1535_s8 = int_to_ptr.vmem [resolvable:$true] %s617_s8 }
  0x95   : > { %v1341_v7 = vsub.f32 %v344_v0, %v368_v3  ;;  %v1345_v9 = vadd.f32 %v368_v3, %v344_v0  ;;  %v1352_v13 = vsub.f32 %v342_v5, %v366_v11  ;;  %v1358_v16 = vadd.f32 %v366_v11, %v342_v5  ;;  %v1367_v19 = vld [vmem:[%s1327_s1 + $0x18] sm:$0xff]  ;;  %v343_v24 = vld [vmem:[%s1308_s5 + $0x8] sm:$0xff]  ;;  %v346_v39 = vld [vmem:[%s1308_s5 + $0x20] sm:$0xff]  ;;  %s603_s19 = scalar_lea.sflag [#allocation4], %s1301_s14  ;;  %s977_s30 = scalar_lea.vmem %s1535_s8, 1024 }
  0x96   : > { %v1375_v22 = vsub.f32 %v1350_v12, %v1367_v19  ;;  %v1379_v23 = vsub.f32 %v1361_v17, %v1364_v18  ;;  %v351_v25 = vld [vmem:[%s1316_s23 + $0x8] sm:$0xff]  ;;  %v354_v44 = vld [vmem:[%s1316_s23 + $0x20] sm:$0xff]  ;;  %v349_v51 = vld [vmem:[%s1308_s5 + $0x38] sm:$0xff]  ;;  %p978_p13 = scmp.ne.s32.totalorder %s1535_s8, %s977_s30  ;;  %p1614_p10 = scmp.ne.s32.totalorder %s1602_s26, 0 }
  0x97   : > { %v424_v20 = vadd.f32 %v1337_v4, %v1341_v7  ;;  %v408_v21 = vsub.f32 %v1345_v9, %v1343_v8  ;;  %v359_v26 = vld [vmem:[%s1323_s7 + $0x8] sm:$0xff]  ;;  %v422_v27 = vadd.f32 %v1356_v15, %v1352_v13  ;;  %v406_v28 = vsub.f32 %v1358_v16, %v1354_v14  ;;  %v362_v45 = vld [vmem:[%s1323_s7 + $0x20] sm:$0xff]  ;;  %v357_v52 = vld [vmem:[%s1316_s23 + $0x38] sm:$0xff]  ;;  %s1060_s24 = smov [#allocation10]  }
  0x98   : > { %v367_v29 = vld [vmem:[%s1327_s1 + $0x8] sm:$0xff]  ;;  %v1389_v30 = vsub.f32 %v351_v25, %v359_v26  ;;  %v425_v35 = vadd.f32 %v1379_v23, %v1375_v22  ;;  %v370_v46 = vld [vmem:[%s1327_s1 + $0x20] sm:$0xff]  ;;  %v1409_v50 = vsub.f32 %v354_v44, %v362_v45  ;;  %v365_v53 = vld [vmem:[%s1323_s7 + $0x38] sm:$0xff]  ;;  %v438_v11 = vsub.f32 %v1352_v13, %v1356_v15  ;;  %p979_p1 = pnand %p978_p13, %p1614_p10  ;;  %s981_s20 = sshll.u32 %s1060_s24, 4  ;;  %s982_s20 = int_to_ptr.vmem [resolvable:$false] %s981_s20 }
  0x99   : > { %v347_v31 = vld [vmem:[%s1308_s5 + $0x28] sm:$0xff]  ;;  %v432_v33 = vmul.f32 0.5, %v424_v20  ;;  %v416_v34 = vmul.f32 0.5, %v408_v21  ;;  %v383_v36 = vsub.f32 %v343_v24, %v367_v29  ;;  %v430_v40 = vmul.f32 0.5, %v422_v27  ;;  %v373_v55 = vld [vmem:[%s1327_s1 + $0x38] sm:$0xff]  ;;  %v348_v57 = vld [vmem:[%s1308_s5 + $0x30] sm:$0xff]  ;;  %p984_p9 = scmp.lt.s32.totalorder %s1535_s8, %s982_s20 }
  0x9a   : > { %v355_v32 = vld [vmem:[%s1316_s23 + $0x28] sm:$0xff]  ;;  %v414_v41 = vmul.f32 0.5, %v406_v28  ;;  %v433_v47 = vmul.f32 0.5, %v425_v35  ;;  %v1407_v49 = vsub.f32 %v346_v39, %v370_v46  ;;  %v1423_v56 = vsub.f32 %v357_v52, %v365_v53  ;;  %v356_v58 = vld [vmem:[%s1316_s23 + $0x30] sm:$0xff]  ;;  %p980_p3 = pneg %p979_p1  ;;  %s983_s0 = scalar_lea.vmem %s982_s20, 2048 }
  0x9b   : > { %v363_v37 = vld [vmem:[%s1323_s7 + $0x28] sm:$0xff]  ;;  %491 = vrot.lane.b32.xlu1 %v432_v33, %s1057_s25  ;;  %v423_v48 = vadd.f32 %v1389_v30, %v383_v36  ;;  %473 = vst.msk [vmem:[%s1415_s6 + $0x10] sm:$0xff] %vm470_vm0, %v416_v34  ;;  %487 = vrot.lane.b32.xlu0 %v430_v40, %s1057_s25  ;;  %v1431_v61 = vsub.f32 %v349_v51, %v373_v55  ;;  %p985_p6 = scmp.lt.s32.totalorder %s983_s0, %s977_s30 }
  0x9c   : > { %v371_v38 = vld [vmem:[%s1327_s1 + $0x28] sm:$0xff]  ;;  %v1400_v43 = vsub.f32 %v355_v32, %v363_v37  ;;  %471 = vst.msk [vmem:[%s1415_s6] sm:$0xff] %vm470_vm0, %v414_v41  ;;  %v426_v60 = vadd.f32 %v1409_v50, %v1407_v49  ;;  %v364_v62 = vld [vmem:[%s1323_s7 + $0x30] sm:$0xff]  ;;  %v439_v10 = vsub.f32 %v383_v36, %v1389_v30  ;;  %v375_v27 = vadd.f32 %v367_v29, %v343_v24 }
  0x9d   : > { %v1398_v42 = vsub.f32 %v347_v31, %v371_v38  ;;  %v431_v59 = vmul.f32 0.5, %v423_v48  ;;  %v372_v63 = vld [vmem:[%s1327_s1 + $0x30] sm:$0xff]  ;;  %v1437_v1 = vsub.f32 %v356_v58, %v364_v62  ;;  %v429_v3 = vadd.f32 %v1423_v56, %v1431_v61  ;;  %p986_p12 = por %p985_p6, %p984_p9 }
  0x9e   : > { %v1435_v0 = vsub.f32 %v348_v57, %v372_v63  ;;  %v434_v5 = vmul.f32 0.5, %v426_v60  ;;  %v391_v28 = vadd.f32 %v359_v26, %v351_v25  ;;  %v377_v33 = vadd.f32 %v1367_v19, %v1350_v12 }
  0x9f   : > { %v427_v54 = vadd.f32 %v1400_v43, %v1398_v42  ;;  %493 = vrot.lane.b32.xlu1 %v433_v47, %s1057_s25  ;;  %489 = vrot.lane.b32.xlu0 %v431_v59, %s1057_s25  ;;  %v437_v20 = vmul.f32 0.5, %v429_v3  ;;  %v393_v34 = vadd.f32 %v1364_v18, %v1361_v17  ;;  %v379_v35 = vadd.f32 %v371_v38, %v347_v31  ;;  %p987_p0 = pnand %p986_p12, %p980_p3 }
  0xa0   : > { %v428_v6 = vadd.f32 %v1437_v1, %v1435_v0  ;;  %v395_v40 = vadd.f32 %v363_v37, %v355_v32  ;;  %v407_v30 = vsub.f32 %v375_v27, %v391_v28  ;;  %v441_v13 = vsub.f32 %v1375_v22, %v1379_v23 }
  0xa1   : > { %v435_v2 = vmul.f32 0.5, %v427_v54  ;;  %v409_v15 = vsub.f32 %v377_v33, %v393_v34  ;;  %v447_v24 = vmul.f32 0.5, %v439_v10  ;;  %v378_v26 = vadd.f32 %v370_v46, %v346_v39 }
  0xa2   : > { %v436_v21 = vmul.f32 0.5, %v428_v6  ;;  %v411_v36 = vsub.f32 %v379_v35, %v395_v40  ;;  %v415_v25 = vmul.f32 0.5, %v407_v30  ;;  %v394_v12 = vadd.f32 %v362_v45, %v354_v44 }
  0xa3   : > { %497 = vrot.lane.b32.xlu1 %v435_v2, %s1057_s25  ;;  %495 = vrot.lane.b32.xlu0 %v434_v5, %s1057_s25  ;;  %v446_v17 = vmul.f32 0.5, %v438_v11  ;;  %v440_v18 = vsub.f32 %v1341_v7, %v1337_v4  ;;  %v417_v19 = vmul.f32 0.5, %v409_v15  ;;  %v381_v23 = vadd.f32 %v373_v55, %v349_v51 }
  0xa4   : > { %v419_v29 = vmul.f32 0.5, %v411_v36  ;;  %v410_v22 = vsub.f32 %v378_v26, %v394_v12  ;;  %v397_v31 = vadd.f32 %v365_v53, %v357_v52  ;;  %472 = vst.msk [vmem:[%s1415_s6 + $0x8] sm:$0xff] %vm470_vm0, %v415_v25  ;;  %v380_v32 = vadd.f32 %v372_v63, %v348_v57 }
  0xa5   : > { %v396_v37 = vadd.f32 %v364_v62, %v356_v58  ;;  %474 = vst.msk [vmem:[%s1415_s6 + $0x18] sm:$0xff] %vm470_vm0, %v417_v19  ;;  %v449_v38 = vmul.f32 0.5, %v441_v13  ;;  %v443_v4 = vsub.f32 %v1398_v42, %v1400_v43  ;;  %v448_v41 = vmul.f32 0.5, %v440_v18 }
  0xa6   : > { %476 = vst.msk [vmem:[%s1415_s6 + $0x28] sm:$0xff] %vm470_vm0, %v419_v29  ;;  %v418_v7 = vmul.f32 0.5, %v410_v22  ;;  %v413_v39 = vsub.f32 %v381_v23, %v397_v31  ;;  %v442_v44 = vsub.f32 %v1407_v49, %v1409_v50  ;;  %v445_v51 = vsub.f32 %v1431_v61, %v1423_v56 }
  0xa7   : > { %501 = vrot.lane.b32.xlu1 %v437_v20, %s1057_s25  ;;  %499 = vrot.lane.b32.xlu0 %v436_v21, %s1057_s25  ;;  %v412_v45 = vsub.f32 %v380_v32, %v396_v37  ;;  %v451_v48 = vmul.f32 0.5, %v443_v4  ;;  %v444_v43 = vsub.f32 %v1435_v0, %v1437_v1  ;;  %v455_v50 = vadd.f32 %v391_v28, %v375_v27 }
  0xa8   : > { %v421_v46 = vmul.f32 0.5, %v413_v39  ;;  %475 = vst.msk [vmem:[%s1415_s6 + $0x20] sm:$0xff] %vm470_vm0, %v418_v7  ;;  %v450_v42 = vmul.f32 0.5, %v442_v44  ;;  %v453_v49 = vmul.f32 0.5, %v445_v51  ;;  %v454_v53 = vadd.f32 %v1354_v14, %v1358_v16 }
  0xa9   : > { %v420_v47 = vmul.f32 0.5, %v412_v45  ;;  %v452_v52 = vmul.f32 0.5, %v444_v43  ;;  %v463_v54 = vmul.f32 0.5, %v455_v50  ;;  %v457_v55 = vadd.f32 %v393_v34, %v377_v33 }
  0xaa   : > { %478 = vst.msk [vmem:[%s1415_s6 + $0x38] sm:$0xff] %vm470_vm0, %v421_v46  ;;  %v462_v56 = vmul.f32 0.5, %v454_v53  ;;  %v456_v57 = vadd.f32 %v1343_v8, %v1345_v9  ;;  %v459_v59 = vadd.f32 %v395_v40, %v379_v35  ;;  %v458_v61 = vadd.f32 %v394_v12, %v378_v26 }
  0xab   : > { %530 = vrot.lane.b32.xlu1 %v447_v24, %s1058_s22  ;;  %528 = vrot.lane.b32.xlu0 %v446_v17, %s1058_s22  ;;  %477 = vst.msk [vmem:[%s1415_s6 + $0x30] sm:$0xff] %vm470_vm0, %v420_v47  ;;  %v465_v58 = vmul.f32 0.5, %v457_v55  ;;  %v461_v14 = vadd.f32 %v397_v31, %v381_v23  ;;  %v460_v63 = vadd.f32 %v396_v37, %v380_v32 }
  0xac   : > { %v464_v60 = vmul.f32 0.5, %v456_v57  ;;  %v467_v62 = vmul.f32 0.5, %v459_v59  ;;  %v466_v16 = vmul.f32 0.5, %v458_v61 }
  0xad   : > { %v469_v8 = vmul.f32 0.5, %v461_v14  ;;  %v468_v9 = vmul.f32 0.5, %v460_v63 }
  0xaf   : > { %534 = vrot.lane.b32.xlu1 %v449_v38, %s1058_s22  ;;  %532 = vrot.lane.b32.xlu0 %v448_v41, %s1058_s22 }
  0xb3   : > { %538 = vrot.lane.b32.xlu1 %v451_v48, %s1058_s22  ;;  %536 = vrot.lane.b32.xlu0 %v450_v42, %s1058_s22 }
  0xb7   : > { %542 = vrot.lane.b32.xlu1 %v453_v49, %s1058_s22  ;;  %540 = vrot.lane.b32.xlu0 %v452_v52, %s1058_s22 }
  0xbb   : > { %571 = vrot.lane.b32.xlu1 %v463_v54, %s1059_s9  ;;  %569 = vrot.lane.b32.xlu0 %v462_v56, %s1059_s9 }
  0xbf   : > { %575 = vrot.lane.b32.xlu1 %v465_v58, %s1059_s9  ;;  %573 = vrot.lane.b32.xlu0 %v464_v60, %s1059_s9 }
  0xc3   : > { %579 = vrot.lane.b32.xlu1 %v467_v62, %s1059_s9  ;;  %577 = vrot.lane.b32.xlu0 %v466_v16, %s1059_s9 }
  0xc7   : > { %583 = vrot.lane.b32.xlu1 %v469_v8, %s1059_s9  ;;  %581 = vrot.lane.b32.xlu0 %v468_v9, %s1059_s9 }
 0x10d   : > { %v492_v0 = vpop.permute.xlu1 %491  ;;  %v488_v1 = vpop.permute.xlu0 %487 }
 0x10e   : > { %514 = vst.msk [vmem:[%s1415_s6 + $0x10] sm:$0xff] %vm511_vm1, %v492_v0  ;;  %512 = vst.msk [vmem:[%s1415_s6] sm:$0xff] %vm511_vm1, %v488_v1 }
 0x111   : > { %v494_v2 = vpop.permute.xlu1 %493  ;;  %v490_v3 = vpop.permute.xlu0 %489 }
 0x112   : > { %515 = vst.msk [vmem:[%s1415_s6 + $0x18] sm:$0xff] %vm511_vm1, %v494_v2  ;;  %513 = vst.msk [vmem:[%s1415_s6 + $0x8] sm:$0xff] %vm511_vm1, %v490_v3 }
 0x115   : > { %v498_v5 = vpop.permute.xlu1 %497  ;;  %v496_v6 = vpop.permute.xlu0 %495 }
 0x116   : > { %517 = vst.msk [vmem:[%s1415_s6 + $0x28] sm:$0xff] %vm511_vm1, %v498_v5  ;;  %516 = vst.msk [vmem:[%s1415_s6 + $0x20] sm:$0xff] %vm511_vm1, %v496_v6 }
 0x119   : > { %v502_v10 = vpop.permute.xlu1 %501  ;;  %v500_v11 = vpop.permute.xlu0 %499 }
 0x11a   : > { %519 = vst.msk [vmem:[%s1415_s6 + $0x38] sm:$0xff] %vm511_vm1, %v502_v10  ;;  %518 = vst.msk [vmem:[%s1415_s6 + $0x30] sm:$0xff] %vm511_vm1, %v500_v11 }
 0x11d   : > { %v531_v20 = vpop.permute.xlu1 %530  ;;  %v529_v21 = vpop.permute.xlu0 %528 }
 0x11e   : > { %554 = vst.msk [vmem:[%s1415_s6 + $0x8] sm:$0xff] %vm552_vm2, %v531_v20  ;;  %553 = vst.msk [vmem:[%s1415_s6] sm:$0xff] %vm552_vm2, %v529_v21 }
 0x121   : > { %v535_v27 = vpop.permute.xlu1 %534  ;;  %v533_v28 = vpop.permute.xlu0 %532 }
 0x122   : > { %556 = vst.msk [vmem:[%s1415_s6 + $0x18] sm:$0xff] %vm552_vm2, %v535_v27  ;;  %555 = vst.msk [vmem:[%s1415_s6 + $0x10] sm:$0xff] %vm552_vm2, %v533_v28 }
 0x125   : > { %v539_v33 = vpop.permute.xlu1 %538  ;;  %v537_v34 = vpop.permute.xlu0 %536 }
 0x126   : > { %558 = vst.msk [vmem:[%s1415_s6 + $0x28] sm:$0xff] %vm552_vm2, %v539_v33  ;;  %557 = vst.msk [vmem:[%s1415_s6 + $0x20] sm:$0xff] %vm552_vm2, %v537_v34 }
 0x129   : > { %v543_v35 = vpop.permute.xlu1 %542  ;;  %v541_v40 = vpop.permute.xlu0 %540 }
 0x12a   : > { %560 = vst.msk [vmem:[%s1415_s6 + $0x38] sm:$0xff] %vm552_vm2, %v543_v35  ;;  %559 = vst.msk [vmem:[%s1415_s6 + $0x30] sm:$0xff] %vm552_vm2, %v541_v40 }
 0x12d   : > { %v572_v30 = vpop.permute.xlu1 %571  ;;  %v570_v13 = vpop.permute.xlu0 %569 }
 0x12e   : > { %595 = vst.msk [vmem:[%s1415_s6 + $0x8] sm:$0xff] %vm593_vm3, %v572_v30  ;;  %594 = vst.msk [vmem:[%s1415_s6] sm:$0xff] %vm593_vm3, %v570_v13 }
 0x131   : > { %v576_v15 = vpop.permute.xlu1 %575  ;;  %v574_v36 = vpop.permute.xlu0 %573 }
 0x132   : > { %597 = vst.msk [vmem:[%s1415_s6 + $0x18] sm:$0xff] %vm593_vm3, %v576_v15  ;;  %596 = vst.msk [vmem:[%s1415_s6 + $0x10] sm:$0xff] %vm593_vm3, %v574_v36 }
 0x135   : > { %v580_v24 = vpop.permute.xlu1 %579  ;;  %v578_v25 = vpop.permute.xlu0 %577 }
 0x136   : > { %599 = vst.msk [vmem:[%s1415_s6 + $0x28] sm:$0xff] %vm593_vm3, %v580_v24  ;;  %598 = vst.msk [vmem:[%s1415_s6 + $0x20] sm:$0xff] %vm593_vm3, %v578_v25 }
 0x139   : > { %v584_v26 = vpop.permute.xlu1 %583  ;;  %v582_v12 = vpop.permute.xlu0 %581 }
 0x13a   : > { %601 = vst.msk [vmem:[%s1415_s6 + $0x38] sm:$0xff] %vm593_vm3, %v584_v26  ;;  %600 = vst.msk [vmem:[%s1415_s6 + $0x30] sm:$0xff] %vm593_vm3, %v582_v12 }
 0x13b   : > { %990 = shalt.err (!%p987_p0)
}
 0x13c   : > { %s991_s17 = scalar_lea.hbm %s1533_s28, 1024  ;;  %s995_s13 = scalar_lea.hbm %s1586_s4, 2048 }
 0x13d   : > { %p992_p11 = scmp.ne.s32.totalorder %s1533_s28, %s991_s17  ;;  %p996_p7 = scmp.lt.s32.totalorder %s1533_s28, %s1586_s4 }
 0x13e   : > { %p997_p2 = scmp.lt.s32.totalorder %s995_s13, %s991_s17 }
 0x13f   : > { %p993_p4 = pnand %p992_p11, %p1614_p10 }
 0x140   : > { %p998_p8 = por %p997_p2, %p996_p7 }
 0x141   : > { %p994_p5 = pneg %p993_p4 }
 0x143   : > { %p999_p13 = pnand %p998_p8, %p994_p5 }
 0x145   : > { %1002 = shalt.err (!%p999_p13)
}
 0x146   : > { %s1061_s21 = smov 128   ;;  %s1062_s1 = smov 8  }
 0x147   : > { %805 = dma.vmem_to_hbm [thread:$0]  (%p1614_p10), %s1535_s8, 1024, %s1533_s28, %s603_s19, %s1061_s21, %s1061_s21, %s1062_s1  }
 0x148 PF: > { %s632_s25 = sand.u32 1, %s1037_s15   ;;  %p1615_p1 = scmp.ne.s32.totalorder %s1603_s27, 0 }
 0x149   : > { %p1616_p3 = scmp.ge.s32.totalorder %s1049_s18, 2  ;;  %s633_s6 = scalar_lea.sflag [#allocation4], %s632_s25 }
 0x14b   : > { %p821_p9 = pnand %p1616_p3, %p1615_p1 }
 0x14d   : > { %p822_p6 = pneg %p821_p9 }
 0x14f   : > { %1032 = dma.done.wait (%p822_p6), %s633_s6, 1024  }
 0x150   : > { %1034 = vsyncadd (%p822_p6), %s633_s6, 4294966272  ;;  %s1617_s18 = sld [smem:[#allocation16_spill]]  ;;  %s1620_s15 = smov %s1041_s16 }
 0x151   : > { %s1618_s22 = sld [smem:[#allocation15_spill]] }
 0x152   : > { %s1619_s17 = sld [smem:[#allocation17_spill]] }
 0x156   : > { %p23_p12 = scmp.ge.s32.totalorder %s1617_s18, 4  }
 0x157   : > { %s1621_s16 = smov %s1618_s22 }
 0x158   :  { %25 = sbr.rel (!%p23_p12) target bundleno = 12 (0xc), region = 118 }
 0x15d   :  { %638 = vsyncpa [#allocation3], 1 }
 0x15e   :  { %640 = vsyncpa [#allocation3 + $0x1], 1 }
 0x15f   :  { %641 = vsyncpa [#allocation6], 1 }
 0x160   :  { %643 = vsyncpa [#allocation6 + $0x1], 1 }
 0x161   :  { %644 = vsyncpa [#allocation9], 1 }
 0x162   :  { %646 = vsyncpa [#allocation9 + $0x1], 1 }
 0x163   :  { %647 = vsyncpa [#allocation4], 1 }
 0x164   :  { %649 = vsyncpa [#allocation4 + $0x1], 1 }

</bundles_post_ra>
